<compile_context>
chip_gen: v7x
topology: tpu7x:2x2x1
jax: 0.10.0
libtpu: 0.0.40
codegen_flags: <defaults>
</compile_context>

<pallas_src>
import jax
import jax.numpy as jnp
from jax.experimental import pallas as pl
from jax.experimental.pallas import tpu as pltpu


# ---------------------------------------------------------------------------
# Fixed model / problem dimensions (Net_chan5p2 defaults)
# ---------------------------------------------------------------------------
N_NODES = 32
N_GRAPHS = 2
IN_FEATS = 14
NUM_HEADS = 12
H1, C1 = NUM_HEADS, 24
HC1 = H1 * C1                       # 288
GCN_OUT = 48
H2, C2 = NUM_HEADS // 4, 96
HC2 = H2 * C2                       # 288
NUM_CLASS = 10
VEC_W = HC1                         # 288 (== HC2)
assert HC1 == HC2 == VEC_W

# Row offsets inside the packed [48, VEC_W] parameter-vector blob.
_R_A1D, _R_A1S = 0, H1                      # GAT1 att_dst / att_src (block-diag^T), 12 rows each
_R_A2D, _R_A2S = 2 * H1, 2 * H1 + H2        # GAT2 att_dst / att_src, 3 rows each
_R_G1 = 2 * H1 + 2 * H2                     # 30: conv_b, bn1_g, bn1_b, lin_b, bn2_g, bn2_b
_R_GCN = _R_G1 + 6                          # 36: bias, bn_g, bn_b, res_b
_R_G2 = _R_GCN + 4                          # 40: conv_b, bn1_g, bn1_b, lin_b, bn2_g, bn2_b
_R_FC = _R_G2 + 6                           # 46: fc bias
VEC_ROWS = _R_FC + 2                        # 48 (one zero pad row)


# ---------------------------------------------------------------------------
# In-kernel helpers (traced inside the single fused kernel body)
# ---------------------------------------------------------------------------

def _bn(x, g, b, eps=1e-5):
    """Training-mode BatchNorm1d over the node dimension, single-pass statistics."""
    mean = jnp.mean(x, axis=0, keepdims=True)
    msq = jnp.mean(x * x, axis=0, keepdims=True)
    var = jnp.maximum(msq - mean * mean, 0.0)
    return (x - mean) * jax.lax.rsqrt(var + eps) * g + b


def _gat_block(h_in, mask_rep, W, adstT, asrcT, lin_W, vecs, *, heads, ch):
    """PyG GATConv(concat, slope=0.2, self-loops) -> BN -> relu -> Linear -> BN -> relu."""
    n = h_in.shape[0]
    hc = heads * ch
    conv_b, bn1_g, bn1_b, lin_b, bn2_g, bn2_b = vecs

    xp = jnp.dot(h_in, W, preferred_element_type=jnp.float32)            # [N, H*C]

    # Per-node attention terms from the block-diagonal (transposed) attention vectors.
    nt = (((1,), (1,)), ((), ()))                                         # A @ B^T style contraction
    a_dst = jax.lax.dot_general(xp, adstT, dimension_numbers=nt,
                                preferred_element_type=jnp.float32)       # [N, H]
    a_src = jax.lax.dot_general(asrcT, xp, dimension_numbers=nt,
                                preferred_element_type=jnp.float32)       # [H, N]

    # Stacked logits [H*N, N]; block h holds head-h logits.  Building the stack is H cheap
    # broadcast-adds; all heavy softmax math below runs ONCE, batched over heads.
    z = jnp.concatenate(
        [a_dst[:, h:h + 1] + a_src[h:h + 1, :] for h in range(heads)], axis=0)
    z = jnp.where(z > 0, z, 0.2 * z)                                      # LeakyReLU(0.2)
    z = jnp.where(mask_rep > 0, z, -1e30)                                 # restrict to edges
    m = jnp.max(z, axis=-1, keepdims=True)                                # MASKED row-max (safe)
    p = jnp.exp(z - m)                                                    # non-edges underflow -> 0
    s = jnp.sum(p, axis=-1, keepdims=True)                                # > 0 (self-loops exist)
    p = p * pl.reciprocal(s, approx=True)

    # Single aggregation matmul: P_cat [N, H*N] @ Xp_blk [H*N, H*C] -> [N, H*C].
    p_cat = jnp.concatenate([p[h * n:(h + 1) * n, :] for h in range(heads)], axis=1)
    col = jax.lax.broadcasted_iota(jnp.int32, (1, hc), 1)
    xp_blk = jnp.concatenate(
        [jnp.where(jnp.logical_and(col >= h * ch, col < (h + 1) * ch), xp, 0.0)
         for h in range(heads)], axis=0)
    agg = jnp.dot(p_cat, xp_blk, preferred_element_type=jnp.float32) + conv_b

    h1 = jnp.maximum(_bn(agg, bn1_g, bn1_b), 0.0)                         # BN1 + relu
    h2 = jnp.dot(h1, lin_W, preferred_element_type=jnp.float32) + lin_b   # conv_linear
    return jnp.maximum(_bn(h2, bn2_g, bn2_b), 0.0)                        # BN2 + relu


# ---------------------------------------------------------------------------
# Fused forward kernel (single grid point; everything VMEM-resident)
# ---------------------------------------------------------------------------

def _net_kernel(x_ref, graph_ref, vec_ref, w_ref, lin_ref, gcn_ref, fc_ref, y_ref):
    n = N_NODES

    # ---- unpack the packed operands (static, aligned slices) ----
    mask_rep1 = graph_ref[0:H1 * n, :]                                   # [384, 32]
    a_norm = graph_ref[H1 * n:H1 * n + n, :]                             # [32, 32]
    pool = graph_ref[H1 * n + n:H1 * n + n + N_GRAPHS, :]                # [2, 32]
    mask_rep2 = mask_rep1[0:H2 * n, :]                                   # [96, 32]

    def vrow(r, w):
        return vec_ref[r:r + 1, 0:w]

    adstT1 = vec_ref[_R_A1D:_R_A1D + H1, :]                              # [12, 288]
    asrcT1 = vec_ref[_R_A1S:_R_A1S + H1, :]
    adstT2 = vec_ref[_R_A2D:_R_A2D + H2, :]                              # [3, 288]
    asrcT2 = vec_ref[_R_A2S:_R_A2S + H2, :]

    g1_vecs = (vrow(_R_G1 + 0, HC1), vrow(_R_G1 + 1, HC1), vrow(_R_G1 + 2, HC1),
               vrow(_R_G1 + 3, C1), vrow(_R_G1 + 4, C1), vrow(_R_G1 + 5, C1))
    gcn_b = vrow(_R_GCN + 0, GCN_OUT)
    gcn_g = vrow(_R_GCN + 1, GCN_OUT)
    gcn_beta = vrow(_R_GCN + 2, GCN_OUT)
    res_b = vrow(_R_GCN + 3, GCN_OUT)
    g2_vecs = (vrow(_R_G2 + 0, HC2), vrow(_R_G2 + 1, HC2), vrow(_R_G2 + 2, HC2),
               vrow(_R_G2 + 3, C2), vrow(_R_G2 + 4, C2), vrow(_R_G2 + 5, C2))
    fc_b = vrow(_R_FC, NUM_CLASS)

    g1_W = w_ref[0:IN_FEATS, :]                                          # [14, 288]
    g2_W = w_ref[16:16 + GCN_OUT, :]                                     # [48, 288]
    g1_lin = lin_ref[0:HC1, 0:C1]                                        # [288, 24]
    g2_lin = lin_ref[HC1:HC1 + HC2, 0:C2]                                # [288, 96]

    x = x_ref[...]

    # ---- GAT block 1 ----
    h = _gat_block(x, mask_rep1, g1_W, adstT1, asrcT1, g1_lin, g1_vecs, heads=H1, ch=C1)

    # ---- GCN block: BN(relu(Â h W + b)) + (h @ res_W + res_b), W|res_W fused in one matmul ----
    hw = jnp.dot(h, gcn_ref[...], preferred_element_type=jnp.float32)    # [32, 96]
    xw = hw[:, 0:GCN_OUT]
    res = hw[:, GCN_OUT:2 * GCN_OUT]
    aggr = jnp.dot(a_norm, xw, preferred_element_type=jnp.float32) + gcn_b
    h = _bn(jnp.maximum(aggr, 0.0), gcn_g, gcn_beta) + res + res_b

    # ---- GAT block 2 ----
    h = _gat_block(h, mask_rep2, g2_W, adstT2, asrcT2, g2_lin, g2_vecs, heads=H2, ch=C2)

    # ---- global_mean_pool -> dropout(identity) -> fc ----
    pooled = jnp.dot(pool, h, preferred_element_type=jnp.float32)        # [G, 96]
    y_ref[...] = jnp.dot(pooled, fc_ref[...], preferred_element_type=jnp.float32) + fc_b


# ---------------------------------------------------------------------------
# Wrapper: single pallas_call, 7 packed inputs
# ---------------------------------------------------------------------------

def _full_spec(a):
    nd = a.ndim
    return pl.BlockSpec(a.shape, lambda i, _nd=nd: (0,) * _nd)


def net_forward(params, x, graph_blob):
    args = [x, graph_blob, params["vec"], params["w_cat"], params["lin_cat"],
            params["gcn_wr"], params["fc_w"]]
    return pl.pallas_call(
        _net_kernel,
        out_shape=jax.ShapeDtypeStruct((N_GRAPHS, NUM_CLASS), jnp.float32),
        grid=(1,),
        in_specs=[_full_spec(a) for a in args],
        out_specs=pl.BlockSpec((N_GRAPHS, NUM_CLASS), lambda i: (0, 0)),
        compiler_params=pltpu.CompilerParams(dimension_semantics=("arbitrary",)),
        cost_estimate=pl.CostEstimate(flops=13_000_000, transcendentals=16_000,
                                      bytes_accessed=430_000),
    )(*args)


# ---------------------------------------------------------------------------
# Host-side glue: graph densification + deterministic, kernel-ready parameter packing
# ---------------------------------------------------------------------------

def build_graph(edge_index, batch, n_nodes=N_NODES, n_graphs=N_GRAPHS):
    src, dst = edge_index[0], edge_index[1]
    A = jnp.zeros((n_nodes, n_nodes), jnp.float32).at[dst, src].set(1.0)
    A = jnp.maximum(A, jnp.eye(n_nodes, dtype=jnp.float32))          # self-loops (GAT/GCN add them)
    deg = jnp.sum(A, axis=1)
    dinv = jax.lax.rsqrt(deg)
    a_norm = A * dinv[:, None] * dinv[None, :]                       # D^-1/2 (A+I) D^-1/2
    onehot = (batch[None, :] == jnp.arange(n_graphs)[:, None]).astype(jnp.float32)
    pool = onehot / jnp.sum(onehot, axis=1, keepdims=True)           # mean-pool matrix [G, N]
    # One lane-dense blob: [per-head tiled edge mask | Â | pool]  -> [H1*N + N + G, N]
    return jnp.concatenate([jnp.tile(A, (H1, 1)), a_norm, pool], axis=0)


def _att_bdT(att):
    """[H, C] -> [H, H*C]: block-diagonal-transposed attention vectors."""
    H, C = att.shape
    eye = jnp.eye(H, dtype=att.dtype)
    return (eye[:, :, None] * att[None, :, :]).reshape(H, H * C)


def _row(v, w=VEC_W):
    v = jnp.asarray(v, jnp.float32).reshape(1, -1)
    return jnp.pad(v, ((0, 0), (0, w - v.shape[1])))


def init_params(key):
    ks = jax.random.split(key, 11)

    def lin(k, fan_in, shape):
        return jax.random.normal(k, shape, jnp.float32) / jnp.sqrt(float(fan_in))

    g1_W = lin(ks[0], IN_FEATS, (IN_FEATS, HC1))
    att_dst1 = jax.random.normal(ks[1], (H1, C1), jnp.float32) * 0.1
    att_src1 = jax.random.normal(ks[2], (H1, C1), jnp.float32) * 0.1
    g1_lin = lin(ks[3], HC1, (HC1, C1))

    gcn_W = lin(ks[4], C1, (C1, GCN_OUT))
    res_W = lin(ks[5], C1, (C1, GCN_OUT))

    g2_W = lin(ks[6], GCN_OUT, (GCN_OUT, HC2))
    att_dst2 = jax.random.normal(ks[7], (H2, C2), jnp.float32) * 0.1
    att_src2 = jax.random.normal(ks[8], (H2, C2), jnp.float32) * 0.1
    g2_lin = lin(ks[9], HC2, (HC2, C2))

    fc_W = lin(ks[10], C2, (C2, NUM_CLASS))

    zeros = lambda m: jnp.zeros((m,), jnp.float32)
    ones = lambda m: jnp.ones((m,), jnp.float32)

    vec = jnp.concatenate([
        _att_bdT(att_dst1), _att_bdT(att_src1),                       # rows  0:12, 12:24
        _att_bdT(att_dst2), _att_bdT(att_src2),                       # rows 24:27, 27:30
        _row(zeros(HC1)), _row(ones(HC1)), _row(zeros(HC1)),          # g1: conv_b, bn1_g, bn1_b
        _row(zeros(C1)), _row(ones(C1)), _row(zeros(C1)),             # g1: lin_b, bn2_g, bn2_b
        _row(zeros(GCN_OUT)), _row(ones(GCN_OUT)),
        _row(zeros(GCN_OUT)), _row(zeros(GCN_OUT)),                   # gcn: b, bn_g, bn_b, res_b
        _row(zeros(HC2)), _row(ones(HC2)), _row(zeros(HC2)),          # g2: conv_b, bn1_g, bn1_b
        _row(zeros(C2)), _row(ones(C2)), _row(zeros(C2)),             # g2: lin_b, bn2_g, bn2_b
        _row(zeros(NUM_CLASS)),                                       # fc_b
        jnp.zeros((1, VEC_W), jnp.float32),                           # pad -> 48 rows
    ], axis=0)
    assert vec.shape == (VEC_ROWS, VEC_W)

    w_cat = jnp.zeros((64, HC1), jnp.float32)
    w_cat = w_cat.at[0:IN_FEATS, :].set(g1_W)                         # rows  0:14
    w_cat = w_cat.at[16:16 + GCN_OUT, :].set(g2_W)                    # rows 16:64

    lin_cat = jnp.zeros((HC1 + HC2, C2), jnp.float32)
    lin_cat = lin_cat.at[0:HC1, 0:C1].set(g1_lin)                     # rows   0:288, cols 0:24
    lin_cat = lin_cat.at[HC1:, :].set(g2_lin)                         # rows 288:576, cols 0:96

    gcn_wr = jnp.concatenate([gcn_W, res_W], axis=1)                  # [24, 96]

    return {"vec": vec, "w_cat": w_cat, "lin_cat": lin_cat, "gcn_wr": gcn_wr, "fc_w": fc_W}


# ---------------------------------------------------------------------------

if __name__ == "__main__":
    key = jax.random.PRNGKey(0)
    kx, ke, ka, kp = jax.random.split(key, 4)

    n_edges = 64
    x = jax.random.normal(kx, (N_NODES, IN_FEATS), jnp.float32)
    edge_index = jax.random.randint(ke, (2, n_edges), 0, N_NODES)
    edge_attr = jax.random.normal(ka, (n_edges, 4), jnp.float32)      # ignored (GATConv edge_dim=None)
    batch = jnp.repeat(jnp.arange(N_GRAPHS, dtype=jnp.int32), N_NODES // N_GRAPHS)

    params = init_params(kp)
    graph_blob = build_graph(edge_index, batch)

    y = net_forward(params, x, graph_blob)
    y = jax.block_until_ready(y)
    assert y.shape == (N_GRAPHS, NUM_CLASS) and y.dtype == jnp.float32
    assert bool(jnp.all(jnp.isfinite(y)))

    print("KERNEL_OK")
</pallas_src>

<mosaic_0001>
module attributes {stable_mosaic.version = 11 : i64} {
  func.func @_net_kernel(%arg0: i32, %arg1: memref<32x14xf32, #tpu.memory_space<vmem>>, %arg2: memref<418x32xf32, #tpu.memory_space<vmem>>, %arg3: memref<48x288xf32, #tpu.memory_space<vmem>>, %arg4: memref<64x288xf32, #tpu.memory_space<vmem>>, %arg5: memref<576x96xf32, #tpu.memory_space<vmem>>, %arg6: memref<24x96xf32, #tpu.memory_space<vmem>>, %arg7: memref<96x10xf32, #tpu.memory_space<vmem>>, %arg8: memref<2x10xf32, #tpu.memory_space<vmem>>) attributes {dimension_semantics = [#tpu.dimension_semantics<arbitrary>], iteration_bounds = array<i64: 1>, scalar_prefetch = 0 : i64, scratch_operands = 0 : i64, tpu.core_type = #tpu.core_type<tc>, window_params = [{pipeline_mode = #tpu.pipeline_mode<synchronous>, transform_indices = @transform_0, window_bounds = array<i64: 32, 14>}, {pipeline_mode = #tpu.pipeline_mode<synchronous>, transform_indices = @transform_1, window_bounds = array<i64: 418, 32>}, {pipeline_mode = #tpu.pipeline_mode<synchronous>, transform_indices = @transform_2, window_bounds = array<i64: 48, 288>}, {pipeline_mode = #tpu.pipeline_mode<synchronous>, transform_indices = @transform_3, window_bounds = array<i64: 64, 288>}, {pipeline_mode = #tpu.pipeline_mode<synchronous>, transform_indices = @transform_4, window_bounds = array<i64: 576, 96>}, {pipeline_mode = #tpu.pipeline_mode<synchronous>, transform_indices = @transform_5, window_bounds = array<i64: 24, 96>}, {pipeline_mode = #tpu.pipeline_mode<synchronous>, transform_indices = @transform_6, window_bounds = array<i64: 96, 10>}, {pipeline_mode = #tpu.pipeline_mode<synchronous>, transform_indices = @transform_7, window_bounds = array<i64: 2, 10>}]} {
    %c0 = arith.constant 0 : index
    %c0_0 = arith.constant 0 : index
    %0 = vector.load %arg2[%c0, %c0_0] : memref<418x32xf32, #tpu.memory_space<vmem>>, vector<384x32xf32>
    %c384 = arith.constant 384 : index
    %c0_1 = arith.constant 0 : index
    %1 = vector.load %arg2[%c384, %c0_1] : memref<418x32xf32, #tpu.memory_space<vmem>>, vector<32x32xf32>
    %c416 = arith.constant 416 : index
    %c0_2 = arith.constant 0 : index
    %2 = vector.load %arg2[%c416, %c0_2] : memref<418x32xf32, #tpu.memory_space<vmem>>, vector<2x32xf32>
    %3 = vector.extract_strided_slice %0 {offsets = [0, 0], sizes = [96, 32], strides = [1, 1]} : vector<384x32xf32> to vector<96x32xf32>
    %c0_3 = arith.constant 0 : index
    %c0_4 = arith.constant 0 : index
    %4 = vector.load %arg3[%c0_3, %c0_4] : memref<48x288xf32, #tpu.memory_space<vmem>>, vector<12x288xf32>
    %c12 = arith.constant 12 : index
    %c0_5 = arith.constant 0 : index
    %5 = vector.load %arg3[%c12, %c0_5] : memref<48x288xf32, #tpu.memory_space<vmem>>, vector<12x288xf32>
    %c24 = arith.constant 24 : index
    %c0_6 = arith.constant 0 : index
    %6 = vector.load %arg3[%c24, %c0_6] : memref<48x288xf32, #tpu.memory_space<vmem>>, vector<3x288xf32>
    %c27 = arith.constant 27 : index
    %c0_7 = arith.constant 0 : index
    %7 = vector.load %arg3[%c27, %c0_7] : memref<48x288xf32, #tpu.memory_space<vmem>>, vector<3x288xf32>
    %c30 = arith.constant 30 : index
    %c0_8 = arith.constant 0 : index
    %8 = vector.load %arg3[%c30, %c0_8] : memref<48x288xf32, #tpu.memory_space<vmem>>, vector<1x288xf32>
    %c31 = arith.constant 31 : index
    %c0_9 = arith.constant 0 : index
    %9 = vector.load %arg3[%c31, %c0_9] : memref<48x288xf32, #tpu.memory_space<vmem>>, vector<1x288xf32>
    %c32 = arith.constant 32 : index
    %c0_10 = arith.constant 0 : index
    %10 = vector.load %arg3[%c32, %c0_10] : memref<48x288xf32, #tpu.memory_space<vmem>>, vector<1x288xf32>
    %c33 = arith.constant 33 : index
    %c0_11 = arith.constant 0 : index
    %11 = vector.load %arg3[%c33, %c0_11] : memref<48x288xf32, #tpu.memory_space<vmem>>, vector<1x24xf32>
    %c34 = arith.constant 34 : index
    %c0_12 = arith.constant 0 : index
    %12 = vector.load %arg3[%c34, %c0_12] : memref<48x288xf32, #tpu.memory_space<vmem>>, vector<1x24xf32>
    %c35 = arith.constant 35 : index
    %c0_13 = arith.constant 0 : index
    %13 = vector.load %arg3[%c35, %c0_13] : memref<48x288xf32, #tpu.memory_space<vmem>>, vector<1x24xf32>
    %c36 = arith.constant 36 : index
    %c0_14 = arith.constant 0 : index
    %14 = vector.load %arg3[%c36, %c0_14] : memref<48x288xf32, #tpu.memory_space<vmem>>, vector<1x48xf32>
    %c37 = arith.constant 37 : index
    %c0_15 = arith.constant 0 : index
    %15 = vector.load %arg3[%c37, %c0_15] : memref<48x288xf32, #tpu.memory_space<vmem>>, vector<1x48xf32>
    %c38 = arith.constant 38 : index
    %c0_16 = arith.constant 0 : index
    %16 = vector.load %arg3[%c38, %c0_16] : memref<48x288xf32, #tpu.memory_space<vmem>>, vector<1x48xf32>
    %c39 = arith.constant 39 : index
    %c0_17 = arith.constant 0 : index
    %17 = vector.load %arg3[%c39, %c0_17] : memref<48x288xf32, #tpu.memory_space<vmem>>, vector<1x48xf32>
    %c40 = arith.constant 40 : index
    %c0_18 = arith.constant 0 : index
    %18 = vector.load %arg3[%c40, %c0_18] : memref<48x288xf32, #tpu.memory_space<vmem>>, vector<1x288xf32>
    %c41 = arith.constant 41 : index
    %c0_19 = arith.constant 0 : index
    %19 = vector.load %arg3[%c41, %c0_19] : memref<48x288xf32, #tpu.memory_space<vmem>>, vector<1x288xf32>
    %c42 = arith.constant 42 : index
    %c0_20 = arith.constant 0 : index
    %20 = vector.load %arg3[%c42, %c0_20] : memref<48x288xf32, #tpu.memory_space<vmem>>, vector<1x288xf32>
    %c43 = arith.constant 43 : index
    %c0_21 = arith.constant 0 : index
    %21 = vector.load %arg3[%c43, %c0_21] : memref<48x288xf32, #tpu.memory_space<vmem>>, vector<1x96xf32>
    %c44 = arith.constant 44 : index
    %c0_22 = arith.constant 0 : index
    %22 = vector.load %arg3[%c44, %c0_22] : memref<48x288xf32, #tpu.memory_space<vmem>>, vector<1x96xf32>
    %c45 = arith.constant 45 : index
    %c0_23 = arith.constant 0 : index
    %23 = vector.load %arg3[%c45, %c0_23] : memref<48x288xf32, #tpu.memory_space<vmem>>, vector<1x96xf32>
    %c46 = arith.constant 46 : index
    %c0_24 = arith.constant 0 : index
    %24 = vector.load %arg3[%c46, %c0_24] : memref<48x288xf32, #tpu.memory_space<vmem>>, vector<1x10xf32>
    %c0_25 = arith.constant 0 : index
    %c0_26 = arith.constant 0 : index
    %25 = vector.load %arg4[%c0_25, %c0_26] : memref<64x288xf32, #tpu.memory_space<vmem>>, vector<14x288xf32>
    %c16 = arith.constant 16 : index
    %c0_27 = arith.constant 0 : index
    %26 = vector.load %arg4[%c16, %c0_27] : memref<64x288xf32, #tpu.memory_space<vmem>>, vector<48x288xf32>
    %c0_28 = arith.constant 0 : index
    %c0_29 = arith.constant 0 : index
    %27 = vector.load %arg5[%c0_28, %c0_29] : memref<576x96xf32, #tpu.memory_space<vmem>>, vector<288x24xf32>
    %c288 = arith.constant 288 : index
    %c0_30 = arith.constant 0 : index
    %28 = vector.load %arg5[%c288, %c0_30] : memref<576x96xf32, #tpu.memory_space<vmem>>, vector<288x96xf32>
    %c0_31 = arith.constant 0 : index
    %c0_32 = arith.constant 0 : index
    %29 = vector.load %arg1[%c0_31, %c0_32] : memref<32x14xf32, #tpu.memory_space<vmem>>, vector<32x14xf32>
    %cst = arith.constant dense<0.000000e+00> : vector<32x288xf32>
    %30 = tpu.matmul %29, %25, %cst {dimension_numbers = #tpu.dot_dimension_numbers<[1], [0], [0], [1], [0, 0, 1, 1], [], []>} : vector<32x14xf32>, vector<14x288xf32>, vector<32x288xf32> -> vector<32x288xf32>
    %cst_33 = arith.constant dense<0.000000e+00> : vector<32x12xf32>
    %31 = tpu.matmul %30, %4, %cst_33 {dimension_numbers = #tpu.dot_dimension_numbers<[1], [1], [0], [0], [0, 0, 1, 0], [], []>} : vector<32x288xf32>, vector<12x288xf32>, vector<32x12xf32> -> vector<32x12xf32>
    %cst_34 = arith.constant dense<0.000000e+00> : vector<12x32xf32>
    %32 = tpu.matmul %5, %30, %cst_34 {dimension_numbers = #tpu.dot_dimension_numbers<[1], [1], [0], [0], [0, 0, 1, 0], [], []>} : vector<12x288xf32>, vector<32x288xf32>, vector<12x32xf32> -> vector<12x32xf32>
    %33 = vector.extract_strided_slice %31 {offsets = [0, 0], sizes = [32, 1], strides = [1, 1]} : vector<32x12xf32> to vector<32x1xf32>
    %34 = vector.extract_strided_slice %32 {offsets = [0, 0], sizes = [1, 32], strides = [1, 1]} : vector<12x32xf32> to vector<1x32xf32>
    %35 = vector.broadcast %33 : vector<32x1xf32> to vector<32x32xf32>
    %36 = vector.broadcast %34 : vector<1x32xf32> to vector<32x32xf32>
    %37 = arith.addf %35, %36 : vector<32x32xf32>
    %38 = vector.extract_strided_slice %31 {offsets = [0, 1], sizes = [32, 1], strides = [1, 1]} : vector<32x12xf32> to vector<32x1xf32>
    %39 = vector.extract_strided_slice %32 {offsets = [1, 0], sizes = [1, 32], strides = [1, 1]} : vector<12x32xf32> to vector<1x32xf32>
    %40 = vector.broadcast %38 : vector<32x1xf32> to vector<32x32xf32>
    %41 = vector.broadcast %39 : vector<1x32xf32> to vector<32x32xf32>
    %42 = arith.addf %40, %41 : vector<32x32xf32>
    %43 = vector.extract_strided_slice %31 {offsets = [0, 2], sizes = [32, 1], strides = [1, 1]} : vector<32x12xf32> to vector<32x1xf32>
    %44 = vector.extract_strided_slice %32 {offsets = [2, 0], sizes = [1, 32], strides = [1, 1]} : vector<12x32xf32> to vector<1x32xf32>
    %45 = vector.broadcast %43 : vector<32x1xf32> to vector<32x32xf32>
    %46 = vector.broadcast %44 : vector<1x32xf32> to vector<32x32xf32>
    %47 = arith.addf %45, %46 : vector<32x32xf32>
    %48 = vector.extract_strided_slice %31 {offsets = [0, 3], sizes = [32, 1], strides = [1, 1]} : vector<32x12xf32> to vector<32x1xf32>
    %49 = vector.extract_strided_slice %32 {offsets = [3, 0], sizes = [1, 32], strides = [1, 1]} : vector<12x32xf32> to vector<1x32xf32>
    %50 = vector.broadcast %48 : vector<32x1xf32> to vector<32x32xf32>
    %51 = vector.broadcast %49 : vector<1x32xf32> to vector<32x32xf32>
    %52 = arith.addf %50, %51 : vector<32x32xf32>
    %53 = vector.extract_strided_slice %31 {offsets = [0, 4], sizes = [32, 1], strides = [1, 1]} : vector<32x12xf32> to vector<32x1xf32>
    %54 = vector.extract_strided_slice %32 {offsets = [4, 0], sizes = [1, 32], strides = [1, 1]} : vector<12x32xf32> to vector<1x32xf32>
    %55 = vector.broadcast %53 : vector<32x1xf32> to vector<32x32xf32>
    %56 = vector.broadcast %54 : vector<1x32xf32> to vector<32x32xf32>
    %57 = arith.addf %55, %56 : vector<32x32xf32>
    %58 = vector.extract_strided_slice %31 {offsets = [0, 5], sizes = [32, 1], strides = [1, 1]} : vector<32x12xf32> to vector<32x1xf32>
    %59 = vector.extract_strided_slice %32 {offsets = [5, 0], sizes = [1, 32], strides = [1, 1]} : vector<12x32xf32> to vector<1x32xf32>
    %60 = vector.broadcast %58 : vector<32x1xf32> to vector<32x32xf32>
    %61 = vector.broadcast %59 : vector<1x32xf32> to vector<32x32xf32>
    %62 = arith.addf %60, %61 : vector<32x32xf32>
    %63 = vector.extract_strided_slice %31 {offsets = [0, 6], sizes = [32, 1], strides = [1, 1]} : vector<32x12xf32> to vector<32x1xf32>
    %64 = vector.extract_strided_slice %32 {offsets = [6, 0], sizes = [1, 32], strides = [1, 1]} : vector<12x32xf32> to vector<1x32xf32>
    %65 = vector.broadcast %63 : vector<32x1xf32> to vector<32x32xf32>
    %66 = vector.broadcast %64 : vector<1x32xf32> to vector<32x32xf32>
    %67 = arith.addf %65, %66 : vector<32x32xf32>
    %68 = vector.extract_strided_slice %31 {offsets = [0, 7], sizes = [32, 1], strides = [1, 1]} : vector<32x12xf32> to vector<32x1xf32>
    %69 = vector.extract_strided_slice %32 {offsets = [7, 0], sizes = [1, 32], strides = [1, 1]} : vector<12x32xf32> to vector<1x32xf32>
    %70 = vector.broadcast %68 : vector<32x1xf32> to vector<32x32xf32>
    %71 = vector.broadcast %69 : vector<1x32xf32> to vector<32x32xf32>
    %72 = arith.addf %70, %71 : vector<32x32xf32>
    %73 = vector.extract_strided_slice %31 {offsets = [0, 8], sizes = [32, 1], strides = [1, 1]} : vector<32x12xf32> to vector<32x1xf32>
    %74 = vector.extract_strided_slice %32 {offsets = [8, 0], sizes = [1, 32], strides = [1, 1]} : vector<12x32xf32> to vector<1x32xf32>
    %75 = vector.broadcast %73 : vector<32x1xf32> to vector<32x32xf32>
    %76 = vector.broadcast %74 : vector<1x32xf32> to vector<32x32xf32>
    %77 = arith.addf %75, %76 : vector<32x32xf32>
    %78 = vector.extract_strided_slice %31 {offsets = [0, 9], sizes = [32, 1], strides = [1, 1]} : vector<32x12xf32> to vector<32x1xf32>
    %79 = vector.extract_strided_slice %32 {offsets = [9, 0], sizes = [1, 32], strides = [1, 1]} : vector<12x32xf32> to vector<1x32xf32>
    %80 = vector.broadcast %78 : vector<32x1xf32> to vector<32x32xf32>
    %81 = vector.broadcast %79 : vector<1x32xf32> to vector<32x32xf32>
    %82 = arith.addf %80, %81 : vector<32x32xf32>
    %83 = vector.extract_strided_slice %31 {offsets = [0, 10], sizes = [32, 1], strides = [1, 1]} : vector<32x12xf32> to vector<32x1xf32>
    %84 = vector.extract_strided_slice %32 {offsets = [10, 0], sizes = [1, 32], strides = [1, 1]} : vector<12x32xf32> to vector<1x32xf32>
    %85 = vector.broadcast %83 : vector<32x1xf32> to vector<32x32xf32>
    %86 = vector.broadcast %84 : vector<1x32xf32> to vector<32x32xf32>
    %87 = arith.addf %85, %86 : vector<32x32xf32>
    %88 = vector.extract_strided_slice %31 {offsets = [0, 11], sizes = [32, 1], strides = [1, 1]} : vector<32x12xf32> to vector<32x1xf32>
    %89 = vector.extract_strided_slice %32 {offsets = [11, 0], sizes = [1, 32], strides = [1, 1]} : vector<12x32xf32> to vector<1x32xf32>
    %90 = vector.broadcast %88 : vector<32x1xf32> to vector<32x32xf32>
    %91 = vector.broadcast %89 : vector<1x32xf32> to vector<32x32xf32>
    %92 = arith.addf %90, %91 : vector<32x32xf32>
    %93 = tpu.concatenate %37, %42, %47, %52, %57, %62, %67, %72, %77, %82, %87, %92 in 0 : vector<32x32xf32>, vector<32x32xf32>, vector<32x32xf32>, vector<32x32xf32>, vector<32x32xf32>, vector<32x32xf32>, vector<32x32xf32>, vector<32x32xf32>, vector<32x32xf32>, vector<32x32xf32>, vector<32x32xf32>, vector<32x32xf32> -> vector<384x32xf32>
    %cst_35 = arith.constant 0.000000e+00 : f32
    %94 = vector.broadcast %cst_35 : f32 to vector<384x32xf32>
    %95 = arith.cmpf ogt, %93, %94 : vector<384x32xf32>
    %cst_36 = arith.constant 2.000000e-01 : f32
    %96 = vector.broadcast %cst_36 : f32 to vector<384x32xf32>
    %97 = arith.mulf %96, %93 : vector<384x32xf32>
    %98 = arith.select %95, %93, %97 : vector<384x32xi1>, vector<384x32xf32>
    %cst_37 = arith.constant 0.000000e+00 : f32
    %99 = vector.broadcast %cst_37 : f32 to vector<384x32xf32>
    %100 = arith.cmpf ogt, %0, %99 : vector<384x32xf32>
    %cst_38 = arith.constant -1.000000e+30 : f32
    %101 = vector.broadcast %cst_38 : f32 to vector<384x32xf32>
    %102 = arith.select %100, %98, %101 : vector<384x32xi1>, vector<384x32xf32>
    %cst_39 = arith.constant dense<0xFF800000> : vector<384xf32>
    %103 = vector.multi_reduction <maximumf>, %102, %cst_39 [1] : vector<384x32xf32> to vector<384xf32>
    %104 = vector.shape_cast %103 : vector<384xf32> to vector<384x1xf32>
    %105 = vector.broadcast %104 : vector<384x1xf32> to vector<384x32xf32>
    %106 = arith.subf %102, %105 : vector<384x32xf32>
    %107 = math.exp %106 : vector<384x32xf32>
    %cst_40 = arith.constant dense<0.000000e+00> : vector<384xf32>
    %108 = vector.multi_reduction <add>, %107, %cst_40 [1] : vector<384x32xf32> to vector<384xf32>
    %109 = vector.shape_cast %108 : vector<384xf32> to vector<384x1xf32>
    %110 = tpu.reciprocal %109 {approx = true} : vector<384x1xf32> -> vector<384x1xf32>
    %111 = vector.broadcast %110 : vector<384x1xf32> to vector<384x32xf32>
    %112 = arith.mulf %107, %111 : vector<384x32xf32>
    %113 = vector.extract_strided_slice %112 {offsets = [0, 0], sizes = [32, 32], strides = [1, 1]} : vector<384x32xf32> to vector<32x32xf32>
    %114 = vector.extract_strided_slice %112 {offsets = [32, 0], sizes = [32, 32], strides = [1, 1]} : vector<384x32xf32> to vector<32x32xf32>
    %115 = vector.extract_strided_slice %112 {offsets = [64, 0], sizes = [32, 32], strides = [1, 1]} : vector<384x32xf32> to vector<32x32xf32>
    %116 = vector.extract_strided_slice %112 {offsets = [96, 0], sizes = [32, 32], strides = [1, 1]} : vector<384x32xf32> to vector<32x32xf32>
    %117 = vector.extract_strided_slice %112 {offsets = [128, 0], sizes = [32, 32], strides = [1, 1]} : vector<384x32xf32> to vector<32x32xf32>
    %118 = vector.extract_strided_slice %112 {offsets = [160, 0], sizes = [32, 32], strides = [1, 1]} : vector<384x32xf32> to vector<32x32xf32>
    %119 = vector.extract_strided_slice %112 {offsets = [192, 0], sizes = [32, 32], strides = [1, 1]} : vector<384x32xf32> to vector<32x32xf32>
    %120 = vector.extract_strided_slice %112 {offsets = [224, 0], sizes = [32, 32], strides = [1, 1]} : vector<384x32xf32> to vector<32x32xf32>
    %121 = vector.extract_strided_slice %112 {offsets = [256, 0], sizes = [32, 32], strides = [1, 1]} : vector<384x32xf32> to vector<32x32xf32>
    %122 = vector.extract_strided_slice %112 {offsets = [288, 0], sizes = [32, 32], strides = [1, 1]} : vector<384x32xf32> to vector<32x32xf32>
    %123 = vector.extract_strided_slice %112 {offsets = [320, 0], sizes = [32, 32], strides = [1, 1]} : vector<384x32xf32> to vector<32x32xf32>
    %124 = vector.extract_strided_slice %112 {offsets = [352, 0], sizes = [32, 32], strides = [1, 1]} : vector<384x32xf32> to vector<32x32xf32>
    %125 = tpu.concatenate %113, %114, %115, %116, %117, %118, %119, %120, %121, %122, %123, %124 in 1 : vector<32x32xf32>, vector<32x32xf32>, vector<32x32xf32>, vector<32x32xf32>, vector<32x32xf32>, vector<32x32xf32>, vector<32x32xf32>, vector<32x32xf32>, vector<32x32xf32>, vector<32x32xf32>, vector<32x32xf32>, vector<32x32xf32> -> vector<32x384xf32>
    %126 = tpu.iota {dimensions = array<i32: 1>} : vector<1x288xi32>
    %c0_i32 = arith.constant 0 : i32
    %127 = vector.broadcast %c0_i32 : i32 to vector<1x288xi32>
    %128 = arith.cmpi sge, %126, %127 : vector<1x288xi32>
    %c24_i32 = arith.constant 24 : i32
    %129 = vector.broadcast %c24_i32 : i32 to vector<1x288xi32>
    %130 = arith.cmpi slt, %126, %129 : vector<1x288xi32>
    %131 = arith.andi %128, %130 : vector<1x288xi1>
    %cst_41 = arith.constant 0.000000e+00 : f32
    %132 = vector.shape_cast %131 : vector<1x288xi1> to vector<1x288xi1>
    %133 = vector.broadcast %132 : vector<1x288xi1> to vector<32x288xi1>
    %134 = vector.broadcast %cst_41 : f32 to vector<32x288xf32>
    %135 = arith.select %133, %30, %134 : vector<32x288xi1>, vector<32x288xf32>
    %c24_i32_42 = arith.constant 24 : i32
    %136 = vector.broadcast %c24_i32_42 : i32 to vector<1x288xi32>
    %137 = arith.cmpi sge, %126, %136 : vector<1x288xi32>
    %c48_i32 = arith.constant 48 : i32
    %138 = vector.broadcast %c48_i32 : i32 to vector<1x288xi32>
    %139 = arith.cmpi slt, %126, %138 : vector<1x288xi32>
    %140 = arith.andi %137, %139 : vector<1x288xi1>
    %cst_43 = arith.constant 0.000000e+00 : f32
    %141 = vector.shape_cast %140 : vector<1x288xi1> to vector<1x288xi1>
    %142 = vector.broadcast %141 : vector<1x288xi1> to vector<32x288xi1>
    %143 = vector.broadcast %cst_43 : f32 to vector<32x288xf32>
    %144 = arith.select %142, %30, %143 : vector<32x288xi1>, vector<32x288xf32>
    %c48_i32_44 = arith.constant 48 : i32
    %145 = vector.broadcast %c48_i32_44 : i32 to vector<1x288xi32>
    %146 = arith.cmpi sge, %126, %145 : vector<1x288xi32>
    %c72_i32 = arith.constant 72 : i32
    %147 = vector.broadcast %c72_i32 : i32 to vector<1x288xi32>
    %148 = arith.cmpi slt, %126, %147 : vector<1x288xi32>
    %149 = arith.andi %146, %148 : vector<1x288xi1>
    %cst_45 = arith.constant 0.000000e+00 : f32
    %150 = vector.shape_cast %149 : vector<1x288xi1> to vector<1x288xi1>
    %151 = vector.broadcast %150 : vector<1x288xi1> to vector<32x288xi1>
    %152 = vector.broadcast %cst_45 : f32 to vector<32x288xf32>
    %153 = arith.select %151, %30, %152 : vector<32x288xi1>, vector<32x288xf32>
    %c72_i32_46 = arith.constant 72 : i32
    %154 = vector.broadcast %c72_i32_46 : i32 to vector<1x288xi32>
    %155 = arith.cmpi sge, %126, %154 : vector<1x288xi32>
    %c96_i32 = arith.constant 96 : i32
    %156 = vector.broadcast %c96_i32 : i32 to vector<1x288xi32>
    %157 = arith.cmpi slt, %126, %156 : vector<1x288xi32>
    %158 = arith.andi %155, %157 : vector<1x288xi1>
    %cst_47 = arith.constant 0.000000e+00 : f32
    %159 = vector.shape_cast %158 : vector<1x288xi1> to vector<1x288xi1>
    %160 = vector.broadcast %159 : vector<1x288xi1> to vector<32x288xi1>
    %161 = vector.broadcast %cst_47 : f32 to vector<32x288xf32>
    %162 = arith.select %160, %30, %161 : vector<32x288xi1>, vector<32x288xf32>
    %c96_i32_48 = arith.constant 96 : i32
    %163 = vector.broadcast %c96_i32_48 : i32 to vector<1x288xi32>
    %164 = arith.cmpi sge, %126, %163 : vector<1x288xi32>
    %c120_i32 = arith.constant 120 : i32
    %165 = vector.broadcast %c120_i32 : i32 to vector<1x288xi32>
    %166 = arith.cmpi slt, %126, %165 : vector<1x288xi32>
    %167 = arith.andi %164, %166 : vector<1x288xi1>
    %cst_49 = arith.constant 0.000000e+00 : f32
    %168 = vector.shape_cast %167 : vector<1x288xi1> to vector<1x288xi1>
    %169 = vector.broadcast %168 : vector<1x288xi1> to vector<32x288xi1>
    %170 = vector.broadcast %cst_49 : f32 to vector<32x288xf32>
    %171 = arith.select %169, %30, %170 : vector<32x288xi1>, vector<32x288xf32>
    %c120_i32_50 = arith.constant 120 : i32
    %172 = vector.broadcast %c120_i32_50 : i32 to vector<1x288xi32>
    %173 = arith.cmpi sge, %126, %172 : vector<1x288xi32>
    %c144_i32 = arith.constant 144 : i32
    %174 = vector.broadcast %c144_i32 : i32 to vector<1x288xi32>
    %175 = arith.cmpi slt, %126, %174 : vector<1x288xi32>
    %176 = arith.andi %173, %175 : vector<1x288xi1>
    %cst_51 = arith.constant 0.000000e+00 : f32
    %177 = vector.shape_cast %176 : vector<1x288xi1> to vector<1x288xi1>
    %178 = vector.broadcast %177 : vector<1x288xi1> to vector<32x288xi1>
    %179 = vector.broadcast %cst_51 : f32 to vector<32x288xf32>
    %180 = arith.select %178, %30, %179 : vector<32x288xi1>, vector<32x288xf32>
    %c144_i32_52 = arith.constant 144 : i32
    %181 = vector.broadcast %c144_i32_52 : i32 to vector<1x288xi32>
    %182 = arith.cmpi sge, %126, %181 : vector<1x288xi32>
    %c168_i32 = arith.constant 168 : i32
    %183 = vector.broadcast %c168_i32 : i32 to vector<1x288xi32>
    %184 = arith.cmpi slt, %126, %183 : vector<1x288xi32>
    %185 = arith.andi %182, %184 : vector<1x288xi1>
    %cst_53 = arith.constant 0.000000e+00 : f32
    %186 = vector.shape_cast %185 : vector<1x288xi1> to vector<1x288xi1>
    %187 = vector.broadcast %186 : vector<1x288xi1> to vector<32x288xi1>
    %188 = vector.broadcast %cst_53 : f32 to vector<32x288xf32>
    %189 = arith.select %187, %30, %188 : vector<32x288xi1>, vector<32x288xf32>
    %c168_i32_54 = arith.constant 168 : i32
    %190 = vector.broadcast %c168_i32_54 : i32 to vector<1x288xi32>
    %191 = arith.cmpi sge, %126, %190 : vector<1x288xi32>
    %c192_i32 = arith.constant 192 : i32
    %192 = vector.broadcast %c192_i32 : i32 to vector<1x288xi32>
    %193 = arith.cmpi slt, %126, %192 : vector<1x288xi32>
    %194 = arith.andi %191, %193 : vector<1x288xi1>
    %cst_55 = arith.constant 0.000000e+00 : f32
    %195 = vector.shape_cast %194 : vector<1x288xi1> to vector<1x288xi1>
    %196 = vector.broadcast %195 : vector<1x288xi1> to vector<32x288xi1>
    %197 = vector.broadcast %cst_55 : f32 to vector<32x288xf32>
    %198 = arith.select %196, %30, %197 : vector<32x288xi1>, vector<32x288xf32>
    %c192_i32_56 = arith.constant 192 : i32
    %199 = vector.broadcast %c192_i32_56 : i32 to vector<1x288xi32>
    %200 = arith.cmpi sge, %126, %199 : vector<1x288xi32>
    %c216_i32 = arith.constant 216 : i32
    %201 = vector.broadcast %c216_i32 : i32 to vector<1x288xi32>
    %202 = arith.cmpi slt, %126, %201 : vector<1x288xi32>
    %203 = arith.andi %200, %202 : vector<1x288xi1>
    %cst_57 = arith.constant 0.000000e+00 : f32
    %204 = vector.shape_cast %203 : vector<1x288xi1> to vector<1x288xi1>
    %205 = vector.broadcast %204 : vector<1x288xi1> to vector<32x288xi1>
    %206 = vector.broadcast %cst_57 : f32 to vector<32x288xf32>
    %207 = arith.select %205, %30, %206 : vector<32x288xi1>, vector<32x288xf32>
    %c216_i32_58 = arith.constant 216 : i32
    %208 = vector.broadcast %c216_i32_58 : i32 to vector<1x288xi32>
    %209 = arith.cmpi sge, %126, %208 : vector<1x288xi32>
    %c240_i32 = arith.constant 240 : i32
    %210 = vector.broadcast %c240_i32 : i32 to vector<1x288xi32>
    %211 = arith.cmpi slt, %126, %210 : vector<1x288xi32>
    %212 = arith.andi %209, %211 : vector<1x288xi1>
    %cst_59 = arith.constant 0.000000e+00 : f32
    %213 = vector.shape_cast %212 : vector<1x288xi1> to vector<1x288xi1>
    %214 = vector.broadcast %213 : vector<1x288xi1> to vector<32x288xi1>
    %215 = vector.broadcast %cst_59 : f32 to vector<32x288xf32>
    %216 = arith.select %214, %30, %215 : vector<32x288xi1>, vector<32x288xf32>
    %c240_i32_60 = arith.constant 240 : i32
    %217 = vector.broadcast %c240_i32_60 : i32 to vector<1x288xi32>
    %218 = arith.cmpi sge, %126, %217 : vector<1x288xi32>
    %c264_i32 = arith.constant 264 : i32
    %219 = vector.broadcast %c264_i32 : i32 to vector<1x288xi32>
    %220 = arith.cmpi slt, %126, %219 : vector<1x288xi32>
    %221 = arith.andi %218, %220 : vector<1x288xi1>
    %cst_61 = arith.constant 0.000000e+00 : f32
    %222 = vector.shape_cast %221 : vector<1x288xi1> to vector<1x288xi1>
    %223 = vector.broadcast %222 : vector<1x288xi1> to vector<32x288xi1>
    %224 = vector.broadcast %cst_61 : f32 to vector<32x288xf32>
    %225 = arith.select %223, %30, %224 : vector<32x288xi1>, vector<32x288xf32>
    %c264_i32_62 = arith.constant 264 : i32
    %226 = vector.broadcast %c264_i32_62 : i32 to vector<1x288xi32>
    %227 = arith.cmpi sge, %126, %226 : vector<1x288xi32>
    %c288_i32 = arith.constant 288 : i32
    %228 = vector.broadcast %c288_i32 : i32 to vector<1x288xi32>
    %229 = arith.cmpi slt, %126, %228 : vector<1x288xi32>
    %230 = arith.andi %227, %229 : vector<1x288xi1>
    %cst_63 = arith.constant 0.000000e+00 : f32
    %231 = vector.shape_cast %230 : vector<1x288xi1> to vector<1x288xi1>
    %232 = vector.broadcast %231 : vector<1x288xi1> to vector<32x288xi1>
    %233 = vector.broadcast %cst_63 : f32 to vector<32x288xf32>
    %234 = arith.select %232, %30, %233 : vector<32x288xi1>, vector<32x288xf32>
    %235 = tpu.concatenate %135, %144, %153, %162, %171, %180, %189, %198, %207, %216, %225, %234 in 0 : vector<32x288xf32>, vector<32x288xf32>, vector<32x288xf32>, vector<32x288xf32>, vector<32x288xf32>, vector<32x288xf32>, vector<32x288xf32>, vector<32x288xf32>, vector<32x288xf32>, vector<32x288xf32>, vector<32x288xf32>, vector<32x288xf32> -> vector<384x288xf32>
    %cst_64 = arith.constant dense<0.000000e+00> : vector<32x288xf32>
    %236 = tpu.matmul %125, %235, %cst_64 {dimension_numbers = #tpu.dot_dimension_numbers<[1], [0], [0], [1], [0, 0, 1, 1], [], []>} : vector<32x384xf32>, vector<384x288xf32>, vector<32x288xf32> -> vector<32x288xf32>
    %237 = vector.broadcast %8 : vector<1x288xf32> to vector<32x288xf32>
    %238 = arith.addf %236, %237 : vector<32x288xf32>
    %cst_65 = arith.constant dense<0.000000e+00> : vector<288xf32>
    %239 = vector.multi_reduction <add>, %238, %cst_65 [0] : vector<32x288xf32> to vector<288xf32>
    %240 = vector.shape_cast %239 : vector<288xf32> to vector<1x288xf32>
    %cst_66 = arith.constant 3.200000e+01 : f32
    %241 = vector.broadcast %cst_66 : f32 to vector<1x288xf32>
    %242 = arith.divf %240, %241 : vector<1x288xf32>
    %243 = arith.mulf %238, %238 : vector<32x288xf32>
    %cst_67 = arith.constant dense<0.000000e+00> : vector<288xf32>
    %244 = vector.multi_reduction <add>, %243, %cst_67 [0] : vector<32x288xf32> to vector<288xf32>
    %245 = vector.shape_cast %244 : vector<288xf32> to vector<1x288xf32>
    %cst_68 = arith.constant 3.200000e+01 : f32
    %246 = vector.broadcast %cst_68 : f32 to vector<1x288xf32>
    %247 = arith.divf %245, %246 : vector<1x288xf32>
    %248 = arith.mulf %242, %242 : vector<1x288xf32>
    %249 = arith.subf %247, %248 : vector<1x288xf32>
    %cst_69 = arith.constant 0.000000e+00 : f32
    %250 = vector.broadcast %cst_69 : f32 to vector<1x288xf32>
    %251 = arith.maximumf %249, %250 : vector<1x288xf32>
    %252 = vector.broadcast %242 : vector<1x288xf32> to vector<32x288xf32>
    %253 = arith.subf %238, %252 : vector<32x288xf32>
    %cst_70 = arith.constant 9.99999974E-6 : f32
    %254 = vector.broadcast %cst_70 : f32 to vector<1x288xf32>
    %255 = arith.addf %251, %254 : vector<1x288xf32>
    %256 = math.rsqrt %255 : vector<1x288xf32>
    %257 = vector.broadcast %256 : vector<1x288xf32> to vector<32x288xf32>
    %258 = arith.mulf %253, %257 : vector<32x288xf32>
    %259 = vector.broadcast %9 : vector<1x288xf32> to vector<32x288xf32>
    %260 = arith.mulf %258, %259 : vector<32x288xf32>
    %261 = vector.broadcast %10 : vector<1x288xf32> to vector<32x288xf32>
    %262 = arith.addf %260, %261 : vector<32x288xf32>
    %cst_71 = arith.constant 0.000000e+00 : f32
    %263 = vector.broadcast %cst_71 : f32 to vector<32x288xf32>
    %264 = arith.maximumf %262, %263 : vector<32x288xf32>
    %cst_72 = arith.constant dense<0.000000e+00> : vector<32x24xf32>
    %265 = tpu.matmul %264, %27, %cst_72 {dimension_numbers = #tpu.dot_dimension_numbers<[1], [0], [0], [1], [0, 0, 1, 1], [], []>} : vector<32x288xf32>, vector<288x24xf32>, vector<32x24xf32> -> vector<32x24xf32>
    %266 = vector.broadcast %11 : vector<1x24xf32> to vector<32x24xf32>
    %267 = arith.addf %265, %266 : vector<32x24xf32>
    %cst_73 = arith.constant dense<0.000000e+00> : vector<24xf32>
    %268 = vector.multi_reduction <add>, %267, %cst_73 [0] : vector<32x24xf32> to vector<24xf32>
    %269 = vector.shape_cast %268 : vector<24xf32> to vector<1x24xf32>
    %cst_74 = arith.constant 3.200000e+01 : f32
    %270 = vector.broadcast %cst_74 : f32 to vector<1x24xf32>
    %271 = arith.divf %269, %270 : vector<1x24xf32>
    %272 = arith.mulf %267, %267 : vector<32x24xf32>
    %cst_75 = arith.constant dense<0.000000e+00> : vector<24xf32>
    %273 = vector.multi_reduction <add>, %272, %cst_75 [0] : vector<32x24xf32> to vector<24xf32>
    %274 = vector.shape_cast %273 : vector<24xf32> to vector<1x24xf32>
    %cst_76 = arith.constant 3.200000e+01 : f32
    %275 = vector.broadcast %cst_76 : f32 to vector<1x24xf32>
    %276 = arith.divf %274, %275 : vector<1x24xf32>
    %277 = arith.mulf %271, %271 : vector<1x24xf32>
    %278 = arith.subf %276, %277 : vector<1x24xf32>
    %cst_77 = arith.constant 0.000000e+00 : f32
    %279 = vector.broadcast %cst_77 : f32 to vector<1x24xf32>
    %280 = arith.maximumf %278, %279 : vector<1x24xf32>
    %281 = vector.broadcast %271 : vector<1x24xf32> to vector<32x24xf32>
    %282 = arith.subf %267, %281 : vector<32x24xf32>
    %cst_78 = arith.constant 9.99999974E-6 : f32
    %283 = vector.broadcast %cst_78 : f32 to vector<1x24xf32>
    %284 = arith.addf %280, %283 : vector<1x24xf32>
    %285 = math.rsqrt %284 : vector<1x24xf32>
    %286 = vector.broadcast %285 : vector<1x24xf32> to vector<32x24xf32>
    %287 = arith.mulf %282, %286 : vector<32x24xf32>
    %288 = vector.broadcast %12 : vector<1x24xf32> to vector<32x24xf32>
    %289 = arith.mulf %287, %288 : vector<32x24xf32>
    %290 = vector.broadcast %13 : vector<1x24xf32> to vector<32x24xf32>
    %291 = arith.addf %289, %290 : vector<32x24xf32>
    %cst_79 = arith.constant 0.000000e+00 : f32
    %292 = vector.broadcast %cst_79 : f32 to vector<32x24xf32>
    %293 = arith.maximumf %291, %292 : vector<32x24xf32>
    %c0_80 = arith.constant 0 : index
    %c0_81 = arith.constant 0 : index
    %294 = vector.load %arg6[%c0_80, %c0_81] : memref<24x96xf32, #tpu.memory_space<vmem>>, vector<24x96xf32>
    %cst_82 = arith.constant dense<0.000000e+00> : vector<32x96xf32>
    %295 = tpu.matmul %293, %294, %cst_82 {dimension_numbers = #tpu.dot_dimension_numbers<[1], [0], [0], [1], [0, 0, 1, 1], [], []>} : vector<32x24xf32>, vector<24x96xf32>, vector<32x96xf32> -> vector<32x96xf32>
    %296 = vector.extract_strided_slice %295 {offsets = [0, 0], sizes = [32, 48], strides = [1, 1]} : vector<32x96xf32> to vector<32x48xf32>
    %297 = vector.extract_strided_slice %295 {offsets = [0, 48], sizes = [32, 48], strides = [1, 1]} : vector<32x96xf32> to vector<32x48xf32>
    %cst_83 = arith.constant dense<0.000000e+00> : vector<32x48xf32>
    %298 = tpu.matmul %1, %296, %cst_83 {dimension_numbers = #tpu.dot_dimension_numbers<[1], [0], [0], [1], [0, 0, 1, 1], [], []>} : vector<32x32xf32>, vector<32x48xf32>, vector<32x48xf32> -> vector<32x48xf32>
    %299 = vector.broadcast %14 : vector<1x48xf32> to vector<32x48xf32>
    %300 = arith.addf %298, %299 : vector<32x48xf32>
    %cst_84 = arith.constant 0.000000e+00 : f32
    %301 = vector.broadcast %cst_84 : f32 to vector<32x48xf32>
    %302 = arith.maximumf %300, %301 : vector<32x48xf32>
    %cst_85 = arith.constant dense<0.000000e+00> : vector<48xf32>
    %303 = vector.multi_reduction <add>, %302, %cst_85 [0] : vector<32x48xf32> to vector<48xf32>
    %304 = vector.shape_cast %303 : vector<48xf32> to vector<1x48xf32>
    %cst_86 = arith.constant 3.200000e+01 : f32
    %305 = vector.broadcast %cst_86 : f32 to vector<1x48xf32>
    %306 = arith.divf %304, %305 : vector<1x48xf32>
    %307 = arith.mulf %302, %302 : vector<32x48xf32>
    %cst_87 = arith.constant dense<0.000000e+00> : vector<48xf32>
    %308 = vector.multi_reduction <add>, %307, %cst_87 [0] : vector<32x48xf32> to vector<48xf32>
    %309 = vector.shape_cast %308 : vector<48xf32> to vector<1x48xf32>
    %cst_88 = arith.constant 3.200000e+01 : f32
    %310 = vector.broadcast %cst_88 : f32 to vector<1x48xf32>
    %311 = arith.divf %309, %310 : vector<1x48xf32>
    %312 = arith.mulf %306, %306 : vector<1x48xf32>
    %313 = arith.subf %311, %312 : vector<1x48xf32>
    %cst_89 = arith.constant 0.000000e+00 : f32
    %314 = vector.broadcast %cst_89 : f32 to vector<1x48xf32>
    %315 = arith.maximumf %313, %314 : vector<1x48xf32>
    %316 = vector.broadcast %306 : vector<1x48xf32> to vector<32x48xf32>
    %317 = arith.subf %302, %316 : vector<32x48xf32>
    %cst_90 = arith.constant 9.99999974E-6 : f32
    %318 = vector.broadcast %cst_90 : f32 to vector<1x48xf32>
    %319 = arith.addf %315, %318 : vector<1x48xf32>
    %320 = math.rsqrt %319 : vector<1x48xf32>
    %321 = vector.broadcast %320 : vector<1x48xf32> to vector<32x48xf32>
    %322 = arith.mulf %317, %321 : vector<32x48xf32>
    %323 = vector.broadcast %15 : vector<1x48xf32> to vector<32x48xf32>
    %324 = arith.mulf %322, %323 : vector<32x48xf32>
    %325 = vector.broadcast %16 : vector<1x48xf32> to vector<32x48xf32>
    %326 = arith.addf %324, %325 : vector<32x48xf32>
    %327 = arith.addf %326, %297 : vector<32x48xf32>
    %328 = vector.broadcast %17 : vector<1x48xf32> to vector<32x48xf32>
    %329 = arith.addf %327, %328 : vector<32x48xf32>
    %cst_91 = arith.constant dense<0.000000e+00> : vector<32x288xf32>
    %330 = tpu.matmul %329, %26, %cst_91 {dimension_numbers = #tpu.dot_dimension_numbers<[1], [0], [0], [1], [0, 0, 1, 1], [], []>} : vector<32x48xf32>, vector<48x288xf32>, vector<32x288xf32> -> vector<32x288xf32>
    %cst_92 = arith.constant dense<0.000000e+00> : vector<32x3xf32>
    %331 = tpu.matmul %330, %6, %cst_92 {dimension_numbers = #tpu.dot_dimension_numbers<[1], [1], [0], [0], [0, 0, 1, 0], [], []>} : vector<32x288xf32>, vector<3x288xf32>, vector<32x3xf32> -> vector<32x3xf32>
    %cst_93 = arith.constant dense<0.000000e+00> : vector<3x32xf32>
    %332 = tpu.matmul %7, %330, %cst_93 {dimension_numbers = #tpu.dot_dimension_numbers<[1], [1], [0], [0], [0, 0, 1, 0], [], []>} : vector<3x288xf32>, vector<32x288xf32>, vector<3x32xf32> -> vector<3x32xf32>
    %333 = vector.extract_strided_slice %331 {offsets = [0, 0], sizes = [32, 1], strides = [1, 1]} : vector<32x3xf32> to vector<32x1xf32>
    %334 = vector.extract_strided_slice %332 {offsets = [0, 0], sizes = [1, 32], strides = [1, 1]} : vector<3x32xf32> to vector<1x32xf32>
    %335 = vector.broadcast %333 : vector<32x1xf32> to vector<32x32xf32>
    %336 = vector.broadcast %334 : vector<1x32xf32> to vector<32x32xf32>
    %337 = arith.addf %335, %336 : vector<32x32xf32>
    %338 = vector.extract_strided_slice %331 {offsets = [0, 1], sizes = [32, 1], strides = [1, 1]} : vector<32x3xf32> to vector<32x1xf32>
    %339 = vector.extract_strided_slice %332 {offsets = [1, 0], sizes = [1, 32], strides = [1, 1]} : vector<3x32xf32> to vector<1x32xf32>
    %340 = vector.broadcast %338 : vector<32x1xf32> to vector<32x32xf32>
    %341 = vector.broadcast %339 : vector<1x32xf32> to vector<32x32xf32>
    %342 = arith.addf %340, %341 : vector<32x32xf32>
    %343 = vector.extract_strided_slice %331 {offsets = [0, 2], sizes = [32, 1], strides = [1, 1]} : vector<32x3xf32> to vector<32x1xf32>
    %344 = vector.extract_strided_slice %332 {offsets = [2, 0], sizes = [1, 32], strides = [1, 1]} : vector<3x32xf32> to vector<1x32xf32>
    %345 = vector.broadcast %343 : vector<32x1xf32> to vector<32x32xf32>
    %346 = vector.broadcast %344 : vector<1x32xf32> to vector<32x32xf32>
    %347 = arith.addf %345, %346 : vector<32x32xf32>
    %348 = tpu.concatenate %337, %342, %347 in 0 : vector<32x32xf32>, vector<32x32xf32>, vector<32x32xf32> -> vector<96x32xf32>
    %cst_94 = arith.constant 0.000000e+00 : f32
    %349 = vector.broadcast %cst_94 : f32 to vector<96x32xf32>
    %350 = arith.cmpf ogt, %348, %349 : vector<96x32xf32>
    %cst_95 = arith.constant 2.000000e-01 : f32
    %351 = vector.broadcast %cst_95 : f32 to vector<96x32xf32>
    %352 = arith.mulf %351, %348 : vector<96x32xf32>
    %353 = arith.select %350, %348, %352 : vector<96x32xi1>, vector<96x32xf32>
    %cst_96 = arith.constant 0.000000e+00 : f32
    %354 = vector.broadcast %cst_96 : f32 to vector<96x32xf32>
    %355 = arith.cmpf ogt, %3, %354 : vector<96x32xf32>
    %cst_97 = arith.constant -1.000000e+30 : f32
    %356 = vector.broadcast %cst_97 : f32 to vector<96x32xf32>
    %357 = arith.select %355, %353, %356 : vector<96x32xi1>, vector<96x32xf32>
    %cst_98 = arith.constant dense<0xFF800000> : vector<96xf32>
    %358 = vector.multi_reduction <maximumf>, %357, %cst_98 [1] : vector<96x32xf32> to vector<96xf32>
    %359 = vector.shape_cast %358 : vector<96xf32> to vector<96x1xf32>
    %360 = vector.broadcast %359 : vector<96x1xf32> to vector<96x32xf32>
    %361 = arith.subf %357, %360 : vector<96x32xf32>
    %362 = math.exp %361 : vector<96x32xf32>
    %cst_99 = arith.constant dense<0.000000e+00> : vector<96xf32>
    %363 = vector.multi_reduction <add>, %362, %cst_99 [1] : vector<96x32xf32> to vector<96xf32>
    %364 = vector.shape_cast %363 : vector<96xf32> to vector<96x1xf32>
    %365 = tpu.reciprocal %364 {approx = true} : vector<96x1xf32> -> vector<96x1xf32>
    %366 = vector.broadcast %365 : vector<96x1xf32> to vector<96x32xf32>
    %367 = arith.mulf %362, %366 : vector<96x32xf32>
    %368 = vector.extract_strided_slice %367 {offsets = [0, 0], sizes = [32, 32], strides = [1, 1]} : vector<96x32xf32> to vector<32x32xf32>
    %369 = vector.extract_strided_slice %367 {offsets = [32, 0], sizes = [32, 32], strides = [1, 1]} : vector<96x32xf32> to vector<32x32xf32>
    %370 = vector.extract_strided_slice %367 {offsets = [64, 0], sizes = [32, 32], strides = [1, 1]} : vector<96x32xf32> to vector<32x32xf32>
    %371 = tpu.concatenate %368, %369, %370 in 1 : vector<32x32xf32>, vector<32x32xf32>, vector<32x32xf32> -> vector<32x96xf32>
    %372 = tpu.iota {dimensions = array<i32: 1>} : vector<1x288xi32>
    %c0_i32_100 = arith.constant 0 : i32
    %373 = vector.broadcast %c0_i32_100 : i32 to vector<1x288xi32>
    %374 = arith.cmpi sge, %372, %373 : vector<1x288xi32>
    %c96_i32_101 = arith.constant 96 : i32
    %375 = vector.broadcast %c96_i32_101 : i32 to vector<1x288xi32>
    %376 = arith.cmpi slt, %372, %375 : vector<1x288xi32>
    %377 = arith.andi %374, %376 : vector<1x288xi1>
    %cst_102 = arith.constant 0.000000e+00 : f32
    %378 = vector.shape_cast %377 : vector<1x288xi1> to vector<1x288xi1>
    %379 = vector.broadcast %378 : vector<1x288xi1> to vector<32x288xi1>
    %380 = vector.broadcast %cst_102 : f32 to vector<32x288xf32>
    %381 = arith.select %379, %330, %380 : vector<32x288xi1>, vector<32x288xf32>
    %c96_i32_103 = arith.constant 96 : i32
    %382 = vector.broadcast %c96_i32_103 : i32 to vector<1x288xi32>
    %383 = arith.cmpi sge, %372, %382 : vector<1x288xi32>
    %c192_i32_104 = arith.constant 192 : i32
    %384 = vector.broadcast %c192_i32_104 : i32 to vector<1x288xi32>
    %385 = arith.cmpi slt, %372, %384 : vector<1x288xi32>
    %386 = arith.andi %383, %385 : vector<1x288xi1>
    %cst_105 = arith.constant 0.000000e+00 : f32
    %387 = vector.shape_cast %386 : vector<1x288xi1> to vector<1x288xi1>
    %388 = vector.broadcast %387 : vector<1x288xi1> to vector<32x288xi1>
    %389 = vector.broadcast %cst_105 : f32 to vector<32x288xf32>
    %390 = arith.select %388, %330, %389 : vector<32x288xi1>, vector<32x288xf32>
    %c192_i32_106 = arith.constant 192 : i32
    %391 = vector.broadcast %c192_i32_106 : i32 to vector<1x288xi32>
    %392 = arith.cmpi sge, %372, %391 : vector<1x288xi32>
    %c288_i32_107 = arith.constant 288 : i32
    %393 = vector.broadcast %c288_i32_107 : i32 to vector<1x288xi32>
    %394 = arith.cmpi slt, %372, %393 : vector<1x288xi32>
    %395 = arith.andi %392, %394 : vector<1x288xi1>
    %cst_108 = arith.constant 0.000000e+00 : f32
    %396 = vector.shape_cast %395 : vector<1x288xi1> to vector<1x288xi1>
    %397 = vector.broadcast %396 : vector<1x288xi1> to vector<32x288xi1>
    %398 = vector.broadcast %cst_108 : f32 to vector<32x288xf32>
    %399 = arith.select %397, %330, %398 : vector<32x288xi1>, vector<32x288xf32>
    %400 = tpu.concatenate %381, %390, %399 in 0 : vector<32x288xf32>, vector<32x288xf32>, vector<32x288xf32> -> vector<96x288xf32>
    %cst_109 = arith.constant dense<0.000000e+00> : vector<32x288xf32>
    %401 = tpu.matmul %371, %400, %cst_109 {dimension_numbers = #tpu.dot_dimension_numbers<[1], [0], [0], [1], [0, 0, 1, 1], [], []>} : vector<32x96xf32>, vector<96x288xf32>, vector<32x288xf32> -> vector<32x288xf32>
    %402 = vector.broadcast %18 : vector<1x288xf32> to vector<32x288xf32>
    %403 = arith.addf %401, %402 : vector<32x288xf32>
    %cst_110 = arith.constant dense<0.000000e+00> : vector<288xf32>
    %404 = vector.multi_reduction <add>, %403, %cst_110 [0] : vector<32x288xf32> to vector<288xf32>
    %405 = vector.shape_cast %404 : vector<288xf32> to vector<1x288xf32>
    %cst_111 = arith.constant 3.200000e+01 : f32
    %406 = vector.broadcast %cst_111 : f32 to vector<1x288xf32>
    %407 = arith.divf %405, %406 : vector<1x288xf32>
    %408 = arith.mulf %403, %403 : vector<32x288xf32>
    %cst_112 = arith.constant dense<0.000000e+00> : vector<288xf32>
    %409 = vector.multi_reduction <add>, %408, %cst_112 [0] : vector<32x288xf32> to vector<288xf32>
    %410 = vector.shape_cast %409 : vector<288xf32> to vector<1x288xf32>
    %cst_113 = arith.constant 3.200000e+01 : f32
    %411 = vector.broadcast %cst_113 : f32 to vector<1x288xf32>
    %412 = arith.divf %410, %411 : vector<1x288xf32>
    %413 = arith.mulf %407, %407 : vector<1x288xf32>
    %414 = arith.subf %412, %413 : vector<1x288xf32>
    %cst_114 = arith.constant 0.000000e+00 : f32
    %415 = vector.broadcast %cst_114 : f32 to vector<1x288xf32>
    %416 = arith.maximumf %414, %415 : vector<1x288xf32>
    %417 = vector.broadcast %407 : vector<1x288xf32> to vector<32x288xf32>
    %418 = arith.subf %403, %417 : vector<32x288xf32>
    %cst_115 = arith.constant 9.99999974E-6 : f32
    %419 = vector.broadcast %cst_115 : f32 to vector<1x288xf32>
    %420 = arith.addf %416, %419 : vector<1x288xf32>
    %421 = math.rsqrt %420 : vector<1x288xf32>
    %422 = vector.broadcast %421 : vector<1x288xf32> to vector<32x288xf32>
    %423 = arith.mulf %418, %422 : vector<32x288xf32>
    %424 = vector.broadcast %19 : vector<1x288xf32> to vector<32x288xf32>
    %425 = arith.mulf %423, %424 : vector<32x288xf32>
    %426 = vector.broadcast %20 : vector<1x288xf32> to vector<32x288xf32>
    %427 = arith.addf %425, %426 : vector<32x288xf32>
    %cst_116 = arith.constant 0.000000e+00 : f32
    %428 = vector.broadcast %cst_116 : f32 to vector<32x288xf32>
    %429 = arith.maximumf %427, %428 : vector<32x288xf32>
    %cst_117 = arith.constant dense<0.000000e+00> : vector<32x96xf32>
    %430 = tpu.matmul %429, %28, %cst_117 {dimension_numbers = #tpu.dot_dimension_numbers<[1], [0], [0], [1], [0, 0, 1, 1], [], []>} : vector<32x288xf32>, vector<288x96xf32>, vector<32x96xf32> -> vector<32x96xf32>
    %431 = vector.broadcast %21 : vector<1x96xf32> to vector<32x96xf32>
    %432 = arith.addf %430, %431 : vector<32x96xf32>
    %cst_118 = arith.constant dense<0.000000e+00> : vector<96xf32>
    %433 = vector.multi_reduction <add>, %432, %cst_118 [0] : vector<32x96xf32> to vector<96xf32>
    %434 = vector.shape_cast %433 : vector<96xf32> to vector<1x96xf32>
    %cst_119 = arith.constant 3.200000e+01 : f32
    %435 = vector.broadcast %cst_119 : f32 to vector<1x96xf32>
    %436 = arith.divf %434, %435 : vector<1x96xf32>
    %437 = arith.mulf %432, %432 : vector<32x96xf32>
    %cst_120 = arith.constant dense<0.000000e+00> : vector<96xf32>
    %438 = vector.multi_reduction <add>, %437, %cst_120 [0] : vector<32x96xf32> to vector<96xf32>
    %439 = vector.shape_cast %438 : vector<96xf32> to vector<1x96xf32>
    %cst_121 = arith.constant 3.200000e+01 : f32
    %440 = vector.broadcast %cst_121 : f32 to vector<1x96xf32>
    %441 = arith.divf %439, %440 : vector<1x96xf32>
    %442 = arith.mulf %436, %436 : vector<1x96xf32>
    %443 = arith.subf %441, %442 : vector<1x96xf32>
    %cst_122 = arith.constant 0.000000e+00 : f32
    %444 = vector.broadcast %cst_122 : f32 to vector<1x96xf32>
    %445 = arith.maximumf %443, %444 : vector<1x96xf32>
    %446 = vector.broadcast %436 : vector<1x96xf32> to vector<32x96xf32>
    %447 = arith.subf %432, %446 : vector<32x96xf32>
    %cst_123 = arith.constant 9.99999974E-6 : f32
    %448 = vector.broadcast %cst_123 : f32 to vector<1x96xf32>
    %449 = arith.addf %445, %448 : vector<1x96xf32>
    %450 = math.rsqrt %449 : vector<1x96xf32>
    %451 = vector.broadcast %450 : vector<1x96xf32> to vector<32x96xf32>
    %452 = arith.mulf %447, %451 : vector<32x96xf32>
    %453 = vector.broadcast %22 : vector<1x96xf32> to vector<32x96xf32>
    %454 = arith.mulf %452, %453 : vector<32x96xf32>
    %455 = vector.broadcast %23 : vector<1x96xf32> to vector<32x96xf32>
    %456 = arith.addf %454, %455 : vector<32x96xf32>
    %cst_124 = arith.constant 0.000000e+00 : f32
    %457 = vector.broadcast %cst_124 : f32 to vector<32x96xf32>
    %458 = arith.maximumf %456, %457 : vector<32x96xf32>
    %cst_125 = arith.constant dense<0.000000e+00> : vector<2x96xf32>
    %459 = tpu.matmul %2, %458, %cst_125 {dimension_numbers = #tpu.dot_dimension_numbers<[1], [0], [0], [1], [0, 0, 1, 1], [], []>} : vector<2x32xf32>, vector<32x96xf32>, vector<2x96xf32> -> vector<2x96xf32>
    %c0_126 = arith.constant 0 : index
    %c0_127 = arith.constant 0 : index
    %460 = vector.load %arg7[%c0_126, %c0_127] : memref<96x10xf32, #tpu.memory_space<vmem>>, vector<96x10xf32>
    %cst_128 = arith.constant dense<0.000000e+00> : vector<2x10xf32>
    %461 = tpu.matmul %459, %460, %cst_128 {dimension_numbers = #tpu.dot_dimension_numbers<[1], [0], [0], [1], [0, 0, 1, 1], [], []>} : vector<2x96xf32>, vector<96x10xf32>, vector<2x10xf32> -> vector<2x10xf32>
    %462 = vector.broadcast %24 : vector<1x10xf32> to vector<2x10xf32>
    %463 = arith.addf %461, %462 : vector<2x10xf32>
    %c0_129 = arith.constant 0 : index
    %c0_130 = arith.constant 0 : index
    %464 = vector.load %arg8[%c0_129, %c0_130] : memref<2x10xf32, #tpu.memory_space<vmem>>, vector<2x10xf32>
    tpu.vector_store %arg8[%c0_129, %c0_130], %463 {strides = array<i32>} : memref<2x10xf32, #tpu.memory_space<vmem>>, vector<2x10xf32>,
    return
  }
  func.func @transform_0(%arg0: i32) -> (i32, i32) {
    %c0_i32 = arith.constant 0 : i32
    %c0_i32_0 = arith.constant 0 : i32
    %c0_i32_1 = arith.constant 0 : i32
    return %c0_i32, %c0_i32_0 : i32, i32
  }
  func.func @transform_1(%arg0: i32) -> (i32, i32) {
    %c0_i32 = arith.constant 0 : i32
    %c0_i32_0 = arith.constant 0 : i32
    %c0_i32_1 = arith.constant 0 : i32
    return %c0_i32, %c0_i32_0 : i32, i32
  }
  func.func @transform_2(%arg0: i32) -> (i32, i32) {
    %c0_i32 = arith.constant 0 : i32
    %c0_i32_0 = arith.constant 0 : i32
    %c0_i32_1 = arith.constant 0 : i32
    return %c0_i32, %c0_i32_0 : i32, i32
  }
  func.func @transform_3(%arg0: i32) -> (i32, i32) {
    %c0_i32 = arith.constant 0 : i32
    %c0_i32_0 = arith.constant 0 : i32
    %c0_i32_1 = arith.constant 0 : i32
    return %c0_i32, %c0_i32_0 : i32, i32
  }
  func.func @transform_4(%arg0: i32) -> (i32, i32) {
    %c0_i32 = arith.constant 0 : i32
    %c0_i32_0 = arith.constant 0 : i32
    %c0_i32_1 = arith.constant 0 : i32
    return %c0_i32, %c0_i32_0 : i32, i32
  }
  func.func @transform_5(%arg0: i32) -> (i32, i32) {
    %c0_i32 = arith.constant 0 : i32
    %c0_i32_0 = arith.constant 0 : i32
    %c0_i32_1 = arith.constant 0 : i32
    return %c0_i32, %c0_i32_0 : i32, i32
  }
  func.func @transform_6(%arg0: i32) -> (i32, i32) {
    %c0_i32 = arith.constant 0 : i32
    %c0_i32_0 = arith.constant 0 : i32
    %c0_i32_1 = arith.constant 0 : i32
    return %c0_i32, %c0_i32_0 : i32, i32
  }
  func.func @transform_7(%arg0: i32) -> (i32, i32) {
    %c0_i32 = arith.constant 0 : i32
    %c0_i32_0 = arith.constant 0 : i32
    %c0_i32_1 = arith.constant 0 : i32
    return %c0_i32, %c0_i32_0 : i32, i32
  }
}

</mosaic_0001>

<bundles_post_ra>
// kernel: tpu_custom_call.1
= control target key start
LH: loop header
LB: loop body
LE: loop exit
PB: predicated region body
PF: predicated region fallthrough
CT: control target
= control target key end

     0   :  { %vm234_vm0 = vcmask 1045504   ;;  %vm6516_vm1 = vmmov 1   ;;  %vm221_vm3 = vcmask 113664   ;;  %vm418_vm4 = vcmask 261120   ;;  %s8814_s0 = inlined_call_operand.vmem [shape: f32[32,14], index: 0, kind: input, shape index: {}]   ;;  %s8815_s1 = inlined_call_operand.vmem [shape: f32[418,32], index: 1, kind: input, shape index: {}]   ;;  %s8816_s2 = inlined_call_operand.vmem [shape: f32[48,288], index: 2, kind: input, shape index: {}]   ;;  %s8817_s3 = inlined_call_operand.vmem [shape: f32[64,288], index: 3, kind: input, shape index: {}]   ;;  %s8818_s4 = inlined_call_operand.vmem [shape: f32[576,96], index: 4, kind: input, shape index: {}]   ;;  %s8819_s5 = inlined_call_operand.vmem [shape: f32[24,96], index: 5, kind: input, shape index: {}]   ;;  %s8820_s6 = inlined_call_operand.vmem [shape: f32[96,10], index: 6, kind: input, shape index: {}]   ;;  %s8821_s7 = inlined_call_operand.hbm [shape: f32[2,10], index: 7, kind: output, shape index: {}]  }
   0x1   :  { %v122_v0 = vld [vmem:[%s8817_s3 + $0x8] sm:$0xff]  ;;  %v125_v1 = vld [vmem:[%s8817_s3 + $0x20] sm:$0x3f]  ;;  %v123_v2 = vld [vmem:[%s8817_s3 + $0x10] sm:$0xff]  ;;  %v8828_v9 = vmov 0.0   ;;  %v8881_v14 = vmov 0 }
   0x2   :  { %v5692_v3 = vpack.c.bf16 %v125_v1, %v122_v0  ;;  %vm6586_vm2 = vmpackc.low %vm234_vm0, %vm6516_vm1  ;;  %v126_v5 = vld [vmem:[%s8817_s3 + $0x28] sm:$0x3f]  ;;  %v121_v6 = vld [vmem:[%s8817_s3] sm:$0xff]  ;;  %308 = vmatprep.mubr.f32.mxu0 %v8828_v9 }
   0x3   :  { %v5698_v7 = vpack.c.bf16 %v126_v5, %v123_v2  ;;  %v124_v8 = vld [vmem:[%s8817_s3 + $0x18] sm:$0x3f]  ;;  %v217_v10 = vld [vmem:[%s8814_s0] sm:$0xff]  ;;  %v82_v12 = vld [vmem:[%s8816_s2 + $0x10] sm:$0xff] }
   0x4   :  { %5694 = vmatprep.subr.msk.bf16.mxu0 %vm6586_vm2, %v5692_v3  ;;  %v5695_v11 = vpack.c.bf16 %v124_v8, %v121_v6  ;;  %5468 = vmatprep.mubr.msk.f32.mxu1 %vm221_vm3, %v217_v10  ;;  %v85_v13 = vld [vmem:[%s8816_s2 + $0x28] sm:$0xf]  ;;  %vm6616_vm5 = vmpackc.low %vm418_vm4, %vm418_vm4  ;;  %v84_v18 = vld [vmem:[%s8816_s2 + $0x20] sm:$0xf] }
   0x5   :  { %5700 = vmatprep.subr.msk.bf16.mxu1 %vm6586_vm2, %v5698_v7  ;;  %v8882_v14 = vsel %vm6616_vm5, 4294967295, %v8881_v14  ;;  %v81_v15 = vld [vmem:[%s8816_s2 + $0x8] sm:$0xff]  ;;  %v5708_v17 = vpack.c.bf16 %v85_v13, %v82_v12 }
   0x6   :  { %8883 = vst [vmem:[#allocation5_spill] sm:$0xff] %v8882_v14  ;;  %5697 = vmatpush1.bf16.msk.msra.mxu0 %vm6586_vm2, %v5695_v11  ;;  %5703 = vmatpush3.bf16.msk.msra.mxu1 %vm6586_vm2, %v5698_v7  ;;  %v218_v16 = vld [vmem:[%s8814_s0 + $0x8] sm:$0xff]  ;;  %v5704_v19 = vpack.c.bf16 %v84_v18, %v81_v15 }
   0x7   :  { %12 = vsyncpa [#allocation3], 0  ;;  %5710 = vmatprep.subr.msk.bf16.mxu0 %vm6616_vm5, %v5708_v17  ;;  %v80_v20 = vld [vmem:[%s8816_s2] sm:$0xff]  ;;  %v83_v21 = vld [vmem:[%s8816_s2 + $0x18] sm:$0xf]  ;;  %vm613_vm6 = vcmask 1043456   ;;  %v801_v48 = vlaneseq }
   0x8   :  { %v219_v22 = vld [vmem:[%s8814_s0 + $0x10] sm:$0xff]  ;;  %5705 = vmatprep.subr.bf16.mxu1 %v5704_v19  ;;  %v5706_v23 = vpack.c.bf16 %v83_v21, %v80_v20  ;;  %v220_v24 = vld [vmem:[%s8814_s0 + $0x18] sm:$0xff]  ;;  %v88_v25 = vld [vmem:[%s8816_s2 + $0x28] sm:$0xf0]  ;;  %v8830_v59 = vmov 0.0|0.0   ;;  %v8890_v62 = vmov 0 }
   0x9   :  { %5112 = vmatmul.mubr.msk.f32.vlgmr.msra.gmra.mrb[0].mxu0 %vm221_vm3, %v217_v10  ;;  %5469 = vmatmul.mubr.msk.f32.vlgmr.msra.gmra.mrb[0].mxu1 %vm221_vm3, %v218_v16  ;;  %v91_v26 = vld [vmem:[%s8816_s2 + $0x40] sm:$0xff]  ;;  %v620_v32 = vrot.slane %v88_v25, 4  ;;  %v90_v41 = vld [vmem:[%s8816_s2 + $0x38] sm:$0xff]  ;;  %v89_v55 = vld [vmem:[%s8816_s2 + $0x30] sm:$0xff]  ;;  %v6712_v56 = vand.u32 127, %v801_v48  ;;  %v6519_v63 = vmov 6  }
   0xa   :  { %314 = vmatprep.mubr.f32.mxu0 %v8828_v9  ;;  %5471 = vmatprep.mubr.msk.f32.mxu1 %vm221_vm3, %v219_v22  ;;  %v621_v33 = vrot.slane %v91_v26, 4  ;;  %v87_v40 = vld [vmem:[%s8816_s2 + $0x20] sm:$0xf0]  ;;  %v618_v47 = vrot.slane %v90_v41, 4  ;;  %v86_v54 = vld [vmem:[%s8816_s2 + $0x18] sm:$0xf0] }
   0xb   :  { %v617_v46 = vrot.slane %v87_v40, 4  ;;  %8888 = vst [vmem:[#allocation10_spill] sm:$0xff] %v6712_v56  ;;  %v614_v57 = vrot.slane %v86_v54, 4  ;;  %v615_v58 = vrot.slane %v89_v55, 4  ;;  %vm2030_vm7 = vcmp.lt.s32.totalorder %v6712_v56, 24  ;;  %6103 = vset.pattern.permute.xlu1 %v6519_v63  ;;  %s6531_s21 = smov 32  }
   0xc   :  { %v622_v43 = vsel %vm613_vm6, %v620_v32, %v621_v33  ;;  %vm5736_vm8 = vmpackc.low %vm2030_vm7, %vm2030_vm7  ;;  %vm2054_vm9 = vcmp.ge.s32.totalorder %v6712_v56, 24  ;;  %vm2057_vm10 = vcmp.lt.s32.totalorder %v6712_v56, 48  ;;  %vm2081_vm13 = vcmp.ge.s32.totalorder %v6712_v56, 48  ;;  %s6532_s22 = smov 64   ;;  %s6533_s23 = smov 96  }
   0xd   :  { %5113 = vmatmul.mubr.msk.f32.gmra.mrb[2].mxu0 %vm221_vm3, %v218_v16  ;;  %5472 = vmatmul.mubr.msk.f32.gmra.mrb[2].mxu1 %vm221_vm3, %v220_v24  ;;  %v619_v52 = vsel %vm613_vm6, %v617_v46, %v618_v47  ;;  %v616_v60 = vsel %vm613_vm6, %v614_v57, %v615_v58  ;;  %vm2060_vm11 = vmand %vm2054_vm9, %vm2057_vm10  ;;  %vm2084_vm14 = vcmp.lt.s32.totalorder %v6712_v56, 72  ;;  %vm2108_vm1 = vcmp.ge.s32.totalorder %v6712_v56, 72  ;;  %s6534_s27 = smov 80  }
   0xe   :  { %320 = vmatprep.mubr.f32.mxu0 %v8828_v9  ;;  %vm5744_vm12 = vmpackc.low %vm2060_vm11, %vm2060_vm11  ;;  %vm2111_vm2 = vcmp.lt.s32.totalorder %v6712_v56, 96  ;;  %vm2135_vm7 = vcmp.ge.s32.totalorder %v6712_v56, 96  ;;  %v6749_v61 = vadd.s32 128, %v6712_v56  ;;  %v6520_v0 = vmov 5  }
   0xf   :  { %5713 = vmatpush3.bf16.xpose.msk.msra.mxu0 %vm6616_vm5, %v5708_v17  ;;  %5707 = vmatpush1.bf16.xpose.msra.mxu1 %v5706_v23  ;;  %vm2087_vm15 = vmand %vm2081_vm13, %vm2084_vm14  ;;  %vm2162_vm13 = vcmp.ge.s32.totalorder %v6712_v56, 120  ;;  %v8824_v12 = vmov 2   ;;  %v8822_v13 = vmov 1   ;;  %v6523_v19 = vmov 7  }
  0x10   :  { %vm5752_vm0 = vmpackc.low %vm2087_vm15, %vm2087_vm15  ;;  %8889 = vst [vmem:[#allocation11_spill] sm:$0xff] %v6749_v61  ;;  %vm2166_vm11 = vcmp.lt.s32.totalorder %v6749_v61, 144  ;;  %vm2190_vm14 = vcmp.ge.s32.totalorder %v6749_v61, 144  ;;  %vm2193_vm15 = vcmp.lt.s32.totalorder %v6749_v61, 168  ;;  %6101 = vset.pattern.permute.xlu0 %v6520_v0  ;;  %v6524_v20 = vmov 3  }
  0x11   :  { %5114 = vmatmul.mubr.msk.f32.gmra.mrb[4].mxu0 %vm221_vm3, %v219_v22  ;;  %v6526_v25 = vmov 11   ;;  %v6528_v32 = vmov 4  }
  0x12   :  { %326 = vmatprep.mubr.f32.mxu0 %v8828_v9 }
  0x15   :  { %5115 = vmatmul.mubr.msk.f32.gmra.mrb[6].mxu0 %vm221_vm3, %v220_v24  ;;  %vm2114_vm3 = vmand %vm2108_vm1, %vm2111_vm2  ;;  %v6525_v24 = vmov 9  }
  0x16   :  { %vm5760_vm6 = vmpackc.low %vm2114_vm3, %vm2114_vm3 }
  0x17   :  { %vm2196_vm1 = vmand %vm2190_vm14, %vm2193_vm15 }
  0x18   :  { %vm5787_vm3 = vmpackc.low %vm2196_vm1, %vm2196_vm1 }
  0xdc   :  { %v310_v27 = vpop.f32.mrb[0].mxu0  ;;  %v5470_v28 = vpop.f32.mrb[0].mxu1 }
  0xdd   :  { %v312_v29 = vpop.f32.mrb[1].mxu0  ;;  %v399_v30 = vpop.f32.mrb[1].mxu1 }
  0xde   :  { %v6665_v31 = vpack.c.bf16 %v5470_v28, %v399_v30  ;;  %501 = vmatprep.mubr.f32.mxu1 %v312_v29  ;;  %5478 = vmatprep.mubr.msk.f32.mxu0 %vm418_vm4, %v399_v30  ;;  %v6527_v30 = vmov 10  }
  0xdf   :  { %502 = vmatmul.mubr.f32.vlgmr.msra.gmra.mrb[4].mxu1 %v310_v27  ;;  %5479 = vmatmul.mubr.msk.f32.vlgmr.msra.gmra.mrb[8].mxu0 %vm418_vm4, %v5470_v28 }
  0xe0   :  { %8884 = vst [vmem:[#allocation6_spill] sm:$0xff] %v6665_v31  ;;  %v316_v34 = vpop.f32.mrb[2].mxu0  ;;  %5724 = vmatprep.subr.msk.bf16.mxu0 %vm6616_vm5, %v6665_v31  ;;  %v5473_v35 = vpop.f32.mrb[2].mxu1 }
  0xe1   :  { %v6672_v36 = vpack.c.bf16 %v316_v34, %v310_v27  ;;  %v318_v37 = vpop.f32.mrb[3].mxu0  ;;  %5727 = vmatpush3.bf16.xpose.msk.msra.mxu0 %vm6616_vm5, %v6665_v31  ;;  %v409_v38 = vpop.f32.mrb[3].mxu1  ;;  %v7217_v31 = vld [vmem:[%s8815_s1 + $0x50] sm:$0xff] }
  0xe2   :  { %v6677_v39 = vpack.c.bf16 %v318_v37, %v312_v29  ;;  %506 = vmatprep.mubr.f32.mxu1 %v318_v37  ;;  %v6685_v42 = vpack.c.bf16 %v5473_v35, %v409_v38  ;;  %5481 = vmatprep.mubr.msk.f32.mxu0 %vm418_vm4, %v409_v38  ;;  %v6530_v37 = vmov 8   ;;  %v6875_v38 = vshrl.u32 %v801_v48, 7  ;;  %8903 = vst [vmem:[#allocation23_spill] sm:$0xff] %v7217_v31 }
  0xe3   :  { %507 = vmatmul.mubr.f32.gmra.mrb[6].mxu1 %v316_v34  ;;  %5482 = vmatmul.mubr.msk.f32.gmra.mrb[10].mxu0 %vm418_vm4, %v5473_v35 }
  0xe4   :  { %8885 = vst [vmem:[#allocation7_spill] sm:$0xff] %v6677_v39  ;;  %8886 = vst [vmem:[#allocation8_spill] sm:$0xff] %v6685_v42  ;;  %5715 = vmatprep.subr.bf16.mxu1 %v6677_v39  ;;  %v322_v44 = vpop.f32.mrb[4].mxu0  ;;  %5730 = vmatprep.subr.msk.bf16.mxu0 %vm6616_vm5, %v6685_v42  ;;  %v6880_v40 = vsub.s32 2, %v6875_v38  ;;  %v6883_v41 = vsub.s32 1, %v6875_v38  ;;  %v875_v48 = vsub.s32 3, %v6875_v38 }
  0xe5   :  { %5717 = vmatpush1.bf16.xpose.msra.mxu1 %v6672_v36  ;;  %v324_v45 = vpop.f32.mrb[5].mxu0  ;;  %5492 = vmatprep.mubr.msk.f32.mxu0 %vm418_vm4, %v622_v43 }
  0xe6   :  { %511 = vmatprep.mubr.f32.mxu1 %v324_v45  ;;  %8893 = vst [vmem:[#allocation13_spill] sm:$0xff] %v6880_v40  ;;  %8894 = vst [vmem:[#allocation14_spill] sm:$0xff] %v6883_v41 }
  0xe7   :  { %512 = vmatmul.mubr.f32.gmra.mrb[8].mxu1 %v322_v44 }
  0xe8   :  { %v328_v49 = vpop.f32.mrb[6].mxu0 }
  0xe9   :  { %v6696_v50 = vpack.c.bf16 %v328_v49, %v322_v44  ;;  %v330_v51 = vpop.f32.mrb[7].mxu0  ;;  %5733 = vmatpush3.bf16.xpose.msk.msra.mxu0 %vm6616_vm5, %v6685_v42 }
  0xea   :  { %v6702_v53 = vpack.c.bf16 %v330_v51, %v324_v45  ;;  %516 = vmatprep.mubr.f32.mxu1 %v330_v51  ;;  %2545 = vmatprep.subr.mxu0 %v8828_v9 }
  0xeb   :  { %517 = vmatmul.mubr.f32.gmra.mrb[10].mxu1 %v328_v49  ;;  %v6904_v49 = vld [vmem:[%s8815_s1 + $0x20] sm:$0xff] }
  0xec   :  { %8887 = vst [vmem:[#allocation9_spill] sm:$0xff] %v6702_v53  ;;  %5719 = vmatprep.subr.bf16.mxu1 %v6702_v53  ;;  %695 = vmatprep.mubr.f32.mxu1 %v619_v52  ;;  %8895 = vst [vmem:[#allocation15_spill] sm:$0xff] %v6904_v49  ;;  %vm8842_vm15 = vcmp.gt.f32.partialorder %v6904_v49, 0.0 }
  0xed   :  { %5721 = vmatpush1.bf16.xpose.msra.mxu1 %v6696_v50 }
  0xee   :  { %5734 = vmatprep.subr.bf16.mxu1 %v8830_v59 }
  0xf0   :  { %5493 = vmatmul.mubr.msk.f32.vlgmr.msra.gmra.mrb[12].mxu0 %vm418_vm4, %v621_v33 }
  0xf1   :  { %2546 = vmatpush1.msra.mxu0 %v8828_v9 }
  0xf2   :  { %5826 = vmatprep.subr.bf16.mxu0 %v8830_v59 }
  0xf4   :  { %696 = vmatmul.mubr.f32.vlgmr.msra.gmra.mrb[12].mxu1 %v616_v60 }
  0xf5   :  { %5737 = vmatpush1.bf16.msk.msra.mxu1 %vm5736_vm8, %v6672_v36  ;;  %700 = vmatprep.mubr.f32.mxu1 %v618_v47  ;;  %v971_v47 = vsub.s32 7, %v6875_v38 }
  0xf6   :  { %5738 = vmatprep.subr.bf16.mxu1 %v8830_v59 }
  0xf8   :  { %701 = vmatmul.mubr.f32.gmra.mrb[14].mxu1 %v615_v58  ;;  %v6919_v58 = vld [vmem:[%s8815_s1 + $0x40] sm:$0xff] }
  0xf9   :  { %5741 = vmatpush1.bf16.msk.msra.mxu1 %vm5736_vm8, %v6696_v50  ;;  %vm2138_vm8 = vcmp.lt.s32.totalorder %v6712_v56, 120  ;;  %8896 = vst [vmem:[#allocation16_spill] sm:$0xff] %v6919_v58  ;;  %v7287_v56 = vld [vmem:[%s8815_s1 + $0x10] sm:$0xff] }
  0xfa   :  { %5742 = vmatprep.subr.bf16.mxu1 %v8830_v59  ;;  %vm2141_vm9 = vmand %vm2135_vm7, %vm2138_vm8  ;;  %vm2220_vm8 = vcmp.lt.s32.totalorder %v6749_v61, 192  ;;  %8904 = vst [vmem:[#allocation24_spill] sm:$0xff] %v7287_v56 }
  0xfb   :  { %vm5768_vm10 = vmpackc.low %vm2141_vm9, %vm2141_vm9 }
  0xfd   :  { %5745 = vmatpush1.bf16.msk.msra.mxu1 %vm5744_vm12, %v6672_v36 }
  0xfe   :  { %5746 = vmatprep.subr.bf16.mxu1 %v8830_v59 }
 0x101   :  { %5749 = vmatpush1.bf16.msk.msra.mxu1 %vm5744_vm12, %v6696_v50  ;;  %vm5775_vm12 = vmpackc.low %vm2166_vm11, %vm2166_vm11  ;;  %vm2244_vm11 = vcmp.ge.s32.totalorder %v6749_v61, 192 }
 0x102   :  { %5750 = vmatprep.subr.bf16.mxu1 %v8830_v59 }
 0x105   :  { %5753 = vmatpush1.bf16.msk.msra.mxu1 %vm5752_vm0, %v6672_v36 }
 0x106   :  { %5754 = vmatprep.subr.bf16.mxu1 %v8830_v59 }
 0x109   :  { %5757 = vmatpush1.bf16.msk.msra.mxu1 %vm5752_vm0, %v6696_v50  ;;  %vm5778_vm0 = vmpackc.low %vm2162_vm13, %vm2162_vm13 }
 0x10a   :  { %5758 = vmatprep.subr.bf16.mxu1 %v8830_v59 }
 0x10d   :  { %5761 = vmatpush1.bf16.msk.msra.mxu1 %vm5760_vm6, %v6672_v36 }
 0x10e   :  { %5762 = vmatprep.subr.bf16.mxu1 %v8830_v59 }
 0x111   :  { %5765 = vmatpush1.bf16.msk.msra.mxu1 %vm5760_vm6, %v6696_v50  ;;  %vm2217_vm6 = vcmp.ge.s32.totalorder %v6749_v61, 168 }
 0x112   :  { %5766 = vmatprep.subr.bf16.mxu1 %v8830_v59  ;;  %vm2223_vm9 = vmand %vm2217_vm6, %vm2220_vm8 }
 0x115   :  { %5769 = vmatpush1.bf16.msk.msra.mxu1 %vm5768_vm10, %v6672_v36 }
 0x116   :  { %5770 = vmatprep.subr.bf16.mxu1 %v8830_v59 }
 0x119   :  { %5773 = vmatpush1.bf16.msk.msra.mxu1 %vm5768_vm10, %v6696_v50  ;;  %vm5795_vm10 = vmpackc.low %vm2223_vm9, %vm2223_vm9 }
 0x11a   :  { %5776 = vmatprep.subr.msk.bf16.mxu1 %vm5775_vm12, %v6677_v39 }
 0x11d   :  { %5779 = vmatpush1.bf16.msk.msra.mxu1 %vm5778_vm0, %v6672_v36  ;;  %v8826_v36 = vmov 0  }
 0x11e   :  { %5782 = vmatprep.subr.msk.bf16.mxu1 %vm5775_vm12, %v6702_v53  ;;  %vm2247_vm12 = vcmp.lt.s32.totalorder %v6749_v61, 216 }
 0x11f   :  { %vm6777_vm13 = vmand %vm2244_vm11, %vm2247_vm12 }
 0x120   :  { %v8891_v62 = vsel %vm6777_vm13, 4294967295, %v8890_v62  ;;  %vm5803_vm14 = vmpackc.low %vm6777_vm13, %vm6777_vm13 }
 0x121   :  { %5785 = vmatpush1.bf16.msk.msra.mxu1 %vm5778_vm0, %v6696_v50  ;;  %8892 = vst [vmem:[#allocation12_spill] sm:$0xff] %v8891_v62 }
 0x122   :  { %5788 = vmatprep.subr.msk.bf16.mxu1 %vm5787_vm3, %v6677_v39 }
 0x125   :  { %5789 = vmatpush1.bf16.msra.mxu1 %v8830_v59 }
 0x126   :  { %5792 = vmatprep.subr.msk.bf16.mxu1 %vm5787_vm3, %v6702_v53  ;;  %vm8843_vm3 = vcmp.gt.f32.partialorder %v6919_v58, 0.0 }
 0x129   :  { %5793 = vmatpush1.bf16.msra.mxu1 %v8830_v59 }
 0x12a   :  { %5796 = vmatprep.subr.msk.bf16.mxu1 %vm5795_vm10, %v6677_v39 }
 0x12d   :  { %5797 = vmatpush1.bf16.msra.mxu1 %v8830_v59 }
 0x12e   :  { %5800 = vmatprep.subr.msk.bf16.mxu1 %vm5795_vm10, %v6702_v53 }
 0x131   :  { %5801 = vmatpush1.bf16.msra.mxu1 %v8830_v59 }
 0x132   :  { %5804 = vmatprep.subr.msk.bf16.mxu1 %vm5803_vm14, %v6677_v39 }
 0x1b2   :  { %v503_v1 = vpop.f32.mrb[4].mxu1  ;;  %v5480_v2 = vpop.f32.mrb[8].mxu0 }
 0x1b3   :  { %v505_v3 = vpop.f32.mrb[5].mxu1  ;;  %v588_v4 = vpop.f32.mrb[9].mxu0 }
 0x1b4   :  { %v589_v5 = vadd.f32 %v588_v4, %v503_v1 }
 0x1b6   :  { %930 = vperm.xlu1 %6103, %v589_v5   ;;  %906 = vperm.xlu0 %6101, %v589_v5   ;;  %v508_v6 = vpop.f32.mrb[6].mxu1  ;;  %v5483_v7 = vpop.f32.mrb[10].mxu0 }
 0x1b7   :  { %v6795_v8 = vadd.f32 %v5480_v2, %v508_v6  ;;  %v510_v10 = vpop.f32.mrb[7].mxu1  ;;  %v598_v11 = vpop.f32.mrb[11].mxu0 }
 0x1ba   :  { %6104 = vset.pattern.permute.xlu1 %v8824_v12  ;;  %6102 = vset.pattern.permute.xlu0 %v8822_v13  ;;  %v513_v15 = vpop.f32.mrb[8].mxu1 }
 0x1bb   :  { %834 = vperm.xlu1 %6104, %v589_v5   ;;  %810 = vperm.xlu0 %6102, %v589_v5   ;;  %v6799_v16 = vadd.f32 %v598_v11, %v513_v15  ;;  %v515_v17 = vpop.f32.mrb[9].mxu1 }
 0x1bc   :  { %v899_v17 = vsub.s32 4, %v6875_v38 }
 0x1be   :  { %v518_v18 = vpop.f32.mrb[10].mxu1 }
 0x1bf   :  { %6105 = vset.pattern.permute.xlu1 %v6523_v19  ;;  %6106 = vset.pattern.permute.xlu0 %v6524_v20  ;;  %v6803_v21 = vadd.f32 %v5483_v7, %v518_v18  ;;  %v520_v22 = vpop.f32.mrb[11].mxu1  ;;  %v55_v7 = vld [vmem:[%s8815_s1 + $0xe0] sm:$0xff] }
 0x1c0   :  { %954 = vperm.xlu1 %6105, %v589_v5   ;;  %858 = vperm.xlu0 %6106, %v589_v5   ;;  %vm1245_vm9 = vcmp.gt.f32.partialorder %v55_v7, 0.0  ;;  %v39_v22 = vld [vmem:[%s8815_s1 + $0x60] sm:$0xff] }
 0x1c1   :  { %vm1229_vm12 = vcmp.gt.f32.partialorder %v39_v22, 0.0  ;;  %v923_v22 = vsub.s32 5, %v6875_v38 }
 0x1c3   :  { %v5494_v23 = vpop.f32.mrb[12].mxu0 }
 0x1c4   :  { %6107 = vset.pattern.permute.xlu1 %v6525_v24  ;;  %6109 = vset.pattern.permute.xlu0 %v6526_v25  ;;  %v772_v26 = vpop.f32.mrb[13].mxu0 }
 0x1c5   :  { %1002 = vperm.xlu1 %6107, %v589_v5   ;;  %1050 = vperm.xlu0 %6109, %v589_v5  }
 0x1c7   :  { %v697_v27 = vpop.f32.mrb[12].mxu1 }
 0x1c8   :  { %v6807_v28 = vadd.f32 %v772_v26, %v697_v27  ;;  %v699_v29 = vpop.f32.mrb[13].mxu1 }
 0x1c9   :  { %6108 = vset.pattern.permute.xlu1 %v6527_v30  ;;  %6110 = vset.pattern.permute.xlu0 %v6528_v32 }
 0x1ca   :  { %1026 = vperm.xlu1 %6108, %v589_v5   ;;  %882 = vperm.xlu0 %6110, %v589_v5   ;;  %v6892_v45 = vrot.slane %v6807_v28, %v6880_v40  ;;  %v6896_v46 = vrot.slane %v6807_v28, %v6883_v41  ;;  %v6910_v55 = vrot.slane %v6807_v28, %v971_v47 }
 0x1cb   :  { %v702_v33 = vpop.f32.mrb[14].mxu1  ;;  %v6913_v57 = vrot.slane %v6807_v28, %v875_v48  ;;  %v6961_v27 = vrot.slane %v6807_v28, %v899_v17 }
 0x1cc   :  { %v6810_v34 = vadd.f32 %v5494_v23, %v702_v33  ;;  %v704_v35 = vpop.f32.mrb[15].mxu1 }
 0x1cd   :  { %v67_v35 = vld [vmem:[%s8815_s1 + $0x140] sm:$0xff] }
 0x1ce   :  { %6111 = vset.pattern.permute.xlu1 %v8826_v36  ;;  %6115 = vset.pattern.permute.xlu0 %v6519_v63 }
 0x1cf   :  { %783 = vperm.xlu1 %6111, %v589_v5   ;;  %934 = vperm.xlu0 %6115, %v6795_v8  }
 0x1d3   :  { %6112 = vset.pattern.permute.xlu1 %v6530_v37  ;;  %6118 = vset.pattern.permute.xlu0 %v6524_v20 }
 0x1d4   :  { %978 = vperm.xlu1 %6112, %v589_v5   ;;  %862 = vperm.xlu0 %6118, %v6795_v8  }
 0x1d8   :  { %6113 = vset.pattern.permute.xlu1 %v6520_v0  ;;  %6121 = vset.pattern.permute.xlu0 %v6526_v25 }
 0x1d9   :  { %1054 = vperm.xlu0 %6121, %v6795_v8   ;;  %910 = vperm.xlu1 %6113, %v6795_v8  }
 0x1dd   :  { %6123 = vset.pattern.permute.xlu0 %v8826_v36  ;;  %6114 = vset.pattern.permute.xlu1 %v8822_v13 }
 0x1de   :  { %788 = vperm.xlu0 %6123, %v6795_v8   ;;  %814 = vperm.xlu1 %6114, %v6795_v8  }
 0x1e2   :  { %6127 = vset.pattern.permute.xlu0 %v6519_v63  ;;  %6116 = vset.pattern.permute.xlu1 %v8824_v12 }
 0x1e3   :  { %838 = vperm.xlu1 %6116, %v6795_v8   ;;  %938 = vperm.xlu0 %6127, %v6799_v16  }
 0x1e7   :  { %6117 = vset.pattern.permute.xlu1 %v6523_v19  ;;  %6130 = vset.pattern.permute.xlu0 %v6524_v20 }
 0x1e8   :  { %958 = vperm.xlu1 %6117, %v6795_v8   ;;  %866 = vperm.xlu0 %6130, %v6799_v16  }
 0x1ec   :  { %6119 = vset.pattern.permute.xlu1 %v6525_v24  ;;  %6132 = vset.pattern.permute.xlu0 %v6527_v30 }
 0x1ed   :  { %1006 = vperm.xlu1 %6119, %v6795_v8   ;;  %1034 = vperm.xlu0 %6132, %v6799_v16  }
 0x1f1   :  { %6120 = vset.pattern.permute.xlu1 %v6527_v30  ;;  %6134 = vset.pattern.permute.xlu0 %v6528_v32 }
 0x1f2   :  { %1030 = vperm.xlu1 %6120, %v6795_v8   ;;  %890 = vperm.xlu0 %6134, %v6799_v16  }
 0x1f6   :  { %6122 = vset.pattern.permute.xlu1 %v6528_v32  ;;  %6136 = vset.pattern.permute.xlu0 %v6530_v37 }
 0x1f7   :  { %886 = vperm.xlu1 %6122, %v6795_v8   ;;  %986 = vperm.xlu0 %6136, %v6799_v16  }
 0x1fb   :  { %6124 = vset.pattern.permute.xlu1 %v6530_v37  ;;  %6139 = vset.pattern.permute.xlu0 %v6519_v63 }
 0x1fc   :  { %982 = vperm.xlu1 %6124, %v6795_v8   ;;  %942 = vperm.xlu0 %6139, %v6803_v21  }
 0x200   :  { %6125 = vset.pattern.permute.xlu1 %v6520_v0  ;;  %6142 = vset.pattern.permute.xlu0 %v6524_v20 }
 0x201   :  { %914 = vperm.xlu1 %6125, %v6799_v16   ;;  %870 = vperm.xlu0 %6142, %v6803_v21  }
 0x205   :  { %6126 = vset.pattern.permute.xlu1 %v8822_v13  ;;  %6144 = vset.pattern.permute.xlu0 %v6527_v30 }
 0x206   :  { %818 = vperm.xlu1 %6126, %v6799_v16   ;;  %1038 = vperm.xlu0 %6144, %v6803_v21  }
 0x20a   :  { %6128 = vset.pattern.permute.xlu1 %v8824_v12  ;;  %6147 = vset.pattern.permute.xlu0 %v8826_v36 }
 0x20b   :  { %842 = vperm.xlu1 %6128, %v6799_v16   ;;  %798 = vperm.xlu0 %6147, %v6803_v21  }
 0x20f   :  { %6129 = vset.pattern.permute.xlu1 %v6523_v19  ;;  %6224 = vset.pattern.permute.xlu0 %v8822_v13 }
 0x210   :  { %962 = vperm.xlu1 %6129, %v6799_v16  }
 0x214   :  { %6131 = vset.pattern.permute.xlu1 %v6525_v24 }
 0x215   :  { %1010 = vperm.xlu1 %6131, %v6799_v16  }
 0x219   :  { %6133 = vset.pattern.permute.xlu1 %v6526_v25 }
 0x21a   :  { %1058 = vperm.xlu1 %6133, %v6799_v16  }
 0x21e   :  { %6135 = vset.pattern.permute.xlu1 %v8826_v36 }
 0x21f   :  { %793 = vperm.xlu1 %6135, %v6799_v16   ;;  %v6941_v16 = vrot.slane %v6810_v34, %v875_v48 }
 0x223   :  { %6137 = vset.pattern.permute.xlu1 %v6520_v0 }
 0x224   :  { %918 = vperm.xlu1 %6137, %v6803_v21  }
 0x228   :  { %6138 = vset.pattern.permute.xlu1 %v8822_v13 }
 0x229   :  { %822 = vperm.xlu1 %6138, %v6803_v21  }
 0x22d   :  { %6140 = vset.pattern.permute.xlu1 %v8824_v12 }
 0x22e   :  { %846 = vperm.xlu1 %6140, %v6803_v21  }
 0x232   :  { %6141 = vset.pattern.permute.xlu1 %v6523_v19 }
 0x233   :  { %966 = vperm.xlu1 %6141, %v6803_v21  }
 0x235   :  { %v6885_v43 = vpop.permute.xlu1 %930  ;;  %v6887_v44 = vpop.permute.xlu0 %906 }
 0x237   :  { %6143 = vset.pattern.permute.xlu1 %v6525_v24  ;;  %v6953_v24 = vrot.slane %v6810_v34, %v6880_v40 }
 0x238   :  { %1014 = vperm.xlu1 %6143, %v6803_v21  }
 0x23a   :  { %v835_v50 = vpop.permute.xlu1 %834  ;;  %v811_v51 = vpop.permute.xlu0 %810 }
 0x23b   :  { %v853_v52 = vadd.f32 %v6892_v45, %v835_v50  ;;  %v829_v54 = vadd.f32 %v6896_v46, %v811_v51  ;;  %v71_v51 = vld [vmem:[%s8815_s1 + $0x160] sm:$0xff] }
 0x23c   :  { %6145 = vset.pattern.permute.xlu1 %v6526_v25 }
 0x23d   :  { %v1129_v60 = vmul.f32 0.2, %v853_v52  ;;  %v1125_v63 = vmul.f32 0.2, %v829_v54  ;;  %1062 = vperm.xlu1 %6145, %v6803_v21   ;;  %vm1077_vm0 = vcmp.gt.f32.partialorder %v829_v54, 0.0  ;;  %vm1081_vm1 = vcmp.gt.f32.partialorder %v853_v52, 0.0 }
 0x23f   :  { %v955_v0 = vpop.permute.xlu1 %954  ;;  %v859_v1 = vpop.permute.xlu0 %858  ;;  %v1173_v2 = vsel %vm1077_vm0, %v829_v54, %v1125_v63  ;;  %v1177_v3 = vsel %vm1081_vm1, %v853_v52, %v1129_v60  ;;  %vm1257_vm1 = vcmp.gt.f32.partialorder %v67_v35, 0.0  ;;  %v947_v52 = vsub.s32 6, %v6875_v38 }
 0x240   :  { %v973_v4 = vadd.f32 %v6910_v55, %v955_v0  ;;  %v877_v5 = vadd.f32 %v6913_v57, %v859_v1  ;;  %v6927_v6 = vsel %vm8842_vm15, %v1173_v2, -1e+30  ;;  %v6938_v11 = vsel %vm8843_vm3, %v1177_v3, -1e+30 }
 0x241   :  { %6146 = vset.pattern.permute.xlu1 %v6528_v32  ;;  %v1325_v8 = vsel %vm418_vm4, %v6927_v6, -inf  ;;  %v1337_v23 = vsel %vm418_vm4, %v6938_v11, -inf  ;;  %v6980_v60 = vsub.s32 0, %v6875_v38  ;;  %v7011_v35 = vrot.slane %v6807_v28, %v923_v22 }
 0x242   :  { %v1149_v10 = vmul.f32 0.2, %v973_v4  ;;  %894 = vperm.xlu1 %6146, %v6803_v21   ;;  %1326 = vmax.xlane.f32.xlu0 %v1325_v8  ;;  %vm1101_vm6 = vcmp.gt.f32.partialorder %v973_v4, 0.0  ;;  %v1133_v15 = vmul.f32 0.2, %v877_v5  ;;  %vm1085_vm10 = vcmp.gt.f32.partialorder %v877_v5, 0.0 }
 0x243   :  { %8897 = vst [vmem:[#allocation17_spill] sm:$0xff] %v6980_v60  ;;  %v43_v8 = vld [vmem:[%s8815_s1 + $0x80] sm:$0xff]  ;;  %v7043_v22 = vrot.slane %v6807_v28, %v6980_v60 }
 0x244   :  { %v6944_v18 = vpop.permute.xlu1 %1002  ;;  %v1051_v19 = vpop.permute.xlu0 %1050  ;;  %v1197_v20 = vsel %vm1101_vm6, %v973_v4, %v1149_v10  ;;  %v1181_v29 = vsel %vm1085_vm10, %v877_v5, %v1133_v15  ;;  %v6988_v4 = vrot.slane %v6810_v34, %v6980_v60  ;;  %v6996_v10 = vrot.slane %v6807_v28, %v947_v52  ;;  %v63_v28 = vld [vmem:[%s8815_s1 + $0x120] sm:$0xff] }
 0x245   :  { %v6956_v25 = vsel %vm1245_vm9, %v1197_v20, -1e+30  ;;  %v1069_v26 = vadd.f32 %v6941_v16, %v1051_v19  ;;  %v6969_v47 = vsel %vm1229_vm12, %v1181_v29, -1e+30  ;;  %vm1261_vm9 = vcmp.gt.f32.partialorder %v71_v51, 0.0 }
 0x246   :  { %6148 = vset.pattern.permute.xlu1 %v6530_v37  ;;  %1338 = vmax.xlane.f32.xlu0 %v1337_v23  ;;  %v1397_v33 = vsel %vm418_vm4, %v6956_v25, -inf  ;;  %v1349_v54 = vsel %vm418_vm4, %v6969_v47, -inf  ;;  %vm1233_vm12 = vcmp.gt.f32.partialorder %v43_v8, 0.0  ;;  %v925_v52 = vadd.f32 %v7011_v35, %v6887_v44 }
 0x247   :  { %990 = vperm.xlu1 %6148, %v6803_v21   ;;  %v1165_v21 = vmul.f32 0.2, %v1069_v26  ;;  %vm1117_vm6 = vcmp.gt.f32.partialorder %v1069_v26, 0.0 }
 0x248   :  { %v1141_v8 = vmul.f32 0.2, %v925_v52 }
 0x249   :  { %v1027_v30 = vpop.permute.xlu1 %1026  ;;  %v883_v32 = vpop.permute.xlu0 %882  ;;  %v1213_v3 = vsel %vm1117_vm6, %v1069_v26, %v1165_v21  ;;  %v59_v26 = vld [vmem:[%s8815_s1 + $0x100] sm:$0xff]  ;;  %v52_v21 = vld [vmem:[%s8815_s1 + $0xc8] sm:$0xff] }
 0x24a   :  { %v1045_v37 = vadd.f32 %v6953_v24, %v1027_v30  ;;  %1398 = vmax.xlane.f32.xlu0 %v1397_v33  ;;  %v901_v48 = vadd.f32 %v6961_v27, %v883_v32  ;;  %v6998_v15 = vsel %vm1261_vm9, %v1213_v3, -1e+30  ;;  %vm1242_vm9 = vcmp.gt.f32.partialorder %v52_v21, 0.0 }
 0x24b   :  { %6225 = vset.pattern.permute.xlu1 %v8824_v12  ;;  %v1445_v29 = vsel %vm418_vm4, %v6998_v15, -inf  ;;  %v7028_v3 = vrot.slane %v6810_v34, %v6883_v41 }
 0x24c   :  { %v1161_v50 = vmul.f32 0.2, %v1045_v37  ;;  %vm1113_vm0 = vcmp.gt.f32.partialorder %v1045_v37, 0.0  ;;  %v1137_v1 = vmul.f32 0.2, %v901_v48  ;;  %vm1089_vm10 = vcmp.gt.f32.partialorder %v901_v48, 0.0 }
 0x24d   :  { %v1021_v34 = vadd.f32 %v7028_v3, %v6944_v18 }
 0x24e   :  { %v6982_v63 = vpop.permute.xlu1 %783  ;;  %1350 = vmax.xlane.f32.xlu0 %v1349_v54  ;;  %v1209_v0 = vsel %vm1113_vm0, %v1045_v37, %v1161_v50  ;;  %v935_v5 = vpop.permute.xlu0 %934  ;;  %v1185_v20 = vsel %vm1089_vm10, %v901_v48, %v1137_v1  ;;  %vm1093_vm10 = vcmp.gt.f32.partialorder %v925_v52, 0.0 }
 0x24f   :  { %v6984_v2 = vsel %vm1257_vm1, %v1209_v0, -1e+30  ;;  %v950_v17 = vadd.f32 %v6996_v10, %v935_v5  ;;  %v7008_v32 = vsel %vm1233_vm12, %v1185_v20, -1e+30  ;;  %vm1249_vm1 = vcmp.gt.f32.partialorder %v59_v26, 0.0  ;;  %v51_v26 = vld [vmem:[%s8815_s1 + $0xc0] sm:$0xff] }
 0x250   :  { %v1433_v7 = vsel %vm418_vm4, %v6984_v2, -inf  ;;  %v1361_v48 = vsel %vm418_vm4, %v7008_v32, -inf  ;;  %v805_v18 = vadd.f32 %v7043_v22, %v6982_v63 }
 0x251   :  { %v1146_v33 = vmul.f32 0.2, %v950_v17  ;;  %vm1098_vm6 = vcmp.gt.f32.partialorder %v950_v17, 0.0 }
 0x252   :  { %1434 = vmax.xlane.f32.xlu0 %v1433_v7  ;;  %v949_v7 = vadd.f32 %v6996_v10, %v6885_v43  ;;  %v1189_v43 = vsel %vm1093_vm10, %v925_v52, %v1141_v8  ;;  %v1121_v63 = vmul.f32 0.2, %v805_v18  ;;  %v64_v8 = vld [vmem:[%s8815_s1 + $0x128] sm:$0xff]  ;;  %vm1073_vm10 = vcmp.gt.f32.partialorder %v805_v18, 0.0 }
 0x253   :  { %v979_v19 = vpop.permute.xlu1 %978  ;;  %v1194_v51 = vsel %vm1098_vm6, %v950_v17, %v1146_v33  ;;  %v7030_v5 = vpop.permute.xlu0 %862  ;;  %v47_v17 = vld [vmem:[%s8815_s1 + $0xa0] sm:$0xff]  ;;  %vm1109_vm6 = vcmp.gt.f32.partialorder %v1021_v34, 0.0 }
 0x254   :  { %v997_v23 = vadd.f32 %v6988_v4, %v979_v19  ;;  %v7024_v1 = vsel %vm1242_vm9, %v1194_v51, -1e+30  ;;  %v1145_v20 = vmul.f32 0.2, %v949_v7  ;;  %vm1237_vm12 = vcmp.gt.f32.partialorder %v47_v17, 0.0  ;;  %v7073_v17 = vld [vmem:[%s8815_s1] sm:$0xff] }
 0x255   :  { %v1388_v44 = vsel %vm418_vm4, %v7024_v1, -inf  ;;  %v7052_v33 = vsel %vm1237_vm12, %v1189_v43, -1e+30  ;;  %vm1253_vm9 = vcmp.gt.f32.partialorder %v63_v28, 0.0  ;;  %8898 = vst [vmem:[#allocation18_spill] sm:$0xff] %v7073_v17  ;;  %v68_v28 = vld [vmem:[%s8815_s1 + $0x148] sm:$0xff] }
 0x256   :  { %v1153_v30 = vmul.f32 0.2, %v997_v23  ;;  %1446 = vmax.xlane.f32.xlu0 %v1445_v29  ;;  %vm1105_vm0 = vcmp.gt.f32.partialorder %v997_v23, 0.0  ;;  %v1157_v29 = vmul.f32 0.2, %v1021_v34  ;;  %v1373_v21 = vsel %vm418_vm4, %v7052_v33, -inf }
 0x258   :  { %v911_v38 = vpop.permute.xlu1 %910  ;;  %v1201_v37 = vsel %vm1105_vm0, %v997_v23, %v1153_v30  ;;  %v7045_v23 = vpop.permute.xlu0 %1054  ;;  %vm1097_vm0 = vcmp.gt.f32.partialorder %v949_v7, 0.0 }
 0x259   :  { %v7018_v50 = vsel %vm1249_vm1, %v1201_v37, -1e+30  ;;  %v1193_v37 = vsel %vm1097_vm0, %v949_v7, %v1145_v20  ;;  %vm1241_vm1 = vcmp.gt.f32.partialorder %v51_v26, 0.0  ;;  %vm1254_vm0 = vcmp.gt.f32.partialorder %v64_v8, 0.0 }
 0x25a   :  { %1362 = vmax.xlane.f32.xlu0 %v1361_v48  ;;  %v1409_v0 = vsel %vm418_vm4, %v7018_v50, -inf  ;;  %v926_v48 = vadd.f32 %v7011_v35, %v911_v38  ;;  %v7064_v52 = vsel %vm1241_vm1, %v1193_v37, -1e+30  ;;  %v1169_v37 = vsel %vm1073_vm10, %v805_v18, %v1121_v63 }
 0x25b   :  { %v1385_v38 = vsel %vm418_vm4, %v7064_v52, -inf  ;;  %vm8835_vm1 = vcmp.gt.f32.partialorder %v7073_v17, 0.0  ;;  %vm1258_vm10 = vcmp.gt.f32.partialorder %v68_v28, 0.0 }
 0x25c   :  { %v1142_v43 = vmul.f32 0.2, %v926_v48  ;;  %v7098_v18 = vsel %vm8835_vm1, %v1169_v37, -1e+30 }
 0x25d   :  { %v815_v54 = vpop.permute.xlu1 %814  ;;  %v7062_v51 = vpop.permute.xlu0 %788 }
 0x25e   :  { %1410 = vmax.xlane.f32.xlu0 %v1409_v0  ;;  %v1205_v0 = vsel %vm1109_vm6, %v1021_v34, %v1157_v29  ;;  %v48_v34 = vld [vmem:[%s8815_s1 + $0xa8] sm:$0xff]  ;;  %v830_v29 = vadd.f32 %v6896_v46, %v815_v54  ;;  %vm1094_vm6 = vcmp.gt.f32.partialorder %v926_v48, 0.0 }
 0x25f   :  { %v7077_v20 = vsel %vm1253_vm9, %v1205_v0, -1e+30  ;;  %vm1238_vm9 = vcmp.gt.f32.partialorder %v48_v34, 0.0  ;;  %v1190_v63 = vsel %vm1094_vm6, %v926_v48, %v1142_v43  ;;  %v44_v48 = vld [vmem:[%s8815_s1 + $0x88] sm:$0xff] }
 0x260   :  { %v1126_v12 = vmul.f32 0.2, %v830_v29  ;;  %v7118_v36 = vsel %vm1238_vm9, %v1190_v63, -1e+30  ;;  %vm1234_vm9 = vcmp.gt.f32.partialorder %v44_v48, 0.0 }
 0x261   :  { %v1376_v34 = vsel %vm418_vm4, %v7118_v36, -inf }
 0x262   :  { %v839_v19 = vpop.permute.xlu1 %838  ;;  %1389 = vmax.xlane.f32.xlu0 %v1388_v44 }
 0x267   :  { %v7050_v30 = vpop.permute.xlu1 %958 }
 0x26b   :  { %1374 = vmax.xlane.f32.xlu1 %v1373_v21  ;;  %v7087_v21 = vpop.permute.xlu0 %938 }
 0x26c   :  { %v1007_v7 = vpop.permute.xlu1 %1006 }
 0x26d   :  { %v1022_v44 = vadd.f32 %v7028_v3, %v1007_v7 }
 0x26f   :  { %v1158_v26 = vmul.f32 0.2, %v1022_v44  ;;  %1386 = vmax.xlane.f32.xlu1 %v1385_v38  ;;  %vm1110_vm12 = vcmp.gt.f32.partialorder %v1022_v44, 0.0  ;;  %v1421_v38 = vsel %vm418_vm4, %v7077_v20, -inf  ;;  %v7111_v43 = vpop.permute.xlu0 %866 }
 0x271   :  { %v1031_v0 = vpop.permute.xlu1 %1030  ;;  %v1206_v7 = vsel %vm1110_vm12, %v1022_v44, %v1158_v26  ;;  %v854_v44 = vadd.f32 %v6892_v45, %v839_v19 }
 0x272   :  { %v1046_v13 = vadd.f32 %v6953_v24, %v1031_v0  ;;  %v7092_v8 = vsel %vm1254_vm0, %v1206_v7, -1e+30  ;;  %v7104_v0 = vld [vmem:[%s8815_s1 + $0x28] sm:$0xff]  ;;  %vm1078_vm0 = vcmp.gt.f32.partialorder %v830_v29, 0.0 }
 0x273   :  { %1422 = vmax.xlane.f32.xlu1 %v1421_v38  ;;  %v1424_v54 = vsel %vm418_vm4, %v7092_v8, -inf  ;;  %8899 = vst [vmem:[#allocation19_spill] sm:$0xff] %v7104_v0  ;;  %v1313_v38 = vsel %vm418_vm4, %v7098_v18, -inf  ;;  %vm8838_vm6 = vcmp.gt.f32.partialorder %v7104_v0, 0.0  ;;  %v1130_v9 = vmul.f32 0.2, %v854_v44 }
 0x274   :  { %v1162_v26 = vmul.f32 0.2, %v1046_v13  ;;  %1425 = vmax.xlane.f32.xlu0 %v1424_v54  ;;  %vm1114_vm12 = vcmp.gt.f32.partialorder %v1046_v13, 0.0  ;;  %v1174_v59 = vsel %vm1078_vm0, %v830_v29, %v1126_v12  ;;  %v878_v29 = vadd.f32 %v6913_v57, %v7030_v5 }
 0x275   :  { %v7136_v12 = vsel %vm8838_vm6, %v1174_v59, -1e+30  ;;  %v1070_v59 = vadd.f32 %v6941_v16, %v7045_v23  ;;  %v40_v23 = vld [vmem:[%s8815_s1 + $0x68] sm:$0xff] }
 0x276   :  { %v887_v7 = vpop.permute.xlu1 %886  ;;  %v1210_v37 = vsel %vm1114_vm12, %v1046_v13, %v1162_v26  ;;  %v974_v13 = vadd.f32 %v6910_v55, %v7050_v30  ;;  %vm1082_vm12 = vcmp.gt.f32.partialorder %v854_v44, 0.0  ;;  %v1328_v5 = vsel %vm418_vm4, %v7136_v12, -inf }
 0x277   :  { %v902_v19 = vadd.f32 %v6961_v27, %v887_v7  ;;  %1314 = vmax.xlane.f32.xlu1 %v1313_v38  ;;  %v7115_v54 = vsel %vm1258_vm10, %v1210_v37, -1e+30  ;;  %v7128_v7 = vld [vmem:[%s8815_s1 + $0x48] sm:$0xff]  ;;  %v1178_v48 = vsel %vm1082_vm12, %v854_v44, %v1130_v9  ;;  %v1134_v44 = vmul.f32 0.2, %v878_v29 }
 0x278   :  { %v1436_v26 = vsel %vm418_vm4, %v7115_v54, -inf  ;;  %8900 = vst [vmem:[#allocation20_spill] sm:$0xff] %v7128_v7  ;;  %vm8837_vm0 = vcmp.gt.f32.partialorder %v7128_v7, 0.0  ;;  %v1150_v38 = vmul.f32 0.2, %v974_v13  ;;  %vm1086_vm12 = vcmp.gt.f32.partialorder %v878_v29, 0.0 }
 0x279   :  { %v1138_v28 = vmul.f32 0.2, %v902_v19  ;;  %1437 = vmax.xlane.f32.xlu0 %v1436_v26  ;;  %vm1090_vm10 = vcmp.gt.f32.partialorder %v902_v19, 0.0  ;;  %v1035_v26 = vpop.permute.xlu0 %1034  ;;  %v7154_v9 = vsel %vm8837_vm0, %v1178_v48, -1e+30  ;;  %v951_v48 = vadd.f32 %v6996_v10, %v7087_v21 }
 0x27a   :  { %v806_v21 = vadd.f32 %v7043_v22, %v7062_v51  ;;  %v1182_v49 = vsel %vm1086_vm12, %v878_v29, %v1134_v44  ;;  %vm1230_vm0 = vcmp.gt.f32.partialorder %v40_v23, 0.0  ;;  %vm1118_vm6 = vcmp.gt.f32.partialorder %v1070_v59, 0.0 }
 0x27b   :  { %v7132_v63 = vpop.permute.xlu1 %982  ;;  %1377 = vmax.xlane.f32.xlu1 %v1376_v34  ;;  %v1186_v30 = vsel %vm1090_vm10, %v902_v19, %v1138_v28  ;;  %v56_v19 = vld [vmem:[%s8815_s1 + $0xe8] sm:$0xff]  ;;  %vm1102_vm10 = vcmp.gt.f32.partialorder %v974_v13, 0.0  ;;  %v1147_v41 = vmul.f32 0.2, %v951_v48  ;;  %v7189_v29 = vsel %vm1230_vm0, %v1182_v49, -1e+30 }
 0x27c   :  { %v7141_v37 = vsel %vm1234_vm9, %v1186_v30, -1e+30  ;;  %v1198_v34 = vsel %vm1102_vm10, %v974_v13, %v1150_v38  ;;  %vm1246_vm9 = vcmp.gt.f32.partialorder %v56_v19, 0.0  ;;  %v49_v30 = vld [vmem:[%s8815_s1 + $0xb0] sm:$0xff]  ;;  %v72_v38 = vld [vmem:[%s8815_s1 + $0x168] sm:$0xff] }
 0x27d   :  { %v1364_v17 = vsel %vm418_vm4, %v7141_v37, -inf  ;;  %v7170_v13 = vld [vmem:[%s8815_s1 + $0x30] sm:$0xff]  ;;  %v7175_v19 = vpop.permute.xlu0 %890  ;;  %v7177_v7 = vsel %vm1246_vm9, %v1198_v34, -1e+30  ;;  %vm1239_vm1 = vcmp.gt.f32.partialorder %v49_v30, 0.0  ;;  %vm1262_vm3 = vcmp.gt.f32.partialorder %v72_v38, 0.0 }
 0x27e   :  { %1365 = vmax.xlane.f32.xlu0 %v1364_v17  ;;  %v1166_v17 = vmul.f32 0.2, %v1070_v59  ;;  %8901 = vst [vmem:[#allocation21_spill] sm:$0xff] %v7170_v13  ;;  %vm8878_vm15 = vcmp.gt.f32.partialorder %v7170_v13, 0.0  ;;  %v1400_v34 = vsel %vm418_vm4, %v7177_v7, -inf  ;;  %vm1099_vm9 = vcmp.gt.f32.partialorder %v951_v48, 0.0 }
 0x27f   :  { %1329 = vmax.xlane.f32.xlu1 %v1328_v5  ;;  %v1340_v5 = vsel %vm418_vm4, %v7154_v9, -inf  ;;  %v1122_v30 = vmul.f32 0.2, %v806_v21  ;;  %v7201_v49 = vld [vmem:[%s8815_s1 + $0x8] sm:$0xff] }
 0x280   :  { %v915_v28 = vpop.permute.xlu1 %914  ;;  %v1214_v44 = vsel %vm1118_vm6, %v1070_v59, %v1166_v17  ;;  %8902 = vst [vmem:[#allocation22_spill] sm:$0xff] %v7201_v49  ;;  %vm1074_vm6 = vcmp.gt.f32.partialorder %v806_v21, 0.0  ;;  %v1352_v17 = vsel %vm418_vm4, %v7189_v29, -inf  ;;  %vm8865_vm12 = vcmp.gt.f32.partialorder %v7201_v49, 0.0 }
 0x281   :  { %v927_v0 = vadd.f32 %v7011_v35, %v915_v28  ;;  %v7212_v42 = vsel %vm1262_vm3, %v1214_v44, -1e+30 }
 0x282   :  { %v1448_v44 = vsel %vm418_vm4, %v7212_v42, -inf }
 0x283   :  { %v1143_v28 = vmul.f32 0.2, %v927_v0  ;;  %1341 = vmax.xlane.f32.xlu1 %v1340_v5  ;;  %vm1095_vm10 = vcmp.gt.f32.partialorder %v927_v0, 0.0 }
 0x285   :  { %v819_v58 = vpop.permute.xlu1 %818  ;;  %v1191_v14 = vsel %vm1095_vm10, %v927_v0, %v1143_v28  ;;  %v53_v0 = vld [vmem:[%s8815_s1 + $0xd0] sm:$0xff] }
 0x286   :  { %v831_v60 = vadd.f32 %v6896_v46, %v819_v58  ;;  %v7185_v5 = vsel %vm1239_vm1, %v1191_v14, -1e+30  ;;  %v879_v58 = vadd.f32 %v6913_v57, %v7111_v43  ;;  %v7196_v14 = vpop.permute.xlu0 %986  ;;  %vm1243_vm0 = vcmp.gt.f32.partialorder %v53_v0, 0.0 }
 0x287   :  { %1401 = vmax.xlane.f32.xlu1 %v1400_v34  ;;  %v1379_v51 = vsel %vm418_vm4, %v7185_v5, -inf  ;;  %v1195_v34 = vsel %vm1099_vm9, %v951_v48, %v1147_v41  ;;  %v1047_v43 = vadd.f32 %v6953_v24, %v1035_v26  ;;  %v1170_v26 = vsel %vm1074_vm6, %v806_v21, %v1122_v30  ;;  %v41_v48 = vld [vmem:[%s8815_s1 + $0x70] sm:$0xff] }
 0x288   :  { %v1127_v23 = vmul.f32 0.2, %v831_v60  ;;  %1380 = vmax.xlane.f32.xlu0 %v1379_v51  ;;  %vm1079_vm1 = vcmp.gt.f32.partialorder %v831_v60, 0.0  ;;  %v7225_v38 = vsel %vm1243_vm0, %v1195_v34, -1e+30  ;;  %vm1087_vm10 = vcmp.gt.f32.partialorder %v879_v58, 0.0 }
 0x289   :  { %vm8863_vm9 = vcmp.gt.f32.partialorder %v7217_v31, 0.0  ;;  %v7234_v30 = vsel %vm8865_vm12, %v1170_v26, -1e+30  ;;  %vm1115_vm6 = vcmp.gt.f32.partialorder %v1047_v43, 0.0 }
 0x28a   :  { %v843_v59 = vpop.permute.xlu1 %842  ;;  %v1175_v28 = vsel %vm1079_vm1, %v831_v60, %v1127_v23  ;;  %v1135_v60 = vmul.f32 0.2, %v879_v58  ;;  %v1163_v23 = vmul.f32 0.2, %v1047_v43  ;;  %vm1231_vm1 = vcmp.gt.f32.partialorder %v41_v48, 0.0 }
 0x28b   :  { %v855_v51 = vadd.f32 %v6892_v45, %v843_v59  ;;  %1353 = vmax.xlane.f32.xlu1 %v1352_v17  ;;  %v7209_v40 = vsel %vm8878_vm15, %v1175_v28, -1e+30  ;;  %v7230_v59 = vpop.permute.xlu0 %942  ;;  %v57_v28 = vld [vmem:[%s8815_s1 + $0xf0] sm:$0xff]  ;;  %v1316_v48 = vsel %vm418_vm4, %v7234_v30, -inf }
 0x28c   :  { %v1331_v41 = vsel %vm418_vm4, %v7209_v40, -inf  ;;  %v1183_v13 = vsel %vm1087_vm10, %v879_v58, %v1135_v60  ;;  %v1211_v58 = vsel %vm1115_vm6, %v1047_v43, %v1163_v23 }
 0x28d   :  { %v1131_v0 = vmul.f32 0.2, %v855_v51  ;;  %1332 = vmax.xlane.f32.xlu0 %v1331_v41  ;;  %vm1083_vm3 = vcmp.gt.f32.partialorder %v855_v51, 0.0  ;;  %v1391_v41 = vsel %vm418_vm4, %v7225_v38, -inf }
 0x28f   :  { %v963_v21 = vpop.permute.xlu1 %962  ;;  %1449 = vmax.xlane.f32.xlu1 %v1448_v44  ;;  %v1179_v17 = vsel %vm1083_vm3, %v855_v51, %v1131_v0  ;;  %v69_v44 = vld [vmem:[%s8815_s1 + $0x150] sm:$0xff]  ;;  %vm1247_vm3 = vcmp.gt.f32.partialorder %v57_v28, 0.0  ;;  %v7251_v0 = vsel %vm1231_vm1, %v1183_v13, -1e+30  ;;  %v871_v31 = vpop.permute.xlu0 %870  ;;  %v903_v13 = vadd.f32 %v6961_v27, %v7175_v19 }
 0x290   :  { %v975_v34 = vadd.f32 %v6910_v55, %v963_v21  ;;  %v7247_v51 = vsel %vm8863_vm9, %v1179_v17, -1e+30  ;;  %vm1259_vm10 = vcmp.gt.f32.partialorder %v69_v44, 0.0  ;;  %v65_v17 = vld [vmem:[%s8815_s1 + $0x130] sm:$0xff]  ;;  %v1355_v43 = vsel %vm418_vm4, %v7251_v0, -inf }
 0x291   :  { %1392 = vmax.xlane.f32.xlu0 %v1391_v41  ;;  %v1343_v21 = vsel %vm418_vm4, %v7247_v51, -inf  ;;  %v7265_v23 = vsel %vm1259_vm10, %v1211_v58, -1e+30  ;;  %vm1255_vm6 = vcmp.gt.f32.partialorder %v65_v17, 0.0  ;;  %v73_v19 = vld [vmem:[%s8815_s1 + $0x170] sm:$0xff]  ;;  %v880_v58 = vadd.f32 %v6913_v57, %v871_v31 }
 0x292   :  { %v1151_v26 = vmul.f32 0.2, %v975_v34  ;;  %vm1103_vm0 = vcmp.gt.f32.partialorder %v975_v34, 0.0  ;;  %v45_v17 = vld [vmem:[%s8815_s1 + $0x90] sm:$0xff]  ;;  %vm1263_vm10 = vcmp.gt.f32.partialorder %v73_v19, 0.0  ;;  %v42_v19 = vld [vmem:[%s8815_s1 + $0x78] sm:$0xff] }
 0x293   :  { %1317 = vmax.xlane.f32.xlu1 %v1316_v48  ;;  %v1136_v31 = vmul.f32 0.2, %v880_v58  ;;  %vm1232_vm9 = vcmp.gt.f32.partialorder %v42_v19, 0.0 }
 0x294   :  { %v1011_v60 = vpop.permute.xlu1 %1010  ;;  %v1199_v41 = vsel %vm1103_vm0, %v975_v34, %v1151_v26  ;;  %v1439_v26 = vsel %vm418_vm4, %v7265_v23, -inf  ;;  %vm1091_vm0 = vcmp.gt.f32.partialorder %v903_v13, 0.0 }
 0x295   :  { %v1023_v49 = vadd.f32 %v7028_v3, %v1011_v60  ;;  %1344 = vmax.xlane.f32.xlu0 %v1343_v21  ;;  %v7259_v39 = vsel %vm1247_vm3, %v1199_v41, -1e+30  ;;  %v1139_v60 = vmul.f32 0.2, %v903_v13 }
 0x296   :  { %v1403_v34 = vsel %vm418_vm4, %v7259_v39, -inf }
 0x297   :  { %v1159_v28 = vmul.f32 0.2, %v1023_v49  ;;  %1356 = vmax.xlane.f32.xlu1 %v1355_v43  ;;  %vm1111_vm1 = vcmp.gt.f32.partialorder %v1023_v49, 0.0  ;;  %v1039_v43 = vpop.permute.xlu0 %1038 }
 0x298   :  { %v1048_v57 = vadd.f32 %v6953_v24, %v1039_v43  ;;  %v70_v43 = vld [vmem:[%s8815_s1 + $0x158] sm:$0xff] }
 0x299   :  { %v1059_v44 = vpop.permute.xlu1 %1058  ;;  %1404 = vmax.xlane.f32.xlu0 %v1403_v34  ;;  %v1207_v48 = vsel %vm1111_vm1, %v1023_v49, %v1159_v28  ;;  %vm1235_vm1 = vcmp.gt.f32.partialorder %v45_v17, 0.0 }
 0x29a   :  { %v1071_v21 = vadd.f32 %v6941_v16, %v1059_v44  ;;  %v7276_v41 = vsel %vm1255_vm6, %v1207_v48, -1e+30  ;;  %v1187_v48 = vsel %vm1091_vm0, %v903_v13, %v1139_v60  ;;  %vm1088_vm6 = vcmp.gt.f32.partialorder %v880_v58, 0.0 }
 0x29b   :  { %1440 = vmax.xlane.f32.xlu1 %v1439_v26  ;;  %v1427_v49 = vsel %vm418_vm4, %v7276_v41, -inf  ;;  %v7297_v13 = vsel %vm1235_vm1, %v1187_v48, -1e+30  ;;  %v1164_v60 = vmul.f32 0.2, %v1048_v57  ;;  %vm1260_vm1 = vcmp.gt.f32.partialorder %v70_v43, 0.0 }
 0x29c   :  { %v1167_v28 = vmul.f32 0.2, %v1071_v21  ;;  %vm1119_vm3 = vcmp.gt.f32.partialorder %v1071_v21, 0.0  ;;  %v1367_v48 = vsel %vm418_vm4, %v7297_v13, -inf }
 0x29d   :  { %1428 = vmax.xlane.f32.xlu0 %v1427_v49 }
 0x29e   :  { %v794_v34 = vpop.permute.xlu1 %793  ;;  %v1215_v44 = vsel %vm1119_vm3, %v1071_v21, %v1167_v28  ;;  %vm8864_vm3 = vcmp.gt.f32.partialorder %v7287_v56, 0.0  ;;  %v1184_v21 = vsel %vm1088_vm6, %v880_v58, %v1136_v31  ;;  %v952_v31 = vadd.f32 %v6996_v10, %v7230_v59  ;;  %v7324_v10 = vld [vmem:[%s8815_s1 + $0x38] sm:$0xff] }
 0x29f   :  { %v807_v26 = vadd.f32 %v7043_v22, %v794_v34  ;;  %v7290_v62 = vsel %vm1263_vm10, %v1215_v44, -1e+30  ;;  %v50_v34 = vld [vmem:[%s8815_s1 + $0xb8] sm:$0xff]  ;;  %vm1116_vm10 = vcmp.gt.f32.partialorder %v1048_v57, 0.0  ;;  %v7317_v19 = vsel %vm1232_vm9, %v1184_v21, -1e+30 }
 0x2a0   :  { %v1451_v24 = vsel %vm418_vm4, %v7290_v62, -inf  ;;  %8905 = vst [vmem:[#allocation25_spill] sm:$0xff] %v7324_v10  ;;  %v1148_v59 = vmul.f32 0.2, %v952_v31  ;;  %vm1100_vm9 = vcmp.gt.f32.partialorder %v952_v31, 0.0 }
 0x2a1   :  { %v1123_v17 = vmul.f32 0.2, %v807_v26  ;;  %1452 = vmax.xlane.f32.xlu0 %v1451_v24  ;;  %vm1075_vm0 = vcmp.gt.f32.partialorder %v807_v26, 0.0 }
 0x2a3   :  { %v919_v49 = vpop.permute.xlu1 %918  ;;  %v1171_v28 = vsel %vm1075_vm0, %v807_v26, %v1123_v17  ;;  %vm1240_vm0 = vcmp.gt.f32.partialorder %v50_v34, 0.0 }
 0x2a4   :  { %v928_v44 = vadd.f32 %v7011_v35, %v919_v49  ;;  %v7311_v58 = vsel %vm8864_vm3, %v1171_v28, -1e+30  ;;  %v1212_v35 = vsel %vm1116_vm10, %v1048_v57, %v1164_v60  ;;  %v1358_v49 = vsel %vm418_vm4, %v7317_v19, -inf  ;;  %v54_v60 = vld [vmem:[%s8815_s1 + $0xd8] sm:$0xff] }
 0x2a5   :  { %1368 = vmax.xlane.f32.xlu0 %v1367_v48  ;;  %v1319_v26 = vsel %vm418_vm4, %v7311_v58, -inf  ;;  %v7329_v48 = vsel %vm1260_vm1, %v1212_v35, -1e+30  ;;  %vm1244_vm1 = vcmp.gt.f32.partialorder %v54_v60, 0.0 }
 0x2a6   :  { %v1144_v24 = vmul.f32 0.2, %v928_v44  ;;  %1320 = vmax.xlane.f32.xlu1 %v1319_v26  ;;  %vm1096_vm6 = vcmp.gt.f32.partialorder %v928_v44, 0.0 }
 0x2a8   :  { %v823_v17 = vpop.permute.xlu1 %822  ;;  %v1192_v28 = vsel %vm1096_vm6, %v928_v44, %v1144_v24  ;;  %vm8877_vm6 = vcmp.gt.f32.partialorder %v7324_v10, 0.0  ;;  %v1196_v24 = vsel %vm1100_vm9, %v952_v31, %v1148_v59  ;;  %v58_v31 = vld [vmem:[%s8815_s1 + $0xf8] sm:$0xff] }
 0x2a9   :  { %v832_v21 = vadd.f32 %v6896_v46, %v823_v17  ;;  %1359 = vmax.xlane.f32.xlu0 %v1358_v49  ;;  %v7327_v43 = vsel %vm1240_vm0, %v1192_v28, -1e+30  ;;  %v1442_v46 = vsel %vm418_vm4, %v7329_v48, -inf  ;;  %v7347_v49 = vld [vmem:[%s8815_s1 + $0x58] sm:$0xff] }
 0x2aa   :  { %v1382_v57 = vsel %vm418_vm4, %v7327_v43, -inf  ;;  %8906 = vst [vmem:[#allocation26_spill] sm:$0xff] %v7347_v49  ;;  %vm8869_vm9 = vcmp.gt.f32.partialorder %v7347_v49, 0.0 }
 0x2ab   :  { %v1128_v34 = vmul.f32 0.2, %v832_v21  ;;  %1383 = vmax.xlane.f32.xlu1 %v1382_v57  ;;  %vm1080_vm10 = vcmp.gt.f32.partialorder %v832_v21, 0.0 }
 0x2ad   :  { %v847_v44 = vpop.permute.xlu1 %846  ;;  %1443 = vmax.xlane.f32.xlu0 %v1442_v46  ;;  %v1176_v26 = vsel %vm1080_vm10, %v832_v21, %v1128_v34  ;;  %v7351_v46 = vsel %vm1244_vm1, %v1196_v24, -1e+30  ;;  %vm1248_vm10 = vcmp.gt.f32.partialorder %v58_v31, 0.0 }
 0x2ae   :  { %v856_v35 = vadd.f32 %v6892_v45, %v847_v44  ;;  %v7342_v17 = vsel %vm8877_vm6, %v1176_v26, -1e+30  ;;  %v998_v45 = vadd.f32 %v6988_v4, %v7132_v63  ;;  %v1394_v34 = vsel %vm418_vm4, %v7351_v46, -inf }
 0x2af   :  { %v1334_v28 = vsel %vm418_vm4, %v7342_v17, -inf  ;;  %v999_v63 = vadd.f32 %v6988_v4, %v7196_v14 }
 0x2b0   :  { %v1132_v57 = vmul.f32 0.2, %v856_v35  ;;  %1335 = vmax.xlane.f32.xlu1 %v1334_v28  ;;  %vm1084_vm0 = vcmp.gt.f32.partialorder %v856_v35, 0.0  ;;  %v1154_v26 = vmul.f32 0.2, %v998_v45 }
 0x2b1   :  { %v1155_v31 = vmul.f32 0.2, %v999_v63  ;;  %vm1107_vm12 = vcmp.gt.f32.partialorder %v999_v63, 0.0 }
 0x2b2   :  { %v967_v59 = vpop.permute.xlu1 %966  ;;  %v1180_v21 = vsel %vm1084_vm0, %v856_v35, %v1132_v57  ;;  %v60_v35 = vld [vmem:[%s8815_s1 + $0x108] sm:$0xff]  ;;  %vm1106_vm0 = vcmp.gt.f32.partialorder %v998_v45, 0.0 }
 0x2b3   :  { %v976_v60 = vadd.f32 %v6910_v55, %v967_v59  ;;  %v7364_v44 = vsel %vm8869_vm9, %v1180_v21, -1e+30  ;;  %v1202_v14 = vsel %vm1106_vm0, %v998_v45, %v1154_v26  ;;  %vm1250_vm3 = vcmp.gt.f32.partialorder %v60_v35, 0.0  ;;  %v66_v45 = vld [vmem:[%s8815_s1 + $0x138] sm:$0xff] }
 0x2b4   :  { %1395 = vmax.xlane.f32.xlu1 %v1394_v34  ;;  %v1346_v28 = vsel %vm418_vm4, %v7364_v44, -inf  ;;  %v61_v34 = vld [vmem:[%s8815_s1 + $0x110] sm:$0xff]  ;;  %v7381_v10 = vsel %vm1250_vm3, %v1202_v14, -1e+30  ;;  %vm1256_vm3 = vcmp.gt.f32.partialorder %v66_v45, 0.0 }
 0x2b5   :  { %v1152_v24 = vmul.f32 0.2, %v976_v60  ;;  %vm1104_vm1 = vcmp.gt.f32.partialorder %v976_v60, 0.0  ;;  %v1412_v26 = vsel %vm418_vm4, %v7381_v10, -inf }
 0x2b7   :  { %v1015_v55 = vpop.permute.xlu1 %1014  ;;  %v1200_v57 = vsel %vm1104_vm1, %v976_v60, %v1152_v24 }
 0x2b8   :  { %1347 = vmax.xlane.f32.xlu1 %v1346_v28  ;;  %v7373_v59 = vsel %vm1248_vm10, %v1200_v57, -1e+30  ;;  %v1024_v21 = vadd.f32 %v7028_v3, %v1015_v55  ;;  %v1203_v28 = vsel %vm1107_vm12, %v999_v63, %v1155_v31  ;;  %vm1251_vm10 = vcmp.gt.f32.partialorder %v61_v34, 0.0  ;;  %v799_v3 = vpop.permute.xlu0 %798  ;;  %v74_v63 = vld [vmem:[%s8815_s1 + $0x178] sm:$0xff] }
 0x2b9   :  { %v1406_v56 = vsel %vm418_vm4, %v7373_v59, -inf  ;;  %v7389_v35 = vsel %vm1251_vm10, %v1203_v28, -1e+30 }
 0x2ba   :  { %v1160_v60 = vmul.f32 0.2, %v1024_v21  ;;  %vm1112_vm1 = vcmp.gt.f32.partialorder %v1024_v21, 0.0  ;;  %v1415_v31 = vsel %vm418_vm4, %v7389_v35, -inf }
 0x2bc   :  { %v1063_v49 = vpop.permute.xlu1 %1062  ;;  %1407 = vmax.xlane.f32.xlu1 %v1406_v56  ;;  %v808_v56 = vadd.f32 %v7043_v22, %v799_v3  ;;  %v1208_v14 = vsel %vm1112_vm1, %v1024_v21, %v1160_v60  ;;  %vm1264_vm1 = vcmp.gt.f32.partialorder %v74_v63, 0.0 }
 0x2bd   :  { %v1072_v24 = vadd.f32 %v6941_v16, %v1063_v49  ;;  %v46_v16 = vld [vmem:[%s8815_s1 + $0x98] sm:$0xff]  ;;  %v7401_v22 = vsel %vm1256_vm3, %v1208_v14, -1e+30 }
 0x2be   :  { %vm1236_vm10 = vcmp.gt.f32.partialorder %v46_v16, 0.0  ;;  %v1124_v21 = vmul.f32 0.2, %v808_v56  ;;  %vm1076_vm9 = vcmp.gt.f32.partialorder %v808_v56, 0.0 }
 0x2bf   :  { %v1168_v55 = vmul.f32 0.2, %v1072_v24  ;;  %vm1120_vm12 = vcmp.gt.f32.partialorder %v1072_v24, 0.0 }
 0x2c0   :  { %1413 = vmax.xlane.f32.xlu1 %v1412_v26  ;;  %v1430_v26 = vsel %vm418_vm4, %v7401_v22, -inf  ;;  %v1172_v16 = vsel %vm1076_vm9, %v808_v56, %v1124_v21  ;;  %vm1989_vm9 = vcmask 523264  }
 0x2c1   :  { %v895_v57 = vpop.permute.xlu1 %894  ;;  %v1216_v60 = vsel %vm1120_vm12, %v1072_v24, %v1168_v55 }
 0x2c2   :  { %v904_v49 = vadd.f32 %v6961_v27, %v895_v57  ;;  %v7406_v27 = vld [vmem:[%s8815_s1 + $0x18] sm:$0xff]  ;;  %v7415_v55 = vsel %vm1264_vm1, %v1216_v60, -1e+30 }
 0x2c3   :  { %8907 = vst [vmem:[#allocation27_spill] sm:$0xff] %v7406_v27  ;;  %vm8876_vm3 = vcmp.gt.f32.partialorder %v7406_v27, 0.0 }
 0x2c4   :  { %v1140_v34 = vmul.f32 0.2, %v904_v49  ;;  %1416 = vmax.xlane.f32.xlu1 %v1415_v31  ;;  %vm1092_vm0 = vcmp.gt.f32.partialorder %v904_v49, 0.0  ;;  %v7425_v63 = vsel %vm8876_vm3, %v1172_v16, -1e+30 }
 0x2c5   :  { %v1322_v56 = vsel %vm418_vm4, %v7425_v63, -inf }
 0x2c6   :  { %v991_v28 = vpop.permute.xlu1 %990  ;;  %v1188_v3 = vsel %vm1092_vm0, %v904_v49, %v1140_v34  ;;  %v1454_v49 = vsel %vm418_vm4, %v7415_v55, -inf }
 0x2c7   :  { %v1000_v45 = vadd.f32 %v6988_v4, %v991_v28  ;;  %v7411_v57 = vsel %vm1236_vm10, %v1188_v3, -1e+30  ;;  %v62_v4 = vld [vmem:[%s8815_s1 + $0x118] sm:$0xff]  ;;  %vm1994_vm10 = vcmask 785408  }
 0x2c8   :  { %1431 = vmax.xlane.f32.xlu1 %v1430_v26  ;;  %v1370_v24 = vsel %vm418_vm4, %v7411_v57, -inf  ;;  %vm1252_vm0 = vcmp.gt.f32.partialorder %v62_v4, 0.0 }
 0x2c9   :  { %v1156_v14 = vmul.f32 0.2, %v1000_v45  ;;  %1371 = vmax.xlane.f32.xlu0 %v1370_v24  ;;  %vm1108_vm12 = vcmp.gt.f32.partialorder %v1000_v45, 0.0 }
 0x2cb   :  { %v1204_v31 = vsel %vm1108_vm12, %v1000_v45, %v1156_v14 }
 0x2cc   :  { %1455 = vmax.xlane.f32.xlu1 %v1454_v49  ;;  %v7430_v60 = vsel %vm1252_vm0, %v1204_v31, -1e+30 }
 0x2cd   :  { %v1418_v26 = vsel %vm418_vm4, %v7430_v60, -inf }
 0x2cf   :  { %v1327_v34 = vpop.xlane.xlu0 %1326 }
 0x2d0   :  { %v1461_v21 = vsub.f32 %v6927_v6, %v1327_v34  ;;  %1323 = vmax.xlane.f32.xlu1 %v1322_v56 }
 0x2d2   :  { %v1513_v28 = vmul.f32 1.442695, %v1461_v21 }
 0x2d3   :  { %v1339_v3 = vpop.xlane.xlu0 %1338 }
 0x2d4   :  { %6234 = vpow2.f32 %v1513_v28  ;;  %1419 = vmax.xlane.f32.xlu1 %v1418_v26 }
 0x2d7   :  { %v1399_v24 = vpop.xlane.xlu0 %1398 }
 0x2d8   :  { %v1485_v45 = vsub.f32 %v6956_v25, %v1399_v24 }
 0x2da   :  { %v1561_v14 = vmul.f32 1.442695, %v1485_v45 }
 0x2db   :  { %v1351_v16 = vpop.xlane.xlu0 %1350 }
 0x2dc   :  { %6236 = vpow2.f32 %v1561_v14  ;;  %v1465_v14 = vsub.f32 %v6938_v11, %v1339_v3  ;;  %v1469_v27 = vsub.f32 %v6969_v47, %v1351_v16 }
 0x2de   :  { %v7435_v4 = vpop.eup %6234 }
 0x2df   :  { %v1435_v49 = vpop.xlane.xlu0 %1434  ;;  %v1613_v6 = vsel %vm418_vm4, %v7435_v4, 0.0 }
 0x2e0   :  { %v1497_v31 = vsub.f32 %v6984_v2, %v1435_v49  ;;  %1614 = vadd.xlane.f32.xlu1 %v1613_v6 }
 0x2e2   :  { %v1585_v34 = vmul.f32 1.442695, %v1497_v31 }
 0x2e3   :  { %v1447_v28 = vpop.xlane.xlu0 %1446 }
 0x2e4   :  { %6238 = vpow2.f32 %v1585_v34 }
 0x2e6   :  { %v7440_v56 = vpop.eup %6236 }
 0x2e7   :  { %v1685_v21 = vsel %vm418_vm4, %v7440_v56, 0.0  ;;  %v1363_v24 = vpop.xlane.xlu0 %1362 }
 0x2e8   :  { %1686 = vadd.xlane.f32.xlu1 %v1685_v21  ;;  %v1521_v21 = vmul.f32 1.442695, %v1465_v14 }
 0x2eb   :  { %v7450_v49 = vpop.xlane.xlu0 %1410 }
 0x2ee   :  { %v7444_v25 = vpop.eup %6238 }
 0x2ef   :  { %8908 = vst [vmem:[#allocation28_spill] sm:$0xff] %v7444_v25  ;;  %v1721_v26 = vsel %vm418_vm4, %v7444_v25, 0.0  ;;  %v1390_v25 = vpop.xlane.xlu0 %1389 }
 0x2f0   :  { %1722 = vadd.xlane.f32.xlu1 %v1721_v26  ;;  %v1529_v26 = vmul.f32 1.442695, %v1469_v27 }
 0x2f8   :  { %v1375_v45 = vpop.xlane.xlu1 %1374 }
 0x2f9   :  { %v1477_v2 = vsub.f32 %v7052_v33, %v1375_v45 }
 0x2fb   :  { %v1545_v6 = vmul.f32 1.442695, %v1477_v2 }
 0x2fc   :  { %v1387_v31 = vpop.xlane.xlu1 %1386 }
 0x2fd   :  { %6240 = vpow2.f32 %v1545_v6  ;;  %v1481_v34 = vsub.f32 %v7064_v52, %v1387_v31  ;;  %v1501_v52 = vsub.f32 %v6998_v15, %v1447_v28 }
 0x2ff   :  { %v1553_v53 = vmul.f32 1.442695, %v1481_v34 }
 0x300   :  { %v1423_v61 = vpop.xlane.xlu1 %1422 }
 0x301   :  { %6242 = vpow2.f32 %v1553_v53  ;;  %v1493_v33 = vsub.f32 %v7077_v20, %v1423_v61  ;;  %v1426_v11 = vpop.xlane.xlu0 %1425  ;;  %v1593_v61 = vmul.f32 1.442695, %v1501_v52  ;;  %v1473_v20 = vsub.f32 %v7008_v32, %v1363_v24 }
 0x302   :  { %6244 = vpow2.f32 %v1521_v21 }
 0x303   :  { %6246 = vpow2.f32 %v1529_v26  ;;  %v1577_v14 = vmul.f32 1.442695, %v1493_v33  ;;  %v1537_v34 = vmul.f32 1.442695, %v1473_v20  ;;  %v1494_v20 = vsub.f32 %v7092_v8, %v1426_v11 }
 0x304   :  { %v1315_v45 = vpop.xlane.xlu1 %1314 }
 0x305   :  { %v1457_v3 = vsub.f32 %v7098_v18, %v1315_v45 }
 0x306   :  { %v1438_v18 = vpop.xlane.xlu0 %1437 }
 0x307   :  { %v7456_v2 = vpop.eup %6240  ;;  %v1505_v6 = vmul.f32 1.442695, %v1457_v3 }
 0x308   :  { %v1378_v47 = vpop.xlane.xlu1 %1377  ;;  %v1661_v16 = vsel %vm418_vm4, %v7456_v2, 0.0 }
 0x309   :  { %6248 = vpow2.f32 %v1505_v6  ;;  %1662 = vadd.xlane.f32.xlu0 %v1661_v16  ;;  %v1478_v21 = vsub.f32 %v7118_v36, %v1378_v47 }
 0x30a   :  { %6250 = vpow2.f32 %v1577_v14 }
 0x30b   :  { %v7461_v53 = vpop.eup %6242  ;;  %6252 = vpow2.f32 %v1593_v61  ;;  %v1366_v45 = vpop.xlane.xlu0 %1365  ;;  %v1547_v14 = vmul.f32 1.442695, %v1478_v21  ;;  %v1579_v21 = vmul.f32 1.442695, %v1494_v20 }
 0x30c   :  { %v1330_v27 = vpop.xlane.xlu1 %1329  ;;  %v1673_v31 = vsel %vm418_vm4, %v7461_v53, 0.0  ;;  %v7466_v15 = vpop.eup %6244 }
 0x30d   :  { %v1462_v28 = vsub.f32 %v7136_v12, %v1330_v27  ;;  %1674 = vadd.xlane.f32.xlu0 %v1673_v31  ;;  %v1625_v32 = vsel %vm418_vm4, %v7466_v15, 0.0  ;;  %v7472_v24 = vpop.eup %6246  ;;  %v1482_v12 = vsub.f32 %v7024_v1, %v1390_v25 }
 0x30e   :  { %v1637_v47 = vsel %vm418_vm4, %v7472_v24, 0.0 }
 0x30f   :  { %v1515_v26 = vmul.f32 1.442695, %v1462_v28  ;;  %v1555_v27 = vmul.f32 1.442695, %v1482_v12 }
 0x310   :  { %v1342_v33 = vpop.xlane.xlu1 %1341 }
 0x311   :  { %6254 = vpow2.f32 %v1515_v26  ;;  %v1466_v3 = vsub.f32 %v7154_v9, %v1342_v33  ;;  %1626 = vadd.xlane.f32.xlu0 %v1625_v32  ;;  %v1498_v26 = vsub.f32 %v7115_v54, %v1438_v18  ;;  %v1474_v18 = vsub.f32 %v7141_v37, %v1366_v45 }
 0x312   :  { %6256 = vpow2.f32 %v1537_v34 }
 0x313   :  { %v7475_v52 = vpop.eup %6248  ;;  %v1523_v6 = vmul.f32 1.442695, %v1466_v3  ;;  %v1587_v54 = vmul.f32 1.442695, %v1498_v26  ;;  %v1539_v37 = vmul.f32 1.442695, %v1474_v18 }
 0x314   :  { %v1402_v36 = vpop.xlane.xlu1 %1401  ;;  %v1601_v16 = vsel %vm418_vm4, %v7475_v52, 0.0  ;;  %v7482_v61 = vpop.eup %6250 }
 0x315   :  { %6258 = vpow2.f32 %v1523_v6  ;;  %1638 = vadd.xlane.f32.xlu0 %v1637_v47  ;;  %v1381_v9 = vpop.xlane.xlu0 %1380  ;;  %1602 = vadd.xlane.f32.xlu1 %v1601_v16  ;;  %v1486_v1 = vsub.f32 %v7177_v7, %v1402_v36  ;;  %v1709_v31 = vsel %vm418_vm4, %v7482_v61, 0.0  ;;  %v7488_v28 = vpop.eup %6252 }
 0x316   :  { %6260 = vpow2.f32 %v1547_v14  ;;  %v1733_v7 = vsel %vm418_vm4, %v7488_v28, 0.0  ;;  %v1479_v45 = vsub.f32 %v7185_v5, %v1381_v9 }
 0x317   :  { %6262 = vpow2.f32 %v1555_v27  ;;  %v1563_v8 = vmul.f32 1.442695, %v1486_v1 }
 0x318   :  { %v1354_v25 = vpop.xlane.xlu1 %1353 }
 0x319   :  { %v1470_v34 = vsub.f32 %v7189_v29, %v1354_v25  ;;  %1710 = vadd.xlane.f32.xlu0 %v1709_v31 }
 0x31a   :  { %v1333_v33 = vpop.xlane.xlu0 %1332 }
 0x31b   :  { %v7492_v32 = vpop.eup %6254  ;;  %v1531_v11 = vmul.f32 1.442695, %v1470_v34  ;;  %v1463_v47 = vsub.f32 %v7209_v40, %v1333_v33  ;;  %v1549_v33 = vmul.f32 1.442695, %v1479_v45 }
 0x31c   :  { %v1450_v3 = vpop.xlane.xlu1 %1449  ;;  %v1616_v12 = vsel %vm418_vm4, %v7492_v32, 0.0  ;;  %v7498_v14 = vpop.eup %6256 }
 0x31d   :  { %6264 = vpow2.f32 %v1531_v11  ;;  %v1502_v29 = vsub.f32 %v7212_v42, %v1450_v3  ;;  %1734 = vadd.xlane.f32.xlu0 %v1733_v7  ;;  %1617 = vadd.xlane.f32.xlu1 %v1616_v12  ;;  %v1649_v27 = vsel %vm418_vm4, %v7498_v14, 0.0  ;;  %v1517_v31 = vmul.f32 1.442695, %v1463_v47 }
 0x31e   :  { %6266 = vpow2.f32 %v1579_v21  ;;  %v1393_v6 = vpop.xlane.xlu0 %1392 }
 0x31f   :  { %v7502_v36 = vpop.eup %6258  ;;  %6268 = vpow2.f32 %v1563_v8  ;;  %v1595_v16 = vmul.f32 1.442695, %v1502_v29  ;;  %v1483_v8 = vsub.f32 %v7225_v38, %v1393_v6 }
 0x320   :  { %v7505_v20 = vpop.xlane.xlu1 %1317  ;;  %v1628_v42 = vsel %vm418_vm4, %v7502_v36, 0.0  ;;  %v7511_v1 = vpop.eup %6260  ;;  %6270 = vpow2.f32 %v1587_v54 }
 0x321   :  { %1650 = vadd.xlane.f32.xlu0 %v1649_v27  ;;  %1629 = vadd.xlane.f32.xlu1 %v1628_v42  ;;  %6272 = vpow2.f32 %v1595_v16  ;;  %v1664_v21 = vsel %vm418_vm4, %v7511_v1, 0.0  ;;  %v7517_v26 = vpop.eup %6262  ;;  %v1557_v38 = vmul.f32 1.442695, %v1483_v8 }
 0x322   :  { %v1345_v25 = vpop.xlane.xlu0 %1344  ;;  %6274 = vpow2.f32 %v1539_v37  ;;  %v1676_v12 = vsel %vm418_vm4, %v7517_v26, 0.0 }
 0x323   :  { %v1467_v40 = vsub.f32 %v7247_v51, %v1345_v25  ;;  %6276 = vpow2.f32 %v1517_v31 }
 0x324   :  { %v1357_v34 = vpop.xlane.xlu1 %1356  ;;  %6278 = vpow2.f32 %v1549_v33 }
 0x325   :  { %1665 = vadd.xlane.f32.xlu0 %v1664_v21  ;;  %v1525_v5 = vmul.f32 1.442695, %v1467_v40  ;;  %v1471_v9 = vsub.f32 %v7251_v0, %v1357_v34 }
 0x326   :  { %v1405_v11 = vpop.xlane.xlu0 %1404 }
 0x327   :  { %v7520_v3 = vpop.eup %6264  ;;  %v1487_v18 = vsub.f32 %v7259_v39, %v1405_v11  ;;  %6280 = vpow2.f32 %v1525_v5  ;;  %v1533_v0 = vmul.f32 1.442695, %v1471_v9 }
 0x328   :  { %v7523_v7 = vpop.eup %6266  ;;  %v1441_v51 = vpop.xlane.xlu1 %1440  ;;  %v1640_v29 = vsel %vm418_vm4, %v7520_v3, 0.0  ;;  %6282 = vpow2.f32 %v1557_v38 }
 0x329   :  { %v7529_v54 = vpop.eup %6268  ;;  %1677 = vadd.xlane.f32.xlu0 %v1676_v12  ;;  %1641 = vadd.xlane.f32.xlu1 %v1640_v29  ;;  %v1499_v47 = vsub.f32 %v7265_v23, %v1441_v51  ;;  %v1712_v42 = vsel %vm418_vm4, %v7523_v7, 0.0  ;;  %v1565_v45 = vmul.f32 1.442695, %v1487_v18  ;;  %6284 = vpow2.f32 %v1533_v0 }
 0x32a   :  { %v1429_v6 = vpop.xlane.xlu0 %1428  ;;  %v7533_v16 = vpop.eup %6270  ;;  %v1688_v27 = vsel %vm418_vm4, %v7529_v54, 0.0 }
 0x32b   :  { %v7539_v37 = vpop.eup %6272  ;;  %v1589_v39 = vmul.f32 1.442695, %v1499_v47  ;;  %v1495_v25 = vsub.f32 %v7276_v41, %v1429_v6  ;;  %v1724_v40 = vsel %vm418_vm4, %v7533_v16, 0.0  ;;  %6286 = vpow2.f32 %v1565_v45 }
 0x32c   :  { %v7542_v31 = vpop.eup %6274  ;;  %v1736_v34 = vsel %vm418_vm4, %v7539_v37, 0.0 }
 0x32d   :  { %1689 = vadd.xlane.f32.xlu0 %v1688_v27  ;;  %1713 = vadd.xlane.f32.xlu1 %v1712_v42  ;;  %v7548_v21 = vpop.eup %6276  ;;  %6288 = vpow2.f32 %v1589_v39  ;;  %v1581_v33 = vmul.f32 1.442695, %v1495_v25  ;;  %v1652_v5 = vsel %vm418_vm4, %v7542_v31, 0.0 }
 0x32e   :  { %v1453_v23 = vpop.xlane.xlu0 %1452  ;;  %v7553_v41 = vpop.eup %6278  ;;  %v1619_v9 = vsel %vm418_vm4, %v7548_v21, 0.0 }
 0x32f   :  { %v1503_v8 = vsub.f32 %v7290_v62, %v1453_v23  ;;  %6290 = vpow2.f32 %v1581_v33  ;;  %v1667_v62 = vsel %vm418_vm4, %v7553_v41, 0.0 }
 0x331   :  { %1725 = vadd.xlane.f32.xlu0 %v1724_v40  ;;  %1737 = vadd.xlane.f32.xlu1 %v1736_v34  ;;  %v7559_v51 = vpop.eup %6280  ;;  %v1597_v12 = vmul.f32 1.442695, %v1503_v8 }
 0x332   :  { %v7561_v29 = vpop.eup %6282  ;;  %v1631_v18 = vsel %vm418_vm4, %v7559_v51, 0.0  ;;  %v1369_v47 = vpop.xlane.xlu0 %1368 }
 0x333   :  { %v7551_v11 = vpop.xlane.xlu1 %1320  ;;  %v7567_v6 = vpop.eup %6284  ;;  %6292 = vpow2.f32 %v1597_v12  ;;  %v1679_v45 = vsel %vm418_vm4, %v7561_v29, 0.0 }
 0x334   :  { %v1643_v39 = vsel %vm418_vm4, %v7567_v6, 0.0 }
 0x335   :  { %1653 = vadd.xlane.f32.xlu0 %v1652_v5  ;;  %1620 = vadd.xlane.f32.xlu1 %v1619_v9  ;;  %v7570_v42 = vpop.eup %6286 }
 0x336   :  { %v1691_v34 = vsel %vm418_vm4, %v7570_v42, 0.0  ;;  %v1360_v5 = vpop.xlane.xlu0 %1359 }
 0x337   :  { %v7576_v25 = vpop.eup %6288 }
 0x338   :  { %v1384_v38 = vpop.xlane.xlu1 %1383  ;;  %v1727_v33 = vsel %vm418_vm4, %v7576_v25, 0.0 }
 0x339   :  { %v1480_v0 = vsub.f32 %v7327_v43, %v1384_v38  ;;  %1668 = vadd.xlane.f32.xlu0 %v1667_v62  ;;  %1632 = vadd.xlane.f32.xlu1 %v1631_v18  ;;  %v7583_v8 = vpop.eup %6290  ;;  %v1472_v38 = vsub.f32 %v7317_v19, %v1360_v5 }
 0x33a   :  { %v1715_v62 = vsel %vm418_vm4, %v7583_v8, 0.0 }
 0x33b   :  { %v1551_v27 = vmul.f32 1.442695, %v1480_v0 }
 0x33d   :  { %1680 = vadd.xlane.f32.xlu0 %v1679_v45  ;;  %1644 = vadd.xlane.f32.xlu1 %v1643_v39  ;;  %v1336_v23 = vpop.xlane.xlu1 %1335  ;;  %6294 = vpow2.f32 %v1551_v27  ;;  %v7589_v18 = vpop.eup %6292  ;;  %v1458_v45 = vsub.f32 %v7234_v30, %v7505_v20  ;;  %v1475_v39 = vsub.f32 %v7297_v13, %v1369_v47  ;;  %v1459_v30 = vsub.f32 %v7311_v58, %v7551_v11 }
 0x33e   :  { %v1464_v43 = vsub.f32 %v7342_v17, %v1336_v23  ;;  %v1535_v23 = vmul.f32 1.442695, %v1472_v38  ;;  %v1739_v19 = vsel %vm418_vm4, %v7589_v18, 0.0 }
 0x33f   :  { %v1541_v20 = vmul.f32 1.442695, %v1475_v39  ;;  %v1509_v58 = vmul.f32 1.442695, %v1459_v30 }
 0x340   :  { %v1519_v40 = vmul.f32 1.442695, %v1464_v43 }
 0x341   :  { %1692 = vadd.xlane.f32.xlu0 %v1691_v34  ;;  %1728 = vadd.xlane.f32.xlu1 %v1727_v33  ;;  %v1396_v9 = vpop.xlane.xlu1 %1395  ;;  %v1507_v33 = vmul.f32 1.442695, %v1458_v45 }
 0x342   :  { %6296 = vpow2.f32 %v1519_v40  ;;  %v1484_v12 = vsub.f32 %v7351_v46, %v1396_v9 }
 0x344   :  { %v1559_v17 = vmul.f32 1.442695, %v1484_v12  ;;  %v1444_v12 = vpop.xlane.xlu0 %1443 }
 0x345   :  { %1716 = vadd.xlane.f32.xlu0 %v1715_v62  ;;  %v1348_v0 = vpop.xlane.xlu1 %1347 }
 0x346   :  { %6298 = vpow2.f32 %v1559_v17  ;;  %v1468_v27 = vsub.f32 %v7364_v44, %v1348_v0  ;;  %v1489_v44 = vsub.f32 %v7018_v50, %v7450_v49  ;;  %v1500_v0 = vsub.f32 %v7329_v48, %v1444_v12 }
 0x347   :  { %v7597_v43 = vpop.eup %6294 }
 0x348   :  { %v1527_v46 = vmul.f32 1.442695, %v1468_v27  ;;  %v1670_v5 = vsel %vm418_vm4, %v7597_v43, 0.0  ;;  %v1569_v50 = vmul.f32 1.442695, %v1489_v44 }
 0x349   :  { %1740 = vadd.xlane.f32.xlu0 %v1739_v19  ;;  %v1408_v40 = vpop.xlane.xlu1 %1407 }
 0x34a   :  { %6300 = vpow2.f32 %v1527_v46  ;;  %v1488_v34 = vsub.f32 %v7373_v59, %v1408_v40 }
 0x34b   :  { %6302 = vpow2.f32 %v1535_v23 }
 0x34c   :  { %v7604_v13 = vpop.eup %6296  ;;  %v1567_v47 = vmul.f32 1.442695, %v1488_v34  ;;  %v1591_v34 = vmul.f32 1.442695, %v1500_v0 }
 0x34d   :  { %1671 = vadd.xlane.f32.xlu0 %v1670_v5  ;;  %v1414_v9 = vpop.xlane.xlu1 %1413  ;;  %v1622_v59 = vsel %vm418_vm4, %v7604_v13, 0.0 }
 0x34e   :  { %6304 = vpow2.f32 %v1567_v47  ;;  %1623 = vadd.xlane.f32.xlu1 %v1622_v59  ;;  %v1490_v11 = vsub.f32 %v7381_v10, %v1414_v9 }
 0x34f   :  { %6306 = vpow2.f32 %v1507_v33 }
 0x350   :  { %v7610_v49 = vpop.eup %6298  ;;  %6308 = vpow2.f32 %v1541_v20  ;;  %v1571_v27 = vmul.f32 1.442695, %v1490_v11 }
 0x351   :  { %v1417_v38 = vpop.xlane.xlu1 %1416  ;;  %v1682_v17 = vsel %vm418_vm4, %v7610_v49, 0.0  ;;  %6310 = vpow2.f32 %v1569_v50 }
 0x352   :  { %1683 = vadd.xlane.f32.xlu0 %v1682_v17  ;;  %6312 = vpow2.f32 %v1509_v58  ;;  %v1491_v19 = vsub.f32 %v7389_v35, %v1417_v38 }
 0x353   :  { %6314 = vpow2.f32 %v1571_v27 }
 0x354   :  { %v7615_v62 = vpop.eup %6300  ;;  %v1573_v5 = vmul.f32 1.442695, %v1491_v19 }
 0x355   :  { %v1432_v45 = vpop.xlane.xlu1 %1431  ;;  %v1634_v39 = vsel %vm418_vm4, %v7615_v62, 0.0  ;;  %v7620_v23 = vpop.eup %6302 }
 0x356   :  { %v1496_v10 = vsub.f32 %v7401_v22, %v1432_v45  ;;  %v1372_v46 = vpop.xlane.xlu0 %1371  ;;  %1635 = vadd.xlane.f32.xlu1 %v1634_v39  ;;  %v1646_v20 = vsel %vm418_vm4, %v7620_v23, 0.0 }
 0x357   :  { %v1476_v48 = vsub.f32 %v7411_v57, %v1372_v46 }
 0x358   :  { %v7624_v40 = vpop.eup %6304  ;;  %v1583_v44 = vmul.f32 1.442695, %v1496_v10 }
 0x359   :  { %v7627_v33 = vpop.eup %6306  ;;  %v1456_v30 = vpop.xlane.xlu1 %1455  ;;  %v1694_v22 = vsel %vm418_vm4, %v7624_v40, 0.0  ;;  %v1543_v9 = vmul.f32 1.442695, %v1476_v48 }
 0x35a   :  { %v7633_v47 = vpop.eup %6308  ;;  %6316 = vpow2.f32 %v1583_v44  ;;  %v1504_v35 = vsub.f32 %v7415_v55, %v1456_v30  ;;  %1647 = vadd.xlane.f32.xlu1 %v1646_v20  ;;  %1695 = vadd.xlane.f32.xlu0 %v1694_v22  ;;  %v1604_v58 = vsel %vm418_vm4, %v7627_v33, 0.0 }
 0x35b   :  { %6318 = vpow2.f32 %v1591_v34  ;;  %v7636_v59 = vpop.eup %6310  ;;  %v1655_v11 = vsel %vm418_vm4, %v7633_v47, 0.0 }
 0x35c   :  { %v1599_v57 = vmul.f32 1.442695, %v1504_v35  ;;  %v7642_v12 = vpop.eup %6312  ;;  %v1697_v0 = vsel %vm418_vm4, %v7636_v59, 0.0 }
 0x35d   :  { %v1324_v50 = vpop.xlane.xlu1 %1323  ;;  %v1607_v17 = vsel %vm418_vm4, %v7642_v12, 0.0  ;;  %v7649_v27 = vpop.eup %6314 }
 0x35e   :  { %6320 = vpow2.f32 %v1599_v57  ;;  %v1460_v55 = vsub.f32 %v7425_v63, %v1324_v50  ;;  %1605 = vadd.xlane.f32.xlu1 %v1604_v58  ;;  %1656 = vadd.xlane.f32.xlu0 %v1655_v11  ;;  %v1700_v63 = vsel %vm418_vm4, %v7649_v27, 0.0 }
 0x35f   :  { %6322 = vpow2.f32 %v1573_v5 }
 0x360   :  { %6324 = vpow2.f32 %v1543_v9  ;;  %v1511_v38 = vmul.f32 1.442695, %v1460_v55 }
 0x361   :  { %v1420_v5 = vpop.xlane.xlu1 %1419 }
 0x362   :  { %1608 = vadd.xlane.f32.xlu1 %v1607_v17  ;;  %1698 = vadd.xlane.f32.xlu0 %v1697_v0  ;;  %6326 = vpow2.f32 %v1511_v38 }
 0x364   :  { %v7651_v45 = vpop.eup %6316 }
 0x365   :  { %v1718_v39 = vsel %vm418_vm4, %v7651_v45, 0.0  ;;  %v7657_v10 = vpop.eup %6318 }
 0x366   :  { %1701 = vadd.xlane.f32.xlu0 %v1700_v63  ;;  %1719 = vadd.xlane.f32.xlu1 %v1718_v39  ;;  %v1730_v34 = vsel %vm418_vm4, %v7657_v10, 0.0 }
 0x368   :  { %v7659_v46 = vpop.eup %6320 }
 0x369   :  { %v7661_v19 = vpop.eup %6322  ;;  %v1742_v44 = vsel %vm418_vm4, %v7659_v46, 0.0 }
 0x36a   :  { %v7667_v48 = vpop.eup %6324  ;;  %1731 = vadd.xlane.f32.xlu0 %v1730_v34  ;;  %1743 = vadd.xlane.f32.xlu1 %v1742_v44  ;;  %v1703_v20 = vsel %vm418_vm4, %v7661_v19, 0.0 }
 0x36b   :  { %v1658_v30 = vsel %vm418_vm4, %v7667_v48, 0.0 }
 0x36c   :  { %v7673_v22 = vpop.eup %6326 }
 0x36d   :  { %v1610_v35 = vsel %vm418_vm4, %v7673_v22, 0.0  ;;  %v1615_v9 = vpop.xlane.xlu1 %1614 }
 0x36e   :  { %1659 = vadd.xlane.f32.xlu0 %v1658_v30  ;;  %1704 = vadd.xlane.f32.xlu1 %v1703_v20  ;;  %6328 = vrcp.f32 %v1615_v9 }
 0x372   :  { %1611 = vadd.xlane.f32.xlu1 %v1610_v35 }
 0x375   :  { %v1687_v58 = vpop.xlane.xlu1 %1686 }
 0x378   :  { %v6329_v55 = vpop.eup %6328 }
 0x379   :  { %v1797_v0 = vmul.f32 %v6329_v55, %v7435_v4 }
 0x37d   :  { %v7679_v39 = vpop.xlane.xlu1 %1722 }
 0x396   :  { %v1663_v57 = vpop.xlane.xlu0 %1662 }
 0x397   :  { %6330 = vrcp.f32 %v1663_v57 }
 0x39a   :  { %v1675_v50 = vpop.xlane.xlu0 %1674 }
 0x39b   :  { %6332 = vrcp.f32 %v1675_v50 }
 0x39e   :  { %v1627_v11 = vpop.xlane.xlu0 %1626 }
 0x39f   :  { %6334 = vrcp.f32 %v1627_v11 }
 0x3a0   :  { %6336 = vrcp.f32 %v1687_v58 }
 0x3a1   :  { %v6331_v38 = vpop.eup %6330 }
 0x3a2   :  { %v1639_v17 = vpop.xlane.xlu0 %1638  ;;  %v1813_v63 = vmul.f32 %v6331_v38, %v7456_v2  ;;  %v7684_v20 = vpop.xlane.xlu1 %1602 }
 0x3a3   :  { %6338 = vrcp.f32 %v1639_v17 }
 0x3a4   :  { %v6149_v34 = vpack.i.bf16 %v1797_v0, %v1813_v63 }
 0x3a5   :  { %v6333_v30 = vpop.eup %6332 }
 0x3a6   :  { %v7681_v44 = vpop.xlane.xlu0 %1710  ;;  %6150 = vrot.lane.b32.xlu1 %v6149_v34, %s6531_s21  ;;  %v1817_v4 = vmul.f32 %v6333_v30, %v7461_v53  ;;  %v1492_v30 = vsub.f32 %v7430_v60, %v1420_v5 }
 0x3a9   :  { %v6335_v35 = vpop.eup %6334 }
 0x3aa   :  { %v7686_v9 = vpop.xlane.xlu0 %1734  ;;  %v1801_v57 = vmul.f32 %v6335_v35, %v7466_v15  ;;  %v6337_v2 = vpop.eup %6336 }
 0x3ab   :  { %v1618_v50 = vpop.xlane.xlu1 %1617  ;;  %v1821_v17 = vmul.f32 %v6337_v2, %v7440_v56 }
 0x3ac   :  { %v6154_v58 = vpack.i.bf16 %v1801_v57, %v1817_v4  ;;  %6340 = vrcp.f32 %v1618_v50 }
 0x3ad   :  { %v6339_v11 = vpop.eup %6338 }
 0x3ae   :  { %v7690_v55 = vpop.xlane.xlu0 %1650  ;;  %6155 = vrot.lane.b32.xlu0 %v6154_v58, %s6532_s22  ;;  %v1805_v38 = vmul.f32 %v6339_v11, %v7472_v24  ;;  %v1575_v24 = vmul.f32 1.442695, %v1492_v30 }
 0x3af   :  { %v1630_v63 = vpop.xlane.xlu1 %1629 }
 0x3b0   :  { %v6159_v0 = vpack.i.bf16 %v1805_v38, %v1821_v17 }
 0x3b2   :  { %v1666_v34 = vpop.xlane.xlu0 %1665  ;;  %6160 = vrot.lane.b32.xlu1 %v6159_v0, %s6533_s23 }
 0x3b3   :  { %6342 = vrcp.f32 %v1666_v34 }
 0x3b6   :  { %v1678_v53 = vpop.xlane.xlu0 %1677  ;;  %v1642_v15 = vpop.xlane.xlu1 %1641 }
 0x3b7   :  { %6344 = vrcp.f32 %v1642_v15  ;;  %v6341_v4 = vpop.eup %6340 }
 0x3b8   :  { %v1798_v58 = vmul.f32 %v6341_v4, %v7492_v32 }
 0x3ba   :  { %v1690_v35 = vpop.xlane.xlu0 %1689  ;;  %v7697_v57 = vpop.xlane.xlu1 %1713 }
 0x3bb   :  { %6346 = vrcp.f32 %v1690_v35 }
 0x3bc   :  { %6348 = vpow2.f32 %v1575_v24 }
 0x3bd   :  { %v6343_v56 = vpop.eup %6342 }
 0x3be   :  { %v7699_v2 = vpop.xlane.xlu0 %1725  ;;  %v7701_v50 = vpop.xlane.xlu1 %1737  ;;  %v1814_v11 = vmul.f32 %v6343_v56, %v7511_v1 }
 0x3c0   :  { %v6164_v38 = vpack.i.bf16 %v1798_v58, %v1814_v11 }
 0x3c1   :  { %v6345_v5 = vpop.eup %6344 }
 0x3c2   :  { %v7705_v17 = vpop.xlane.xlu0 %1653  ;;  %6165 = vrot.lane.b32.xlu1 %v6164_v38, %s6531_s21  ;;  %v1621_v60 = vpop.xlane.xlu1 %1620  ;;  %v1806_v30 = vmul.f32 %v6345_v5, %v7520_v3 }
 0x3c3   :  { %6350 = vrcp.f32 %v1621_v60 }
 0x3c5   :  { %v6347_v0 = vpop.eup %6346 }
 0x3c6   :  { %v1669_v34 = vpop.xlane.xlu0 %1668  ;;  %v1633_v15 = vpop.xlane.xlu1 %1632  ;;  %v1822_v35 = vmul.f32 %v6347_v0, %v7529_v54 }
 0x3c7   :  { %6352 = vrcp.f32 %v1669_v34  ;;  %v7710_v4 = vpop.eup %6348 }
 0x3c8   :  { %v6174_v32 = vpack.i.bf16 %v1806_v30, %v1822_v35  ;;  %v1706_v56 = vsel %vm418_vm4, %v7710_v4, 0.0 }
 0x3ca   :  { %v1681_v1 = vpop.xlane.xlu0 %1680  ;;  %6175 = vrot.lane.b32.xlu1 %v6174_v32, %s6533_s23  ;;  %v1645_v24 = vpop.xlane.xlu1 %1644 }
 0x3cb   :  { %6354 = vrcp.f32 %v1645_v24 }
 0x3cd   :  { %1707 = vadd.xlane.f32.xlu0 %v1706_v56  ;;  %v6351_v11 = vpop.eup %6350 }
 0x3ce   :  { %v1693_v58 = vpop.xlane.xlu0 %1692  ;;  %v1799_v38 = vmul.f32 %v6351_v11, %v7548_v21  ;;  %v1729_v30 = vpop.xlane.xlu1 %1728 }
 0x3cf   :  { %6356 = vrcp.f32 %v1693_v58 }
 0x3d0   :  { %6358 = vrcp.f32 %v1678_v53 }
 0x3d1   :  { %v6353_v3 = vpop.eup %6352  ;;  %6360 = vrcp.f32 %v1630_v63 }
 0x3d2   :  { %v7715_v54 = vpop.xlane.xlu0 %1716  ;;  %v1815_v60 = vmul.f32 %v6353_v3, %v7553_v41  ;;  %6362 = vrcp.f32 %v1681_v1 }
 0x3d3   :  { %6364 = vrcp.f32 %v1633_v15 }
 0x3d4   :  { %v6179_v5 = vpack.i.bf16 %v1799_v38, %v1815_v60 }
 0x3d5   :  { %v6355_v34 = vpop.eup %6354 }
 0x3d6   :  { %v7719_v0 = vpop.xlane.xlu0 %1740  ;;  %6180 = vrot.lane.b32.xlu1 %v6179_v5, %s6531_s21  ;;  %v1807_v63 = vmul.f32 %v6355_v34, %v7567_v6 }
 0x3d9   :  { %v6357_v35 = vpop.eup %6356 }
 0x3da   :  { %v6359_v32 = vpop.eup %6358  ;;  %v1672_v53 = vpop.xlane.xlu0 %1671  ;;  %v1823_v24 = vmul.f32 %v6357_v35, %v7570_v42 }
 0x3db   :  { %6366 = vrcp.f32 %v1672_v53  ;;  %v1624_v21 = vpop.xlane.xlu1 %1623  ;;  %v6361_v56 = vpop.eup %6360  ;;  %v1818_v15 = vmul.f32 %v6359_v32, %v7517_v26 }
 0x3dc   :  { %6368 = vrcp.f32 %v1624_v21  ;;  %v6189_v41 = vpack.i.bf16 %v1807_v63, %v1823_v24  ;;  %v6363_v1 = vpop.eup %6362  ;;  %v1802_v11 = vmul.f32 %v6361_v56, %v7502_v36 }
 0x3dd   :  { %v6365_v3 = vpop.eup %6364  ;;  %v1819_v60 = vmul.f32 %v6363_v1, %v7561_v29 }
 0x3de   :  { %6190 = vrot.lane.b32.xlu1 %v6189_v41, %s6533_s23  ;;  %v6169_v38 = vpack.i.bf16 %v1802_v11, %v1818_v15  ;;  %v1803_v42 = vmul.f32 %v6365_v3, %v7559_v51 }
 0x3df   :  { %v1684_v58 = vpop.xlane.xlu0 %1683 }
 0x3e0   :  { %6370 = vrcp.f32 %v1684_v58  ;;  %v6184_v5 = vpack.i.bf16 %v1803_v42, %v1819_v60 }
 0x3e1   :  { %6372 = vrcp.f32 %v7697_v57 }
 0x3e3   :  { %6170 = vrot.lane.b32.xlu0 %v6169_v38, %s6532_s22  ;;  %v1636_v6 = vpop.xlane.xlu1 %1635 }
 0x3e4   :  { %6374 = vrcp.f32 %v1636_v6 }
 0x3e5   :  { %v6367_v26 = vpop.eup %6366  ;;  %6376 = vrcp.f32 %v7681_v44 }
 0x3e6   :  { %v6369_v34 = vpop.eup %6368  ;;  %6378 = vrcp.f32 %v7699_v2  ;;  %v1816_v36 = vmul.f32 %v6367_v26, %v7597_v43 }
 0x3e7   :  { %6380 = vrcp.f32 %v7701_v50  ;;  %v1696_v29 = vpop.xlane.xlu0 %1695  ;;  %6185 = vrot.lane.b32.xlu0 %v6184_v5, %s6532_s22  ;;  %v1648_v57 = vpop.xlane.xlu1 %1647  ;;  %v1800_v35 = vmul.f32 %v6369_v34, %v7604_v13 }
 0x3e8   :  { %6382 = vrcp.f32 %v1696_v29 }
 0x3e9   :  { %6384 = vrcp.f32 %v1648_v57  ;;  %v6194_v51 = vpack.i.bf16 %v1800_v35, %v1816_v36 }
 0x3ea   :  { %6386 = vrcp.f32 %v7686_v9  ;;  %v6371_v2 = vpop.eup %6370 }
 0x3eb   :  { %6388 = vrcp.f32 %v7679_v39  ;;  %v7739_v44 = vpop.xlane.xlu0 %1656  ;;  %6195 = vrot.lane.b32.xlu0 %v6194_v51, %s6531_s21  ;;  %v7742_v43 = vpop.xlane.xlu1 %1605  ;;  %v1820_v9 = vmul.f32 %v6371_v2, %v7610_v49 }
 0x3ec   :  { %v6373_v50 = vpop.eup %6372  ;;  %6390 = vrcp.f32 %v1729_v30 }
 0x3ed   :  { %6392 = vrcp.f32 %v7715_v54  ;;  %v1830_v41 = vmul.f32 %v6373_v50, %v7523_v7 }
 0x3ee   :  { %v6375_v32 = vpop.eup %6374  ;;  %6394 = vrcp.f32 %v7719_v0 }
 0x3ef   :  { %v6377_v53 = vpop.eup %6376  ;;  %v7744_v63 = vpop.xlane.xlu0 %1698  ;;  %v1804_v24 = vmul.f32 %v6375_v32, %v7615_v62 }
 0x3f0   :  { %v7746_v13 = vpop.xlane.xlu1 %1608  ;;  %v6379_v21 = vpop.eup %6378  ;;  %v1829_v3 = vmul.f32 %v6377_v53, %v7482_v61 }
 0x3f1   :  { %v6381_v39 = vpop.eup %6380  ;;  %v6199_v56 = vpack.i.bf16 %v1804_v24, %v1820_v9  ;;  %v1834_v6 = vmul.f32 %v6379_v21, %v7533_v16 }
 0x3f2   :  { %v6383_v15 = vpop.eup %6382  ;;  %v6204_v38 = vpack.i.bf16 %v1830_v41, %v1829_v3  ;;  %v1838_v7 = vmul.f32 %v6381_v39, %v7539_v37 }
 0x3f3   :  { %v6385_v1 = vpop.eup %6384  ;;  %v7752_v58 = vpop.xlane.xlu0 %1701  ;;  %6200 = vrot.lane.b32.xlu1 %v6199_v56, %s6532_s22  ;;  %v1824_v62 = vmul.f32 %v6383_v15, %v7624_v40  ;;  %v8909_v40 = vld [vmem:[#allocation28_spill] sm:$0xff] }
 0x3f4   :  { %v1720_v11 = vpop.xlane.xlu1 %1719  ;;  %v6387_v49 = vpop.eup %6386  ;;  %v1808_v30 = vmul.f32 %v6385_v1, %v7620_v23 }
 0x3f5   :  { %v6389_v54 = vpop.eup %6388  ;;  %6396 = vrcp.f32 %v1720_v11  ;;  %v1837_v61 = vmul.f32 %v6387_v49, %v7488_v28  ;;  %v8910_v49 = vld [vmem:[#allocation11_spill] sm:$0xff] }
 0x3f6   :  { %v6209_v60 = vpack.i.bf16 %v1808_v30, %v1824_v62  ;;  %v1833_v0 = vmul.f32 %v6389_v54, %v8909_v40  ;;  %v6391_v5 = vpop.eup %6390  ;;  %vm2271_vm1 = vcmp.ge.s32.totalorder %v8910_v49, 216  ;;  %vm2274_vm12 = vcmp.lt.s32.totalorder %v8910_v49, 240 }
 0x3f7   :  { %v1732_v42 = vpop.xlane.xlu0 %1731  ;;  %6205 = vrot.lane.b32.xlu1 %v6204_v38, %s6531_s21  ;;  %v6219_v23 = vpack.i.bf16 %v1838_v7, %v1837_v61  ;;  %v6393_v36 = vpop.eup %6392  ;;  %v1835_v16 = vmul.f32 %v6391_v5, %v7576_v25  ;;  %vm7797_vm0 = vmand %vm2271_vm1, %vm2274_vm12  ;;  %v8913_v54 = vmov 0.0|0.0   ;;  %v8914_v38 = vld [vmem:[#allocation9_spill] sm:$0xff]  ;;  %vm2298_vm13 = vcmp.ge.s32.totalorder %v8910_v49, 240  ;;  %v8919_v61 = vld [vmem:[#allocation8_spill] sm:$0xff] }
 0x3f8   :  { %v1744_v26 = vpop.xlane.xlu1 %1743  ;;  %6398 = vrcp.f32 %v1732_v42  ;;  %6210 = vrot.lane.b32.xlu0 %v6209_v60, %s6533_s23  ;;  %v6214_v34 = vpack.i.bf16 %v1834_v6, %v1833_v0  ;;  %v6395_v37 = vpop.eup %6394  ;;  %v1831_v29 = vmul.f32 %v6393_v36, %v7583_v8  ;;  %vm5811_vm1 = vmpackc.low %vm7797_vm0, %vm7797_vm0  ;;  %v8916_v60 = vld [vmem:[#allocation10_spill] sm:$0xff]  ;;  %v8917_v42 = vld [vmem:[#allocation7_spill] sm:$0xff] }
 0x3f9   :  { %6400 = vrcp.f32 %v1744_v26  ;;  %v1839_v51 = vmul.f32 %v6395_v37, %v7589_v18  ;;  %v7814_v6 = vadd.s32 256, %v8916_v60  ;;  %vm5819_vm12 = vmpackc.low %vm2298_vm13, %vm2298_vm13  ;;  %v8918_v26 = vld [vmem:[#allocation6_spill] sm:$0xff]  ;;  %v97_v49 = vld [vmem:[%s8816_s2 + $0x58] sm:$0x38] }
 0x3fa   :  { %6402 = vrcp.f32 %v7684_v20  ;;  %vm8274_vm13 = vmpackc.low %vm2111_vm2, %vm2111_vm2 }
 0x3fb   :  { %6220 = vrot.lane.b32.xlu1 %v6219_v23, %s6533_s23  ;;  %6404 = vrcp.f32 %v7690_v55  ;;  %vm2326_vm3 = vcmp.ge.s32.totalorder %v7814_v6, 264  ;;  %vm2329_vm6 = vcmp.lt.s32.totalorder %v7814_v6, 288  ;;  %vm5959_vm2 = vmpackc.low %vm2220_vm8, %vm2220_vm8 }
 0x3fc   :  { %6215 = vrot.lane.b32.xlu0 %v6214_v34, %s6532_s22  ;;  %v7779_v8 = vpop.xlane.xlu1 %1704  ;;  %vm2332_vm15 = vmand %vm2326_vm3, %vm2329_vm6  ;;  %6406 = vrcp.f32 %v7705_v17  ;;  %vm3344_vm3 = vcmask 392192  }
 0x3fd   :  { %6408 = vrcp.f32 %v7742_v43  ;;  %vm5971_vm8 = vmpackc.low %vm2244_vm11, %vm2244_vm11 }
 0x3fe   :  { %6410 = vrcp.f32 %v7739_v44 }
 0x3ff   :  { %v6397_v28 = vpop.eup %6396  ;;  %1961 = vrot.lane.b32.xlu1 %v1835_v16, %s6532_s22  ;;  %6412 = vrcp.f32 %v7746_v13 }
 0x400   :  { %1945 = vrot.lane.b32.xlu0 %v1831_v29, %s6531_s21  ;;  %v1832_v57 = vmul.f32 %v6397_v28, %v7651_v45  ;;  %v7783_v18 = vpop.xlane.xlu1 %1611  ;;  %v7785_v45 = vpop.xlane.xlu0 %1659 }
 0x401   :  { %6414 = vrcp.f32 %v7785_v45 }
 0x402   :  { %v6399_v35 = vpop.eup %6398  ;;  %6416 = vrcp.f32 %v7783_v18 }
 0x403   :  { %v6401_v2 = vpop.eup %6400  ;;  %1947 = vrot.lane.b32.xlu1 %v1832_v57, %s6531_s21  ;;  %v1836_v50 = vmul.f32 %v6399_v35, %v7657_v10  ;;  %6418 = vrcp.f32 %v7744_v63 }
 0x404   :  { %1977 = vrot.lane.b32.xlu0 %v1839_v51, %s6533_s23  ;;  %v1840_v25 = vmul.f32 %v6401_v2, %v7659_v46  ;;  %v6403_v53 = vpop.eup %6402  ;;  %6420 = vrcp.f32 %v7752_v58 }
 0x405   :  { %v6405_v24 = vpop.eup %6404  ;;  %v1793_v56 = vmul.f32 %v6403_v53, %v7475_v52  ;;  %6422 = vrcp.f32 %v7779_v8 }
 0x406   :  { %v1809_v41 = vmul.f32 %v6405_v24, %v7498_v14  ;;  %v6407_v0 = vpop.eup %6406 }
 0x407   :  { %1979 = vrot.lane.b32.xlu1 %v1840_v25, %s6533_s23  ;;  %v6409_v5 = vpop.eup %6408  ;;  %v1810_v17 = vmul.f32 %v6407_v0, %v7542_v31  ;;  %s6536_s23 = smov [#allocation2]  }
 0x408   :  { %1963 = vrot.lane.b32.xlu0 %v1836_v50, %s6532_s22  ;;  %v1794_v43 = vmul.f32 %v6409_v5, %v7627_v33  ;;  %v6411_v29 = vpop.eup %6410  ;;  %s5096_s24 = sshll.u32 %s6536_s23, 4  ;;  %s5097_s24 = int_to_ptr.vmem [resolvable:$true] %s5096_s24 }
 0x409   :  { %v6413_v13 = vpop.eup %6412  ;;  %v1811_v24 = vmul.f32 %v6411_v29, %v7633_v47  ;;  %s6492_s25 = scalar_lea.vmem %s5097_s24, 32  ;;  %p6497_p1 = scmp.lt.s32.totalorder %s5097_s24, %s5097_s24 }
 0x40a   :  { %p6493_p0 = scmp.ne.s32.totalorder %s5097_s24, %s6492_s25  ;;  %p6498_p2 = scmp.lt.s32.totalorder %s6492_s25, %s6492_s25 }
 0x40c   :  { %p6499_p3 = por %p6498_p2, %p6497_p1 }
 0x40e   :  { %p6500_p4 = pnand %p6499_p3, %p6493_p0 }
 0x418   :  { %v6151_v32 = vpop.permute.xlu1 %6150 }
 0x419   :  { %v6153_v9 = vunpack.i.h.bf16 %v6151_v32  ;;  %v6152_v10 = vunpack.i.l.bf16 %v6151_v32 }
 0x41b   :  { %v1985_v55 = vsel %vm418_vm4, %v1793_v56, %v6153_v9  ;;  %v1999_v11 = vsel %vm418_vm4, %v1809_v41, %v6152_v10  ;;  %v6415_v9 = vpop.eup %6414 }
 0x41c   :  { %v6417_v58 = vpop.eup %6416 }
 0x420   :  { %v6156_v46 = vpop.permute.xlu0 %6155 }
 0x421   :  { %v6158_v21 = vunpack.i.h.bf16 %v6156_v46  ;;  %v6157_v39 = vunpack.i.l.bf16 %v6156_v46  ;;  %v1795_v46 = vmul.f32 %v6413_v13, %v7642_v12 }
 0x423   :  { %v1990_v3 = vsel %vm1989_vm9, %v1985_v55, %v6158_v21  ;;  %v2003_v62 = vsel %vm1989_vm9, %v1999_v11, %v6157_v39 }
 0x424   :  { %v6161_v20 = vpop.permute.xlu1 %6160 }
 0x425   :  { %v6163_v15 = vunpack.i.h.bf16 %v6161_v20  ;;  %v6162_v1 = vunpack.i.l.bf16 %v6161_v20 }
 0x427   :  { %v2007_v52 = vsel %vm1994_vm10, %v2003_v62, %v6162_v1  ;;  %v1995_v14 = vsel %vm1994_vm10, %v1990_v3, %v6163_v15  ;;  %v1812_v62 = vmul.f32 %v6415_v9, %v7667_v48 }
 0x428   :  { %2431 = vmatprep.mubr.f32.mxu1 %v2007_v52  ;;  %2609 = vmatprep.mubr.f32.mxu0 %v2007_v52  ;;  %v1796_v52 = vmul.f32 %v6417_v58, %v7673_v22 }
 0x429   :  { %2432 = vmatmul.mubr.f32.vlgmr.msra.gmra.mrb[16].mxu1 %v1995_v14  ;;  %2610 = vmatmul.mubr.f32.vlgmr.msra.gmra.mrb[14].mxu0 %v1995_v14  ;;  %v6419_v14 = vpop.eup %6418 }
 0x42a   :  { %5805 = vmatpush1.bf16.msra.mxu1 %v8913_v54  ;;  %5827 = vmatpush3.bf16.msra.mxu0 %v8913_v54  ;;  %v1825_v29 = vmul.f32 %v6419_v14, %v7636_v59  ;;  %v166_v14 = vld [vmem:[%s8818_s4 + $0xa8] sm:$0xff] }
 0x42b   :  { %5808 = vmatprep.subr.msk.bf16.mxu1 %vm5803_vm14, %v8914_v38  ;;  %5828 = vmatprep.subr.bf16.mxu0 %v8913_v54  ;;  %vm2302_vm14 = vcmp.lt.s32.totalorder %v7814_v6, 264 }
 0x42c   :  { %vm5835_vm0 = vmpackc.low %vm2302_vm14, %vm2302_vm14 }
 0x42d   :  { %vm5962_vm14 = vmpackc.low %vm2135_vm7, %vm2135_vm7  ;;  %vm6535_vm7 = vmmov 0  }
 0x42e   :  { %5809 = vmatpush1.bf16.msra.mxu1 %v8913_v54  ;;  %5829 = vmatpush3.bf16.msra.mxu0 %v8913_v54 }
 0x42f   :  { %5812 = vmatprep.subr.msk.bf16.mxu1 %vm5811_vm1, %v8917_v42  ;;  %5830 = vmatprep.subr.bf16.mxu0 %v8913_v54 }
 0x432   :  { %5813 = vmatpush1.bf16.msra.mxu1 %v8913_v54  ;;  %5831 = vmatpush3.bf16.msra.mxu0 %v8913_v54 }
 0x433   :  { %5816 = vmatprep.subr.msk.bf16.mxu1 %vm5811_vm1, %v8914_v38  ;;  %5832 = vmatprep.subr.bf16.mxu0 %v8913_v54  ;;  %vm5847_vm1 = vmpackc.low %vm2332_vm15, %vm2332_vm15  ;;  %vm3085_vm15 = vcmask 195584  }
 0x434   :  { %v6166_v40 = vpop.permute.xlu1 %6165 }
 0x435   :  { %v6168_v36 = vunpack.i.h.bf16 %v6166_v40  ;;  %v6167_v16 = vunpack.i.l.bf16 %v6166_v40  ;;  %v6421_v40 = vpop.eup %6420 }
 0x436   :  { %5817 = vmatpush1.bf16.msra.mxu1 %v8913_v54  ;;  %5833 = vmatpush3.bf16.msra.mxu0 %v8913_v54 }
 0x437   :  { %5820 = vmatprep.subr.msk.bf16.mxu1 %vm5819_vm12, %v8917_v42  ;;  %5836 = vmatprep.subr.msk.bf16.mxu0 %vm5835_vm0, %v8918_v26  ;;  %v2000_v35 = vsel %vm418_vm4, %v1810_v17, %v6167_v16  ;;  %v1986_v51 = vsel %vm418_vm4, %v1794_v43, %v6168_v36  ;;  %v6423_v16 = vpop.eup %6422 }
 0x43a   :  { %5821 = vmatpush1.bf16.msra.mxu1 %v8913_v54  ;;  %5839 = vmatpush3.bf16.msk.msra.mxu0 %vm5835_vm0, %v8918_v26 }
 0x43b   :  { %5824 = vmatprep.subr.msk.bf16.mxu1 %vm5819_vm12, %v8914_v38  ;;  %5842 = vmatprep.subr.msk.bf16.mxu0 %vm5835_vm0, %v8919_v61 }
 0x43c   :  { %v6176_v23 = vpop.permute.xlu1 %6175 }
 0x43d   :  { %v6178_v2 = vunpack.i.h.bf16 %v6176_v23  ;;  %v6177_v25 = vunpack.i.l.bf16 %v6176_v23 }
 0x43e   :  { %5845 = vmatpush3.bf16.msk.msra.mxu0 %vm5835_vm0, %v8919_v61  ;;  %5825 = vmatpush1.bf16.msra.mxu1 %v8913_v54 }
 0x43f   :  { %5848 = vmatprep.subr.msk.bf16.mxu0 %vm5847_vm1, %v8918_v26 }
 0x442   :  { %5851 = vmatpush3.bf16.msk.msra.mxu0 %vm5847_vm1, %v8918_v26 }
 0x443   :  { %5854 = vmatprep.subr.msk.bf16.mxu0 %vm5847_vm1, %v8919_v61 }
 0x446   :  { %5857 = vmatpush3.bf16.msk.msra.mxu0 %vm5847_vm1, %v8919_v61 }
 0x448   :  { %v6181_v37 = vpop.permute.xlu1 %6180 }
 0x449   :  { %v6183_v50 = vunpack.i.h.bf16 %v6181_v37  ;;  %v6182_v18 = vunpack.i.l.bf16 %v6181_v37 }
 0x44b   :  { %v2001_v41 = vsel %vm418_vm4, %v1811_v24, %v6182_v18  ;;  %v1987_v20 = vsel %vm418_vm4, %v1795_v46, %v6183_v50  ;;  %v1827_v18 = vmul.f32 %v6423_v16, %v7661_v19  ;;  %v153_v16 = vld [vmem:[%s8818_s4 + $0x40] sm:$0xff] }
 0x450   :  { %v6191_v31 = vpop.permute.xlu1 %6190 }
 0x451   :  { %v6193_v39 = vunpack.i.h.bf16 %v6191_v31  ;;  %v6192_v56 = vunpack.i.l.bf16 %v6191_v31 }
 0x45a   :  { %v1708_v34 = vpop.xlane.xlu0 %1707 }
 0x45b   :  { %6424 = vrcp.f32 %v1708_v34 }
 0x45e   :  { %v6171_v44 = vpop.permute.xlu0 %6170 }
 0x45f   :  { %v6173_v28 = vunpack.i.h.bf16 %v6171_v44  ;;  %v6172_v57 = vunpack.i.l.bf16 %v6171_v44  ;;  %v1826_v44 = vmul.f32 %v6421_v40, %v7649_v27 }
 0x461   :  { %v2004_v33 = vsel %vm1989_vm9, %v2000_v35, %v6172_v57  ;;  %v1991_v45 = vsel %vm1989_vm9, %v1986_v51, %v6173_v28 }
 0x462   :  { %v6186_v63 = vpop.permute.xlu0 %6185  ;;  %v2008_v32 = vsel %vm1994_vm10, %v2004_v33, %v6177_v25  ;;  %v1996_v53 = vsel %vm1994_vm10, %v1991_v45, %v6178_v2  ;;  %v8920_v25 = vmov 0.0  }
 0x463   :  { %v6188_v10 = vunpack.i.h.bf16 %v6186_v63  ;;  %v6187_v21 = vunpack.i.l.bf16 %v6186_v63  ;;  %2437 = vmatprep.mubr.f32.mxu1 %v2008_v32  ;;  %2614 = vmatprep.mubr.f32.mxu0 %v2008_v32 }
 0x464   :  { %2438 = vmatmul.mubr.f32.gmra.mrb[18].mxu1 %v1996_v53  ;;  %2615 = vmatmul.mubr.f32.gmra.mrb[16].mxu0 %v1996_v53 }
 0x465   :  { %v6201_v55 = vpop.permute.xlu1 %6200  ;;  %v2005_v47 = vsel %vm1989_vm9, %v2001_v41, %v6187_v21  ;;  %v1992_v12 = vsel %vm1989_vm9, %v1987_v20, %v6188_v10  ;;  %v6425_v32 = vpop.eup %6424  ;;  %v162_v41 = vld [vmem:[%s8818_s4 + $0x88] sm:$0xff] }
 0x466   :  { %v6196_v15 = vpop.permute.xlu0 %6195  ;;  %v2009_v8 = vsel %vm1994_vm10, %v2005_v47, %v6192_v56  ;;  %v1997_v1 = vsel %vm1994_vm10, %v1992_v12, %v6193_v39  ;;  %v6203_v42 = vunpack.i.h.bf16 %v6201_v55  ;;  %v6202_v26 = vunpack.i.l.bf16 %v6201_v55  ;;  %v145_v55 = vld [vmem:[%s8818_s4] sm:$0xff]  ;;  %v146_v47 = vld [vmem:[%s8818_s4 + $0x8] sm:$0xff] }
 0x467   :  { %v6198_v11 = vunpack.i.h.bf16 %v6196_v15  ;;  %v6197_v3 = vunpack.i.l.bf16 %v6196_v15  ;;  %2443 = vmatprep.mubr.f32.mxu1 %v2009_v8  ;;  %2619 = vmatprep.mubr.f32.mxu0 %v2009_v8  ;;  %v1828_v9 = vmul.f32 %v6425_v32, %v7710_v4  ;;  %v161_v4 = vld [vmem:[%s8818_s4 + $0x80] sm:$0xff]  ;;  %v5860_v12 = vpack.c.bf16 %v146_v47, %v145_v55  ;;  %v163_v15 = vld [vmem:[%s8818_s4 + $0x90] sm:$0xff]  ;;  %v164_v8 = vld [vmem:[%s8818_s4 + $0x98] sm:$0xff] }
 0x468   :  { %2444 = vmatmul.mubr.f32.gmra.mrb[20].mxu1 %v1997_v1  ;;  %2620 = vmatmul.mubr.f32.gmra.mrb[18].mxu0 %v1997_v1  ;;  %v5858_v20 = vpack.c.bf16 %v162_v41, %v161_v4  ;;  %v5862_v1 = vpack.c.bf16 %v164_v8, %v163_v15  ;;  %v160_v32 = vld [vmem:[%s8818_s4 + $0x78] sm:$0xff]  ;;  %v8921_v4 = vld [vmem:[#allocation13_spill] sm:$0xff]  ;;  %v8923_v8 = vld [vmem:[#allocation14_spill] sm:$0xff] }
 0x469   :  { %v6206_v30 = vpop.permute.xlu1 %6205  ;;  %v2002_v38 = vsel %vm418_vm4, %v1812_v62, %v6197_v3  ;;  %v1988_v7 = vsel %vm418_vm4, %v1796_v52, %v6198_v11  ;;  %v147_v11 = vld [vmem:[%s8818_s4 + $0x10] sm:$0xff]  ;;  %v148_v3 = vld [vmem:[%s8818_s4 + $0x18] sm:$0xff]  ;;  %v165_v52 = vld [vmem:[%s8818_s4 + $0xa0] sm:$0xff] }
 0x46a   :  { %v6211_v61 = vpop.permute.xlu0 %6210  ;;  %v6208_v5 = vunpack.i.h.bf16 %v6206_v30  ;;  %v6207_v36 = vunpack.i.l.bf16 %v6206_v30  ;;  %v2006_v48 = vsel %vm1989_vm9, %v2002_v38, %v6202_v26  ;;  %v1993_v22 = vsel %vm1989_vm9, %v1988_v7, %v6203_v42  ;;  %5859 = vmatprep.subr.bf16.mxu0 %v5858_v20  ;;  %v149_v38 = vld [vmem:[%s8818_s4 + $0x20] sm:$0xff]  ;;  %v150_v7 = vld [vmem:[%s8818_s4 + $0x28] sm:$0xff]  ;;  %v167_v26 = vld [vmem:[%s8818_s4 + $0xb0] sm:$0xff] }
 0x46b   :  { %v6213_v0 = vunpack.i.h.bf16 %v6211_v61  ;;  %v6212_v23 = vunpack.i.l.bf16 %v6211_v61  ;;  %v5864_v62 = vpack.c.bf16 %v148_v3, %v147_v11  ;;  %v5866_v30 = vpack.c.bf16 %v166_v14, %v165_v52  ;;  %v168_v61 = vld [vmem:[%s8818_s4 + $0xb8] sm:$0xff]  ;;  %v8922_v55 = vld [vmem:[#allocation17_spill] sm:$0xff] }
 0x46c   :  { %v2012_v57 = vsel %vm418_vm4, %v1826_v44, %v6208_v5  ;;  %v2011_v35 = vsel %vm418_vm4, %v1825_v29, %v6207_v36  ;;  %v5868_v42 = vpack.c.bf16 %v150_v7, %v149_v38  ;;  %v5870_v40 = vpack.c.bf16 %v168_v61, %v167_v26  ;;  %v169_v36 = vld [vmem:[%s8818_s4 + $0xc0] sm:$0xff]  ;;  %v172_v29 = vld [vmem:[%s8818_s4 + $0xd8] sm:$0xff] }
 0x46d   :  { %v6221_v37 = vpop.permute.xlu1 %6220  ;;  %v2010_v17 = vsel %vm1994_vm10, %v2006_v48, %v6212_v23  ;;  %v1998_v43 = vsel %vm1994_vm10, %v1993_v22, %v6213_v0  ;;  %v151_v0 = vld [vmem:[%s8818_s4 + $0x30] sm:$0xff]  ;;  %v152_v23 = vld [vmem:[%s8818_s4 + $0x38] sm:$0xff]  ;;  %v170_v48 = vld [vmem:[%s8818_s4 + $0xc8] sm:$0xff] }
 0x46e   :  { %v6216_v13 = vpop.permute.xlu0 %6215  ;;  %2449 = vmatprep.mubr.f32.mxu1 %v2010_v17  ;;  %2624 = vmatprep.mubr.f32.mxu0 %v2010_v17  ;;  %v6223_v51 = vunpack.i.h.bf16 %v6221_v37  ;;  %v6222_v2 = vunpack.i.l.bf16 %v6221_v37  ;;  %v5872_v5 = vpack.c.bf16 %v152_v23, %v151_v0  ;;  %v5874_v22 = vpack.c.bf16 %v170_v48, %v169_v36  ;;  %v154_v37 = vld [vmem:[%s8818_s4 + $0x48] sm:$0xff] }
 0x46f   :  { %v6218_v34 = vunpack.i.h.bf16 %v6216_v13  ;;  %v6217_v28 = vunpack.i.l.bf16 %v6216_v13  ;;  %2450 = vmatmul.mubr.f32.gmra.mrb[22].mxu1 %v1998_v43  ;;  %2625 = vmatmul.mubr.f32.gmra.mrb[20].mxu0 %v1998_v43  ;;  %v5876_v17 = vpack.c.bf16 %v154_v37, %v153_v16  ;;  %v171_v43 = vld [vmem:[%s8818_s4 + $0xd0] sm:$0xff] }
 0x470   :  { %2520 = vmatprep.mubr.f32.mxu1 %v8920_v25  ;;  %v5878_v44 = vpack.c.bf16 %v172_v29, %v171_v43  ;;  %v155_v13 = vld [vmem:[%s8818_s4 + $0x50] sm:$0xff] }
 0x471   :  { %v2015_v50 = vsel %vm1989_vm9, %v2011_v35, %v6217_v28  ;;  %v2016_v59 = vsel %vm1989_vm9, %v2012_v57, %v6218_v34  ;;  %v1962_v27 = vpop.permute.xlu1 %1961  ;;  %v156_v34 = vld [vmem:[%s8818_s4 + $0x58] sm:$0xff]  ;;  %v173_v57 = vld [vmem:[%s8818_s4 + $0xe0] sm:$0xff]  ;;  %v174_v35 = vld [vmem:[%s8818_s4 + $0xe8] sm:$0xff] }
 0x472   :  { %v1946_v31 = vpop.permute.xlu0 %1945  ;;  %v2019_v33 = vsel %vm1994_vm10, %v2015_v50, %v6222_v2  ;;  %v2020_v45 = vsel %vm1994_vm10, %v2016_v59, %v6223_v51  ;;  %v5880_v28 = vpack.c.bf16 %v156_v34, %v155_v13  ;;  %v5882_v51 = vpack.c.bf16 %v174_v35, %v173_v57  ;;  %v157_v2 = vld [vmem:[%s8818_s4 + $0x60] sm:$0xff]  ;;  %v158_v50 = vld [vmem:[%s8818_s4 + $0x68] sm:$0xff] }
 0x473   :  { %v2013_v63 = vsel %vm418_vm4, %v1827_v18, %v1946_v31  ;;  %2521 = vmatmul.mubr.f32.vlgmr.msra.gmra.mrb[16].mxu1 %v2019_v33  ;;  %5527 = vmatprep.mubr.f32.mxu0 %v2019_v33  ;;  %v5884_v59 = vpack.c.bf16 %v158_v50, %v157_v2  ;;  %v175_v18 = vld [vmem:[%s8818_s4 + $0xf0] sm:$0xff]  ;;  %v176_v31 = vld [vmem:[%s8818_s4 + $0xf8] sm:$0xff] }
 0x474   :  { %5528 = vmatmul.mubr.f32.vlgmr.msra.gmra.mrb[22].mxu0 %v2020_v45  ;;  %2526 = vmatprep.mubr.f32.mxu1 %v8920_v25  ;;  %v2017_v46 = vsel %vm1989_vm9, %v2013_v63, %v1962_v27  ;;  %v159_v33 = vld [vmem:[%s8818_s4 + $0x70] sm:$0xff]  ;;  %v5886_v63 = vpack.c.bf16 %v176_v31, %v175_v18 }
 0x475   :  { %v1948_v53 = vpop.permute.xlu1 %1947  ;;  %5861 = vmatpush3.bf16.msra.mxu0 %v5860_v12 }
 0x476   :  { %v1978_v24 = vpop.permute.xlu0 %1977  ;;  %v2014_v10 = vsel %vm418_vm4, %v1828_v9, %v1948_v53  ;;  %5863 = vmatprep.subr.bf16.mxu0 %v5862_v1  ;;  %v5888_v53 = vpack.c.bf16 %v160_v32, %v159_v33 }
 0x477   :  { %2527 = vmatmul.mubr.f32.gmra.mrb[18].mxu1 %v2020_v45  ;;  %v2021_v19 = vsel %vm1994_vm10, %v2017_v46, %v1978_v24  ;;  %v177_v24 = vld [vmem:[%s8818_s4 + $0x100] sm:$0xff]  ;;  %v178_v46 = vld [vmem:[%s8818_s4 + $0x108] sm:$0xff] }
 0x478   :  { %5530 = vmatprep.mubr.f32.mxu0 %v2021_v19  ;;  %2532 = vmatprep.mubr.f32.mxu1 %v8920_v25 }
 0x479   :  { %v1980_v58 = vpop.permute.xlu1 %1979  ;;  %5865 = vmatpush3.bf16.msra.mxu0 %v5864_v62 }
 0x47a   :  { %v1964_v21 = vpop.permute.xlu0 %1963  ;;  %5867 = vmatprep.subr.bf16.mxu0 %v5866_v30 }
 0x47b   :  { %v2018_v39 = vsel %vm1989_vm9, %v2014_v10, %v1964_v21  ;;  %2533 = vmatmul.mubr.f32.gmra.mrb[20].mxu1 %v2021_v19  ;;  %v7999_v19 = vpack.c.bf16 %v178_v46, %v177_v24 }
 0x47c   :  { %v2022_v56 = vsel %vm1994_vm10, %v2018_v39, %v1980_v58  ;;  %2538 = vmatprep.mubr.f32.mxu1 %v8920_v25  ;;  %v5104_v39 = vld [vmem:[%s8816_s2 + $0x4e] ss:$8 sm:$0x7] }
 0x47d   :  { %5531 = vmatmul.mubr.f32.gmra.mrb[24].mxu0 %v2022_v56  ;;  %v2363_v41 = vrot.slane %v5104_v39, %v8921_v4  ;;  %v2355_v47 = vrot.slane %v5104_v39, %v8922_v55  ;;  %v2359_v1 = vrot.slane %v5104_v39, %v8923_v8 }
 0x47e   :  { %5869 = vmatpush3.bf16.msra.mxu0 %v5868_v42 }
 0x47f   :  { %2539 = vmatmul.mubr.f32.gmra.mrb[22].mxu1 %v2022_v56  ;;  %5871 = vmatprep.subr.bf16.mxu0 %v5870_v40 }
 0x482   :  { %5873 = vmatpush3.bf16.msra.mxu0 %v5872_v5 }
 0x483   :  { %5875 = vmatprep.subr.bf16.mxu0 %v5874_v22 }
 0x486   :  { %5877 = vmatpush3.bf16.msra.mxu0 %v5876_v17 }
 0x487   :  { %5879 = vmatprep.subr.bf16.mxu0 %v5878_v44 }
 0x48a   :  { %5881 = vmatpush3.bf16.msra.mxu0 %v5880_v28 }
 0x48b   :  { %5883 = vmatprep.subr.bf16.mxu0 %v5882_v51 }
 0x48e   :  { %5885 = vmatpush3.bf16.msra.mxu0 %v5884_v59 }
 0x48f   :  { %5887 = vmatprep.subr.bf16.mxu0 %v5886_v63 }
 0x492   :  { %5889 = vmatpush3.bf16.msra.mxu0 %v5888_v53 }
 0x493   :  { %5891 = vmatprep.subr.bf16.mxu0 %v7999_v19 }
 0x4fc   :  { %v2611_v27 = vpop.f32.mrb[14].mxu0 }
 0x4fd   :  { %v2613_v45 = vpop.f32.mrb[15].mxu0  ;;  %v2612_v11 = vadd.f32 %v2611_v27, %v2363_v41 }
 0x537   :  { %v2616_v9 = vpop.f32.mrb[16].mxu0 }
 0x538   :  { %v2618_v10 = vpop.f32.mrb[17].mxu0  ;;  %v2617_v12 = vadd.f32 %v2616_v9, %v2363_v41 }
 0x53b   :  { %v2621_v21 = vpop.f32.mrb[18].mxu0 }
 0x53c   :  { %v2623_v58 = vpop.f32.mrb[19].mxu0  ;;  %v2622_v50 = vadd.f32 %v2621_v21, %v2363_v41 }
 0x542   :  { %v2626_v56 = vpop.f32.mrb[20].mxu0 }
 0x543   :  { %v2628_v20 = vpop.f32.mrb[21].mxu0  ;;  %v2627_v57 = vadd.f32 %v2626_v56, %v2363_v41 }
 0x546   :  { %v2522_v15 = vpop.f32.mrb[16].mxu1 }
 0x547   :  { %v2524_v3 = vpop.f32.mrb[17].mxu1  ;;  %v5529_v62 = vpop.f32.mrb[22].mxu0  ;;  %v8010_v30 = vadd.f32 %v2522_v15, %v2355_v47 }
 0x548   :  { %v8008_v52 = vadd.f32 %v5529_v62, %v2617_v12  ;;  %v2696_v14 = vpop.f32.mrb[23].mxu0  ;;  %v8014_v7 = vadd.f32 %v2524_v3, %v2359_v1 }
 0x549   :  { %v8012_v38 = vadd.f32 %v2696_v14, %v2612_v11  ;;  %v2750_v16 = vmul.f32 %v8010_v30, %v8010_v30 }
 0x54a   :  { %v2734_v42 = vsel %vm418_vm4, %v8008_v52, 0.0  ;;  %v2755_v26 = vmul.f32 %v8008_v52, %v8008_v52  ;;  %v2528_v61 = vpop.f32.mrb[18].mxu1  ;;  %v2751_v29 = vmul.f32 %v8014_v7, %v8014_v7 }
 0x54b   :  { %v2733_v40 = vsel %vm418_vm4, %v8012_v38, 0.0  ;;  %v2752_v0 = vmul.f32 %v8012_v38, %v8012_v38  ;;  %v8024_v23 = vadd.f32 %v2528_v61, %v2355_v47  ;;  %v2530_v5 = vpop.f32.mrb[19].mxu1 }
 0x54c   :  { %v2781_v36 = vsel %vm418_vm4, %v2755_v26, 0.0  ;;  %v2735_v48 = vadd.f32 %v2734_v42, %v2733_v40  ;;  %v8027_v22 = vadd.f32 %v2530_v5, %v2359_v1 }
 0x54d   :  { %v2780_v37 = vsel %vm418_vm4, %v2752_v0, 0.0  ;;  %v2715_v17 = vadd.f32 %v8024_v23, %v8010_v30  ;;  %v2753_v43 = vmul.f32 %v8024_v23, %v8024_v23 }
 0x54e   :  { %v2782_v44 = vadd.f32 %v2781_v36, %v2780_v37  ;;  %v2724_v13 = vadd.f32 %v8027_v22, %v8014_v7  ;;  %v2754_v34 = vmul.f32 %v8027_v22, %v8027_v22  ;;  %v2534_v28 = vpop.f32.mrb[20].mxu1 }
 0x54f   :  { %v2762_v35 = vadd.f32 %v2753_v43, %v2750_v16  ;;  %v8042_v51 = vadd.f32 %v2534_v28, %v2355_v47  ;;  %v2536_v2 = vpop.f32.mrb[21].mxu1 }
 0x550   :  { %v2771_v59 = vadd.f32 %v2754_v34, %v2751_v29  ;;  %v8044_v27 = vadd.f32 %v2536_v2, %v2359_v1  ;;  %v5532_v18 = vpop.f32.mrb[24].mxu0 }
 0x551   :  { %v2716_v31 = vadd.f32 %v8042_v51, %v2715_v17  ;;  %v2756_v33 = vmul.f32 %v8042_v51, %v8042_v51  ;;  %v8049_v45 = vadd.f32 %v5532_v18, %v2627_v57  ;;  %v2706_v63 = vpop.f32.mrb[25].mxu0 }
 0x552   :  { %v2725_v32 = vadd.f32 %v8044_v27, %v2724_v13  ;;  %v2757_v53 = vmul.f32 %v8044_v27, %v8044_v27  ;;  %v8054_v24 = vadd.f32 %v2706_v63, %v2622_v50  ;;  %v2540_v46 = vpop.f32.mrb[22].mxu1 }
 0x553   :  { %v2763_v9 = vadd.f32 %v2762_v35, %v2756_v33  ;;  %v2761_v10 = vmul.f32 %v8049_v45, %v8049_v45  ;;  %v8058_v21 = vadd.f32 %v2540_v46, %v2355_v47  ;;  %v2542_v58 = vpop.f32.mrb[23].mxu1  ;;  %v2738_v47 = vsel %vm418_vm4, %v8049_v45, 0.0 }
 0x554   :  { %v2772_v39 = vadd.f32 %v2771_v59, %v2757_v53  ;;  %v2736_v56 = vsel %vm418_vm4, %v8054_v24, 0.0  ;;  %v2758_v41 = vmul.f32 %v8054_v24, %v8054_v24  ;;  %v8064_v20 = vadd.f32 %v2542_v58, %v2359_v1 }
 0x555   :  { %v2737_v12 = vadd.f32 %v2736_v56, %v2735_v48  ;;  %v2717_v15 = vadd.f32 %v8058_v21, %v2716_v31  ;;  %v2759_v11 = vmul.f32 %v8058_v21, %v8058_v21  ;;  %v2785_v40 = vsel %vm418_vm4, %v2761_v10, 0.0 }
 0x556   :  { %v2783_v3 = vsel %vm418_vm4, %v2758_v41, 0.0  ;;  %v2726_v62 = vadd.f32 %v8064_v20, %v2725_v32  ;;  %v2760_v14 = vmul.f32 %v8064_v20, %v8064_v20 }
 0x557   :  { %v2739_v42 = vadd.f32 %v2738_v47, %v2737_v12  ;;  %v2784_v26 = vadd.f32 %v2783_v3, %v2782_v44  ;;  %v2718_v1 = vrot.slane %v2717_v15, 4  ;;  %v2764_v61 = vadd.f32 %v2763_v9, %v2759_v11 }
 0x558   :  { %v2727_v0 = vrot.slane %v2726_v62, 4  ;;  %v2773_v5 = vadd.f32 %v2772_v39, %v2760_v14 }
 0x559   :  { %v2740_v36 = vrot.slane %v2739_v42, 4  ;;  %v2786_v48 = vadd.f32 %v2785_v40, %v2784_v26  ;;  %v2719_v16 = vadd.f32 %v2718_v1, %v2717_v15  ;;  %v2765_v37 = vrot.slane %v2764_v61, 4 }
 0x55a   :  { %v2728_v17 = vadd.f32 %v2727_v0, %v2726_v62  ;;  %v2774_v43 = vrot.slane %v2773_v5, 4 }
 0x55b   :  { %v2741_v29 = vadd.f32 %v2740_v36, %v2739_v42  ;;  %v2787_v13 = vrot.slane %v2786_v48, 4  ;;  %v2720_v34 = vrot.slane %v2719_v16, 2  ;;  %v2766_v28 = vadd.f32 %v2765_v37, %v2764_v61 }
 0x55c   :  { %v2729_v57 = vrot.slane %v2728_v17, 2  ;;  %v2775_v35 = vadd.f32 %v2774_v43, %v2773_v5 }
 0x55d   :  { %v2742_v2 = vrot.slane %v2741_v29, 2  ;;  %v2788_v44 = vadd.f32 %v2787_v13, %v2786_v48  ;;  %v2721_v50 = vadd.f32 %v2720_v34, %v2719_v16  ;;  %v2767_v59 = vrot.slane %v2766_v28, 2 }
 0x55e   :  { %v2730_v18 = vadd.f32 %v2729_v57, %v2728_v17  ;;  %v2776_v31 = vrot.slane %v2775_v35, 2 }
 0x55f   :  { %v2743_v33 = vadd.f32 %v2742_v2, %v2741_v29  ;;  %v2789_v63 = vrot.slane %v2788_v44, 2  ;;  %v2722_v32 = vrot.slane %v2721_v50, 1  ;;  %v2768_v53 = vadd.f32 %v2767_v59, %v2766_v28 }
 0x560   :  { %v2731_v46 = vrot.slane %v2730_v18, 1  ;;  %v2777_v9 = vadd.f32 %v2776_v31, %v2775_v35 }
 0x561   :  { %v2744_v10 = vrot.slane %v2743_v33, 1  ;;  %v2790_v58 = vadd.f32 %v2789_v63, %v2788_v44  ;;  %v2723_v39 = vadd.f32 %v2722_v32, %v2721_v50  ;;  %v2769_v56 = vrot.slane %v2768_v53, 1 }
 0x562   :  { %v2732_v41 = vadd.f32 %v2731_v46, %v2730_v18  ;;  %v2778_v12 = vrot.slane %v2777_v9, 1 }
 0x563   :  { %v2745_v15 = vadd.f32 %v2744_v10, %v2743_v33  ;;  %v2791_v11 = vrot.slane %v2790_v58, 1  ;;  %v2747_v47 = vmul.f32 0.03125, %v2723_v39  ;;  %v2770_v3 = vadd.f32 %v2769_v56, %v2768_v53 }
 0x564   :  { %v2748_v62 = vmul.f32 0.03125, %v2732_v41  ;;  %v2779_v14 = vadd.f32 %v2778_v12, %v2777_v9 }
 0x565   :  { %v8076_v42 = vmul.f32 0.03125, %v2745_v15  ;;  %v2792_v26 = vadd.f32 %v2791_v11, %v2790_v58  ;;  %v2793_v1 = vmul.f32 0.03125, %v2770_v3  ;;  %v2796_v61 = vmul.f32 %v2747_v47, %v2747_v47  ;;  %v179_v3 = vld [vmem:[%s8818_s4 + $0x110] sm:$0xff] }
 0x566   :  { %v2814_v40 = vsub.f32 %v8058_v21, %v2747_v47  ;;  %v2794_v0 = vmul.f32 0.03125, %v2779_v14  ;;  %v2797_v5 = vmul.f32 %v2748_v62, %v2748_v62  ;;  %v2815_v36 = vsub.f32 %v8064_v20, %v2748_v62 }
 0x567   :  { %v2795_v48 = vmul.f32 0.03125, %v2792_v26  ;;  %v2798_v16 = vmul.f32 %v8076_v42, %v8076_v42  ;;  %v2813_v37 = vsub.f32 %v8054_v24, %v8076_v42  ;;  %v2799_v17 = vsub.f32 %v2793_v1, %v2796_v61 }
 0x568   :  { %v2800_v43 = vsub.f32 %v2794_v0, %v2797_v5  ;;  %v2806_v29 = vsub.f32 %v8014_v7, %v2748_v62  ;;  %v2805_v13 = vsub.f32 %v8010_v30, %v2747_v47  ;;  %v2809_v34 = vsub.f32 %v8027_v22, %v2748_v62 }
 0x569   :  { %v2801_v21 = vsub.f32 %v2795_v48, %v2798_v16  ;;  %v2802_v28 = vmax.f32 %v2799_v17, 0.0  ;;  %v2808_v57 = vsub.f32 %v8024_v23, %v2747_v47  ;;  %v2812_v20 = vsub.f32 %v8044_v27, %v2748_v62  ;;  %v5105_v23 = vld [vmem:[%s8816_s2 + $0x4f] ss:$8 sm:$0x7] }
 0x56a   :  { %v2803_v35 = vmax.f32 %v2800_v43, 0.0  ;;  %v2811_v2 = vsub.f32 %v8042_v51, %v2747_v47  ;;  %v2807_v24 = vsub.f32 %v8012_v38, %v8076_v42  ;;  %v2810_v44 = vsub.f32 %v8008_v52, %v8076_v42  ;;  %v5106_v38 = vld [vmem:[%s8816_s2 + $0x60] ss:$8 sm:$0x7]  ;;  %v180_v62 = vld [vmem:[%s8818_s4 + $0x118] sm:$0xff] }
 0x56b   :  { %v2804_v7 = vmax.f32 %v2801_v21, 0.0  ;;  %v2817_v50 = vadd.f32 1e-05, %v2802_v28  ;;  %v2816_v30 = vsub.f32 %v8049_v45, %v8076_v42  ;;  %v2839_v52 = vrot.slane %v5105_v23, %v8922_v55 }
 0x56c   :  { %v2818_v22 = vadd.f32 1e-05, %v2803_v35  ;;  %v2843_v27 = vrot.slane %v5105_v23, %v8923_v8  ;;  %v2867_v45 = vrot.slane %v5106_v38, %v8922_v55  ;;  %v2871_v18 = vrot.slane %v5106_v38, %v8923_v8 }
 0x56d   :  { %v2819_v59 = vadd.f32 1e-05, %v2804_v7  ;;  %6426 = vrsqrt.f32 %v2817_v50  ;;  %v2847_v1 = vrot.slane %v5105_v23, %v8921_v4  ;;  %v5894_v0 = vpack.c.bf16 %v180_v62, %v179_v3 }
 0x56e   :  { %6428 = vrsqrt.f32 %v2818_v22  ;;  %v2875_v35 = vrot.slane %v5106_v38, %v8921_v4 }
 0x56f   :  { %6430 = vrsqrt.f32 %v2819_v59 }
 0x577   :  { %v6427_v51 = vpop.eup %6426 }
 0x578   :  { %v6429_v31 = vpop.eup %6428  ;;  %v2832_v33 = vmul.f32 %v6427_v51, %v2814_v40  ;;  %v2823_v63 = vmul.f32 %v6427_v51, %v2805_v13  ;;  %v2826_v32 = vmul.f32 %v6427_v51, %v2808_v57  ;;  %v2829_v53 = vmul.f32 %v6427_v51, %v2811_v2 }
 0x579   :  { %v6431_v46 = vpop.eup %6430  ;;  %v2833_v9 = vmul.f32 %v6429_v31, %v2815_v36  ;;  %v2824_v10 = vmul.f32 %v6429_v31, %v2806_v29  ;;  %v2827_v58 = vmul.f32 %v6429_v31, %v2809_v34  ;;  %v2830_v39 = vmul.f32 %v6429_v31, %v2812_v20  ;;  %v3144_v31 = vld [vmem:[%s8819_s5 + $0x8] sm:$0xff] }
 0x57a   :  { %v2831_v56 = vmul.f32 %v6431_v46, %v2813_v37  ;;  %v2851_v41 = vmul.f32 %v2839_v52, %v2823_v63  ;;  %v2854_v47 = vmul.f32 %v2839_v52, %v2826_v32  ;;  %v2857_v40 = vmul.f32 %v2839_v52, %v2829_v53  ;;  %v3145_v63 = vld [vmem:[%s8819_s5 + $0x10] sm:$0xff] }
 0x57b   :  { %v2852_v12 = vmul.f32 %v2843_v27, %v2824_v10  ;;  %v2855_v15 = vmul.f32 %v2843_v27, %v2827_v58  ;;  %v2858_v26 = vmul.f32 %v2843_v27, %v2830_v39  ;;  %v2825_v48 = vmul.f32 %v6431_v46, %v2807_v24 }
 0x57c   :  { %v2879_v11 = vadd.f32 %v2867_v45, %v2851_v41  ;;  %v2882_v36 = vadd.f32 %v2867_v45, %v2854_v47  ;;  %v2828_v16 = vmul.f32 %v6431_v46, %v2810_v44  ;;  %v2861_v43 = vmul.f32 %v2843_v27, %v2833_v9 }
 0x57d   :  { %v2880_v14 = vadd.f32 %v2871_v18, %v2852_v12  ;;  %v2883_v42 = vadd.f32 %v2871_v18, %v2855_v15  ;;  %v2886_v17 = vadd.f32 %v2871_v18, %v2858_v26  ;;  %v2834_v29 = vmul.f32 %v6431_v46, %v2816_v30 }
 0x57e   :  { %v2891_v5 = vmax.f32 %v2879_v11, 0.0  ;;  %v2894_v13 = vmax.f32 %v2882_v36, 0.0  ;;  %v2885_v34 = vadd.f32 %v2867_v45, %v2857_v40  ;;  %v2860_v21 = vmul.f32 %v2839_v52, %v2832_v33  ;;  %v104_v11 = vld [vmem:[%s8816_s2 + $0x61] ss:$0 sm:$0xff] }
 0x57f   :  { %v2892_v61 = vmax.f32 %v2880_v14, 0.0  ;;  %v2895_v37 = vmax.f32 %v2883_v42, 0.0  ;;  %v2898_v28 = vmax.f32 %v2886_v17, 0.0  ;;  %v2889_v57 = vadd.f32 %v2871_v18, %v2861_v43  ;;  %v3143_v18 = vld [vmem:[%s8819_s5] sm:$0xff] }
 0x580   :  { %v2853_v20 = vmul.f32 %v2847_v1, %v2825_v48  ;;  %v2897_v2 = vmax.f32 %v2885_v34, 0.0  ;;  %v2888_v24 = vadd.f32 %v2867_v45, %v2860_v21  ;;  %v2856_v44 = vmul.f32 %v2847_v1, %v2828_v16 }
 0x581   :  { %2979 = vmatprep.mubr.f32.mxu0 %v2892_v61  ;;  %v2859_v7 = vmul.f32 %v2847_v1, %v2831_v56  ;;  %v2901_v50 = vmax.f32 %v2889_v57, 0.0  ;;  %v2862_v59 = vmul.f32 %v2847_v1, %v2834_v29  ;;  %v5898_v33 = vpack.c.bf16 %v3144_v31, %v3143_v18 }
 0x582   :  { %2980 = vmatmul.mubr.f32.vlgmr.msra.gmra.mrb[26].mxu0 %v2891_v5  ;;  %v2881_v30 = vadd.f32 %v2875_v35, %v2853_v20  ;;  %v2884_v22 = vadd.f32 %v2875_v35, %v2856_v44 }
 0x583   :  { %2984 = vmatprep.mubr.f32.mxu0 %v2895_v37  ;;  %5893 = vmatpush3.bf16.msra.mxu0 %v7999_v19  ;;  %v2900_v19 = vmax.f32 %v2888_v24, 0.0  ;;  %v2887_v52 = vadd.f32 %v2875_v35, %v2859_v7  ;;  %v2890_v51 = vadd.f32 %v2875_v35, %v2862_v59 }
 0x584   :  { %5895 = vmatprep.subr.bf16.mxu0 %v5894_v0  ;;  %v2893_v23 = vmax.f32 %v2881_v30, 0.0  ;;  %v2896_v38 = vmax.f32 %v2884_v22, 0.0 }
 0x585   :  { %v2899_v27 = vmax.f32 %v2887_v52, 0.0  ;;  %v2902_v45 = vmax.f32 %v2890_v51, 0.0 }
 0x586   :  { %2985 = vmatmul.mubr.f32.gmra.mrb[28].mxu0 %v2894_v13 }
 0x587   :  { %2989 = vmatprep.mubr.f32.mxu0 %v2898_v28  ;;  %5897 = vmatpush3.bf16.msra.mxu0 %v5894_v0 }
 0x588   :  { %5899 = vmatprep.subr.bf16.mxu0 %v5898_v33 }
 0x58a   :  { %2990 = vmatmul.mubr.f32.gmra.mrb[30].mxu0 %v2897_v2 }
 0x58b   :  { %2994 = vmatprep.mubr.f32.mxu0 %v2901_v50 }
 0x58e   :  { %2995 = vmatmul.mubr.f32.gmra.mrb[32].mxu0 %v2900_v19 }
 0x58f   :  { %5541 = vmatprep.mubr.msk.f32.mxu0 %vm418_vm4, %v2893_v23 }
 0x592   :  { %5542 = vmatmul.mubr.msk.f32.vlgmr.msra.gmra.mrb[34].mxu0 %vm418_vm4, %v2896_v38 }
 0x593   :  { %5544 = vmatprep.mubr.msk.f32.mxu0 %vm418_vm4, %v2899_v27  ;;  %5901 = vmatpush3.bf16.msra.mxu0 %v5898_v33 }
 0x594   :  { %5551 = vmatprep.subr.mxu0 %v3145_v63 }
 0x596   :  { %5545 = vmatmul.mubr.msk.f32.gmra.mrb[36].mxu0 %vm418_vm4, %v2902_v45 }
 0x597   :  { %5552 = vmatpush3.msra.mxu0 %v3145_v63 }
 0x655   :  { %v5323_v32 = vpop.f32.mrb[26].mxu0 }
 0x656   :  { %v5324_v53 = vpop.f32.mrb[27].mxu0 }
 0x657   :  { %v5325_v46 = vadd.f32 %v5324_v53, %v5323_v32 }
 0x659   :  { %v5326_v9 = vpop.f32.mrb[28].mxu0  ;;  %v2982_v14 = vadd.f32 %v5325_v46, %v104_v11 }
 0x65a   :  { %v5327_v10 = vpop.f32.mrb[29].mxu0 }
 0x65b   :  { %v5328_v58 = vadd.f32 %v5327_v10, %v5326_v9 }
 0x65d   :  { %v5329_v39 = vpop.f32.mrb[30].mxu0  ;;  %v2987_v3 = vadd.f32 %v5328_v58, %v104_v11 }
 0x65e   :  { %v5330_v56 = vpop.f32.mrb[31].mxu0 }
 0x65f   :  { %v5331_v41 = vadd.f32 %v5330_v56, %v5329_v39 }
 0x661   :  { %v5332_v12 = vpop.f32.mrb[32].mxu0  ;;  %v2992_v16 = vadd.f32 %v5331_v41, %v104_v11 }
 0x662   :  { %v5333_v15 = vpop.f32.mrb[33].mxu0 }
 0x663   :  { %v5334_v47 = vadd.f32 %v5333_v15, %v5332_v12  ;;  %v105_v15 = vld [vmem:[%s8816_s2 + $0x62] ss:$0 sm:$0xff] }
 0x665   :  { %v5543_v62 = vpop.f32.mrb[34].mxu0  ;;  %v2997_v0 = vadd.f32 %v5334_v47, %v104_v11 }
 0x666   :  { %v3072_v42 = vadd.f32 %v5543_v62, %v2987_v3  ;;  %v3066_v26 = vpop.f32.mrb[35].mxu0 }
 0x667   :  { %v3067_v1 = vadd.f32 %v3066_v26, %v2982_v14  ;;  %v106_v14 = vld [vmem:[%s8816_s2 + $0x63] ss:$0 sm:$0xff] }
 0x668   :  { %v3087_v61 = vsel %vm3085_vm15, %v3072_v42, 0.0  ;;  %v3101_v40 = vmul.f32 %v3072_v42, %v3072_v42 }
 0x669   :  { %v3086_v5 = vsel %vm3085_vm15, %v3067_v1, 0.0  ;;  %v3100_v36 = vmul.f32 %v3067_v1, %v3067_v1  ;;  %v5546_v48 = vpop.f32.mrb[36].mxu0 }
 0x66a   :  { %v3105_v37 = vsel %vm3085_vm15, %v3101_v40, 0.0  ;;  %v3088_v17 = vadd.f32 %v3087_v61, %v3086_v5  ;;  %v3082_v43 = vadd.f32 %v5546_v48, %v2997_v0  ;;  %v3076_v29 = vpop.f32.mrb[37].mxu0 }
 0x66b   :  { %v3104_v13 = vsel %vm3085_vm15, %v3100_v36, 0.0  ;;  %v3077_v34 = vadd.f32 %v3076_v29, %v2992_v16 }
 0x66c   :  { %v3106_v21 = vadd.f32 %v3105_v37, %v3104_v13  ;;  %v3103_v28 = vmul.f32 %v3082_v43, %v3082_v43  ;;  %v3091_v2 = vsel %vm3085_vm15, %v3082_v43, 0.0 }
 0x66d   :  { %v3089_v57 = vsel %vm3085_vm15, %v3077_v34, 0.0  ;;  %v3102_v20 = vmul.f32 %v3077_v34, %v3077_v34 }
 0x66e   :  { %v3090_v35 = vadd.f32 %v3089_v57, %v3088_v17  ;;  %v3109_v50 = vsel %vm3085_vm15, %v3103_v28, 0.0 }
 0x66f   :  { %v3107_v24 = vsel %vm3085_vm15, %v3102_v20, 0.0  ;;  %v76_v20 = vld [vmem:[%s8815_s1 + $0x188] sm:$0xff] }
 0x670   :  { %v3092_v44 = vadd.f32 %v3091_v2, %v3090_v35  ;;  %v3108_v7 = vadd.f32 %v3107_v24, %v3106_v21  ;;  %v77_v35 = vld [vmem:[%s8815_s1 + $0x190] sm:$0xff]  ;;  %v78_v2 = vld [vmem:[%s8815_s1 + $0x198] sm:$0xff] }
 0x671   :  { %v128_v24 = vld [vmem:[%s8817_s3 + $0x38] sm:$0xff] }
 0x672   :  { %v3093_v30 = vrot.slane %v3092_v44, 4  ;;  %v3110_v19 = vadd.f32 %v3109_v50, %v3108_v7  ;;  %v129_v7 = vld [vmem:[%s8817_s3 + $0x40] sm:$0xff]  ;;  %v132_v50 = vld [vmem:[%s8817_s3 + $0x58] sm:$0xff] }
 0x674   :  { %v3094_v22 = vadd.f32 %v3093_v30, %v3092_v44  ;;  %v3111_v59 = vrot.slane %v3110_v19, 4  ;;  %v131_v44 = vld [vmem:[%s8817_s3 + $0x50] sm:$0xff] }
 0x675   :  { %v5910_v30 = vpack.c.bf16 %v131_v44, %v128_v24 }
 0x676   :  { %v3095_v23 = vrot.slane %v3094_v22, 2  ;;  %v3112_v52 = vadd.f32 %v3111_v59, %v3110_v19  ;;  %v127_v19 = vld [vmem:[%s8817_s3 + $0x30] sm:$0xff]  ;;  %v130_v59 = vld [vmem:[%s8817_s3 + $0x48] sm:$0xff] }
 0x678   :  { %v3096_v38 = vadd.f32 %v3095_v23, %v3094_v22  ;;  %v3113_v51 = vrot.slane %v3112_v52, 2  ;;  %v5922_v22 = vpack.c.bf16 %v132_v50, %v129_v7  ;;  %v135_v23 = vld [vmem:[%s8817_s3 + $0x70] sm:$0xff] }
 0x67a   :  { %v3097_v27 = vrot.slane %v3096_v38, 1  ;;  %v3114_v45 = vadd.f32 %v3113_v51, %v3112_v52  ;;  %v138_v52 = vld [vmem:[%s8817_s3 + $0x88] sm:$0xff]  ;;  %5923 = vmatprep.subr.bf16.mxu1 %v5922_v22 }
 0x67b   :  { %v5926_v51 = vpack.c.bf16 %v138_v52, %v135_v23  ;;  %5925 = vmatpush3.bf16.msra.mxu1 %v5922_v22 }
 0x67c   :  { %v3098_v18 = vadd.f32 %v3097_v27, %v3096_v38  ;;  %v3115_v31 = vrot.slane %v3114_v45, 1  ;;  %v5912_v38 = vpack.c.bf16 %v130_v59, %v127_v19  ;;  %v134_v27 = vld [vmem:[%s8817_s3 + $0x68] sm:$0xff] }
 0x67d   :  { %5927 = vmatprep.subr.bf16.mxu1 %v5926_v51 }
 0x67e   :  { %v3099_v33 = vmul.f32 0.03125, %v3098_v18  ;;  %v3116_v63 = vadd.f32 %v3115_v31, %v3114_v45  ;;  %v137_v45 = vld [vmem:[%s8817_s3 + $0x80] sm:$0xff] }
 0x67f   :  { %v133_v18 = vld [vmem:[%s8817_s3 + $0x60] sm:$0xff]  ;;  %v5914_v31 = vpack.c.bf16 %v137_v45, %v134_v27  ;;  %5929 = vmatpush3.bf16.msra.mxu1 %v5926_v51 }
 0x680   :  { %v3117_v32 = vmul.f32 0.03125, %v3116_v63  ;;  %v3118_v53 = vmul.f32 %v3099_v33, %v3099_v33  ;;  %v3122_v46 = vsub.f32 %v3072_v42, %v3099_v33  ;;  %v3123_v9 = vsub.f32 %v3077_v34, %v3099_v33  ;;  %v140_v63 = vld [vmem:[%s8817_s3 + $0x98] sm:$0xff] }
 0x681   :  { %v3121_v10 = vsub.f32 %v3067_v1, %v3099_v33  ;;  %v3124_v58 = vsub.f32 %v3082_v43, %v3099_v33  ;;  %v75_v43 = vld [vmem:[%s8815_s1 + $0x180] sm:$0xff]  ;;  %v136_v33 = vld [vmem:[%s8817_s3 + $0x78] sm:$0xff] }
 0x682   :  { %v3119_v39 = vsub.f32 %v3117_v32, %v3118_v53  ;;  %v143_v32 = vld [vmem:[%s8817_s3 + $0xb0] sm:$0xff]  ;;  %v5916_v53 = vpack.c.bf16 %v136_v33, %v133_v18 }
 0x684   :  { %v3120_v56 = vmax.f32 %v3119_v39, 0.0  ;;  %v139_v39 = vld [vmem:[%s8817_s3 + $0x90] sm:$0xff] }
 0x686   :  { %v3125_v41 = vadd.f32 1e-05, %v3120_v56  ;;  %v142_v56 = vld [vmem:[%s8817_s3 + $0xa8] sm:$0xff] }
 0x688   :  { %6432 = vrsqrt.f32 %v3125_v41  ;;  %v5920_v41 = vpack.c.bf16 %v142_v56, %v139_v39 }
 0x692   :  { %v6433_v12 = vpop.eup %6432 }
 0x693   :  { %v3128_v11 = vmul.f32 %v6433_v12, %v3122_v46  ;;  %v3129_v47 = vmul.f32 %v6433_v12, %v3123_v9  ;;  %v3127_v3 = vmul.f32 %v6433_v12, %v3121_v10  ;;  %v3130_v62 = vmul.f32 %v6433_v12, %v3124_v58  ;;  %v141_v46 = vld [vmem:[%s8817_s3 + $0xa0] sm:$0xff]  ;;  %v144_v9 = vld [vmem:[%s8817_s3 + $0xb8] sm:$0xff] }
 0x694   :  { %v5918_v10 = vpack.c.bf16 %v143_v32, %v140_v63  ;;  %v5930_v58 = vpack.c.bf16 %v144_v9, %v141_v46  ;;  %v8223_v12 = vld [vmem:[%s8816_s2 + $0x58] sm:$0x7] }
 0x695   :  { %v3132_v42 = vmul.f32 %v3128_v11, %v105_v15  ;;  %v3133_v26 = vmul.f32 %v3129_v47, %v105_v15  ;;  %v3131_v1 = vmul.f32 %v3127_v3, %v105_v15  ;;  %v3134_v61 = vmul.f32 %v3130_v62, %v105_v15  ;;  %v93_v15 = vld [vmem:[%s8816_s2 + $0x50] sm:$0x7]  ;;  %v107_v11 = vld [vmem:[%s8816_s2 + $0x64] ss:$0 sm:$0xff] }
 0x696   :  { %5931 = vmatprep.subr.bf16.mxu1 %v5930_v58 }
 0x697   :  { %v3135_v40 = vadd.f32 %v3131_v1, %v106_v14  ;;  %v3136_v0 = vadd.f32 %v3132_v42, %v106_v14  ;;  %v3137_v5 = vadd.f32 %v3133_v26, %v106_v14  ;;  %v3138_v16 = vadd.f32 %v3134_v61, %v106_v14  ;;  %5933 = vmatpush3.bf16.msra.mxu1 %v5930_v58 }
 0x698   :  { %3623 = vmatprep.subr.mxu1 %v93_v15 }
 0x699   :  { %v3139_v36 = vmax.f32 %v3135_v40, 0.0  ;;  %v3140_v48 = vmax.f32 %v3136_v0, 0.0  ;;  %v3141_v37 = vmax.f32 %v3137_v5, 0.0  ;;  %v3142_v17 = vmax.f32 %v3138_v16, 0.0 }
 0x69b   :  { %5553 = vmatprep.mubr.msk.f32.mxu0 %vm3085_vm15, %v3139_v36 }
 0x69c   :  { %5554 = vmatmul.mubr.msk.f32.vlgmr.msra.gmra.mrb[38].mxu0 %vm3085_vm15, %v3140_v48 }
 0x69d   :  { %5556 = vmatprep.mubr.msk.f32.mxu0 %vm3085_vm15, %v3141_v37 }
 0x6a0   :  { %5557 = vmatmul.mubr.msk.f32.gmra.mrb[40].mxu0 %vm3085_vm15, %v3142_v17 }
 0x6a1   :  { %5567 = vmatprep.mubr.msk.f32.mxu0 %vm418_vm4, %v75_v43 }
 0x76f   :  { %v5555_v29 = vpop.f32.mrb[38].mxu0 }
 0x770   :  { %3404 = vrot.lane.b32.xlu1 %v5555_v29, %s6534_s27  ;;  %v3224_v13 = vpop.f32.mrb[39].mxu0 }
 0x771   :  { %v5902_v34 = vpack.c.bf16 %v5555_v29, %v3224_v13  ;;  %3402 = vrot.lane.b32.xlu0 %v3224_v13, %s6534_s27 }
 0x773   :  { %v5558_v21 = vpop.f32.mrb[40].mxu0  ;;  %5903 = vmatprep.subr.bf16.mxu0 %v5902_v34 }
 0x774   :  { %5905 = vmatpush3.bf16.msra.mxu0 %v5902_v34  ;;  %3408 = vrot.lane.b32.xlu1 %v5558_v21, %s6534_s27  ;;  %v3234_v28 = vpop.f32.mrb[41].mxu0 }
 0x775   :  { %v5906_v57 = vpack.c.bf16 %v5558_v21, %v3234_v28  ;;  %3406 = vrot.lane.b32.xlu0 %v3234_v28, %s6534_s27 }
 0x777   :  { %5907 = vmatprep.subr.bf16.mxu0 %v5906_v57 }
 0x778   :  { %5909 = vmatpush3.bf16.msra.mxu0 %v5906_v57 }
 0x779   :  { %5911 = vmatprep.subr.bf16.mxu0 %v5910_v30 }
 0x77b   :  { %5568 = vmatmul.mubr.msk.f32.vlgmr.msra.gmra.mrb[42].mxu0 %vm418_vm4, %v76_v20 }
 0x77c   :  { %5570 = vmatprep.mubr.msk.f32.mxu0 %vm418_vm4, %v77_v35  ;;  %5913 = vmatpush1.bf16.msra.mxu0 %v5912_v38 }
 0x77d   :  { %5915 = vmatprep.subr.bf16.mxu0 %v5914_v31 }
 0x77f   :  { %5571 = vmatmul.mubr.msk.f32.gmra.mrb[44].mxu0 %vm418_vm4, %v78_v2 }
 0x780   :  { %3498 = vmatprep.mubr.f32.mxu0 %v8920_v25  ;;  %5917 = vmatpush1.bf16.msra.mxu0 %v5916_v53 }
 0x781   :  { %5919 = vmatprep.subr.bf16.mxu0 %v5918_v10 }
 0x784   :  { %5921 = vmatpush1.bf16.msra.mxu0 %v5920_v41 }
 0x785   :  { %5591 = vmatprep.subr.msk.mxu0 %vm418_vm4, %v8223_v12 }
 0x7e3   :  { %v3403_v15 = vpop.permute.xlu0 %3402 }
 0x84e   :  { %v5569_v47 = vpop.f32.mrb[42].mxu0 }
 0x84f   :  { %v3327_v3 = vadd.f32 %v5569_v47, %v107_v11  ;;  %v3321_v62 = vpop.f32.mrb[43].mxu0 }
 0x850   :  { %v3322_v14 = vadd.f32 %v3321_v62, %v107_v11 }
 0x851   :  { %v3341_v42 = vmax.f32 %v3327_v3, 0.0 }
 0x852   :  { %v3340_v26 = vmax.f32 %v3322_v14, 0.0  ;;  %v5572_v1 = vpop.f32.mrb[44].mxu0 }
 0x853   :  { %v3346_v61 = vsel %vm3344_vm3, %v3341_v42, 0.0  ;;  %v3360_v40 = vmul.f32 %v3341_v42, %v3341_v42  ;;  %v3337_v0 = vadd.f32 %v5572_v1, %v107_v11  ;;  %v3331_v5 = vpop.f32.mrb[45].mxu0 }
 0x854   :  { %v3345_v36 = vsel %vm3344_vm3, %v3340_v26, 0.0  ;;  %v3359_v48 = vmul.f32 %v3340_v26, %v3340_v26  ;;  %v3332_v16 = vadd.f32 %v3331_v5, %v107_v11  ;;  %v108_v11 = vld [vmem:[%s8816_s2 + $0x65] ss:$0 sm:$0xff] }
 0x855   :  { %v3364_v37 = vsel %vm3344_vm3, %v3360_v40, 0.0  ;;  %v3347_v17 = vadd.f32 %v3346_v61, %v3345_v36  ;;  %v3343_v43 = vmax.f32 %v3337_v0, 0.0 }
 0x856   :  { %v3363_v29 = vsel %vm3344_vm3, %v3359_v48, 0.0  ;;  %v3342_v13 = vmax.f32 %v3332_v16, 0.0  ;;  %v3407_v16 = vpop.permute.xlu0 %3406 }
 0x857   :  { %v3365_v34 = vadd.f32 %v3364_v37, %v3363_v29  ;;  %v3362_v21 = vmul.f32 %v3343_v43, %v3343_v43  ;;  %v3350_v35 = vsel %vm3344_vm3, %v3343_v43, 0.0  ;;  %v110_v37 = vld [vmem:[%s8816_s2 + $0x67] ss:$0 sm:$0xff] }
 0x858   :  { %v3348_v28 = vsel %vm3344_vm3, %v3342_v13, 0.0  ;;  %v3361_v57 = vmul.f32 %v3342_v13, %v3342_v13 }
 0x859   :  { %v3349_v20 = vadd.f32 %v3348_v28, %v3347_v17  ;;  %v3368_v7 = vsel %vm3344_vm3, %v3362_v21, 0.0 }
 0x85a   :  { %v3366_v2 = vsel %vm3344_vm3, %v3361_v57, 0.0 }
 0x85b   :  { %v3351_v24 = vadd.f32 %v3350_v35, %v3349_v20  ;;  %v3367_v44 = vadd.f32 %v3366_v2, %v3365_v34  ;;  %v92_v35 = vld [vmem:[%s8816_s2 + $0x48] sm:$0x7] }
 0x85d   :  { %v3352_v50 = vrot.slane %v3351_v24, 4  ;;  %v3369_v30 = vadd.f32 %v3368_v7, %v3367_v44 }
 0x85f   :  { %v3353_v19 = vadd.f32 %v3352_v50, %v3351_v24  ;;  %v3370_v22 = vrot.slane %v3369_v30, 4 }
 0x861   :  { %v3354_v59 = vrot.slane %v3353_v19, 2  ;;  %v3371_v23 = vadd.f32 %v3370_v22, %v3369_v30 }
 0x863   :  { %v3355_v52 = vadd.f32 %v3354_v59, %v3353_v19  ;;  %v3372_v38 = vrot.slane %v3371_v23, 2 }
 0x865   :  { %v3356_v51 = vrot.slane %v3355_v52, 1  ;;  %v3373_v27 = vadd.f32 %v3372_v38, %v3371_v23 }
 0x867   :  { %v3357_v45 = vadd.f32 %v3356_v51, %v3355_v52  ;;  %v3374_v18 = vrot.slane %v3373_v27, 1 }
 0x869   :  { %v3358_v31 = vmul.f32 0.03125, %v3357_v45  ;;  %v3375_v33 = vadd.f32 %v3374_v18, %v3373_v27  ;;  %v96_v18 = vld [vmem:[%s8816_s2 + $0x50] sm:$0x38] }
 0x86b   :  { %v3376_v63 = vmul.f32 0.03125, %v3375_v33  ;;  %v3377_v32 = vmul.f32 %v3358_v31, %v3358_v31  ;;  %v3380_v53 = vsub.f32 %v3340_v26, %v3358_v31  ;;  %v3381_v46 = vsub.f32 %v3341_v42, %v3358_v31  ;;  %v109_v42 = vld [vmem:[%s8816_s2 + $0x66] ss:$0 sm:$0xff]  ;;  %v3405_v26 = vpop.permute.xlu1 %3404 }
 0x86c   :  { %v3382_v9 = vsub.f32 %v3342_v13, %v3358_v31  ;;  %v3383_v10 = vsub.f32 %v3343_v43, %v3358_v31 }
 0x86d   :  { %v3378_v58 = vsub.f32 %v3376_v63, %v3377_v32  ;;  %v3797_v32 = vrot.slane %v96_v18, 3 }
 0x86f   :  { %v3379_v39 = vmax.f32 %v3378_v58, 0.0  ;;  %v3409_v34 = vpop.permute.xlu1 %3408 }
 0x871   :  { %v3384_v56 = vadd.f32 1e-05, %v3379_v39 }
 0x873   :  { %6434 = vrsqrt.f32 %v3384_v56 }
 0x87d   :  { %v6435_v41 = vpop.eup %6434 }
 0x87e   :  { %v3386_v47 = vmul.f32 %v6435_v41, %v3380_v53  ;;  %v3387_v3 = vmul.f32 %v6435_v41, %v3381_v46  ;;  %v3388_v62 = vmul.f32 %v6435_v41, %v3382_v9  ;;  %v3389_v14 = vmul.f32 %v6435_v41, %v3383_v10  ;;  %v95_v46 = vld [vmem:[%s8816_s2 + $0x48] sm:$0x38] }
 0x87f   :  { %v3796_v9 = vrot.slane %v95_v46, 3  ;;  %v3798_v10 = vrot.slane %v97_v49, 3  ;;  %v8936_v49 = vld [vmem:[#allocation20_spill] sm:$0xff] }
 0x880   :  { %v3390_v1 = vmul.f32 %v3386_v47, %v108_v11  ;;  %v3391_v61 = vmul.f32 %v3387_v3, %v108_v11  ;;  %v3392_v40 = vmul.f32 %v3388_v62, %v108_v11  ;;  %v3393_v0 = vmul.f32 %v3389_v14, %v108_v11 }
 0x882   :  { %v3394_v5 = vadd.f32 %v3390_v1, %v109_v42  ;;  %v3395_v36 = vadd.f32 %v3391_v61, %v109_v42  ;;  %v3396_v48 = vadd.f32 %v3392_v40, %v109_v42  ;;  %v3397_v17 = vadd.f32 %v3393_v0, %v109_v42 }
 0x883   :  { %v8927_v61 = vmov 0   ;;  %v8928_v40 = vmov 2  }
 0x884   :  { %v3414_v43 = vadd.f32 %v3403_v15, %v3394_v5  ;;  %v3415_v29 = vadd.f32 %v3405_v26, %v3395_v36  ;;  %v3416_v13 = vadd.f32 %v3407_v16, %v3396_v48  ;;  %v3417_v57 = vadd.f32 %v3409_v34, %v3397_v17 }
 0x885   :  { %v8929_v48 = vmov 1  }
 0x886   :  { %v3418_v21 = vadd.f32 %v3414_v43, %v110_v37  ;;  %v3419_v28 = vadd.f32 %v3415_v29, %v110_v37  ;;  %v3420_v20 = vadd.f32 %v3416_v13, %v110_v37  ;;  %v3421_v2 = vadd.f32 %v3417_v57, %v110_v37 }
 0x888   :  { %5201 = vmatmul.mubr.msk.f32.vlgmr.msra.gmra.mrb[46].mxu0 %vm3344_vm3, %v3418_v21  ;;  %5585 = vmatprep.mubr.msk.f32.mxu1 %vm3344_vm3, %v3418_v21 }
 0x889   :  { %5586 = vmatmul.mubr.msk.f32.vlgmr.msra.gmra.mrb[24].mxu1 %vm3344_vm3, %v3419_v28  ;;  %3504 = vmatprep.mubr.f32.mxu0 %v8920_v25 }
 0x88a   :  { %5588 = vmatprep.mubr.msk.f32.mxu1 %vm3344_vm3, %v3420_v20  ;;  %5592 = vmatpush3.xpose.msk.msra.mxu0 %vm418_vm4, %v8223_v12 }
 0x88b   :  { %3624 = vmatpush1.xpose.msra.mxu1 %v92_v35  ;;  %5950 = vmatprep.subr.bf16.mxu0 %v8913_v54 }
 0x88c   :  { %5202 = vmatmul.mubr.msk.f32.gmra.mrb[48].mxu0 %vm3344_vm3, %v3419_v28 }
 0x88d   :  { %5589 = vmatmul.mubr.msk.f32.gmra.mrb[26].mxu1 %vm3344_vm3, %v3421_v2  ;;  %3510 = vmatprep.mubr.f32.mxu0 %v8920_v25 }
 0x890   :  { %5203 = vmatmul.mubr.msk.f32.gmra.mrb[50].mxu0 %vm3344_vm3, %v3420_v20 }
 0x891   :  { %3516 = vmatprep.mubr.f32.mxu0 %v8920_v25 }
 0x894   :  { %5204 = vmatmul.mubr.msk.f32.gmra.mrb[52].mxu0 %vm3344_vm3, %v3421_v2 }
 0x95b   :  { %v3500_v24 = vpop.f32.mrb[46].mxu0 }
 0x95c   :  { %v3502_v44 = vpop.f32.mrb[47].mxu0  ;;  %v5587_v7 = vpop.f32.mrb[24].mxu1 }
 0x95d   :  { %v3589_v12 = vpop.f32.mrb[25].mxu1  ;;  %3687 = vmatprep.mubr.f32.mxu1 %v3502_v44 }
 0x95e   :  { %v8267_v50 = vpack.c.bf16 %v5587_v7, %v3589_v12  ;;  %3688 = vmatmul.mubr.f32.vlgmr.msra.gmra.mrb[28].mxu1 %v3500_v24  ;;  %5593 = vmatprep.mubr.msk.f32.mxu0 %vm418_vm4, %v3589_v12  ;;  %v8932_v12 = vld [vmem:[#allocation15_spill] sm:$0xff] }
 0x95f   :  { %v3506_v30 = vpop.f32.mrb[48].mxu0  ;;  %5594 = vmatmul.mubr.msk.f32.vlgmr.msra.gmra.mrb[54].mxu0 %vm418_vm4, %v5587_v7  ;;  %vm8933_vm0 = vcmp.gt.f32.partialorder %v8932_v12, 0.0 }
 0x960   :  { %v5936_v19 = vpack.c.bf16 %v3506_v30, %v3500_v24  ;;  %v3508_v22 = vpop.f32.mrb[49].mxu0  ;;  %v5590_v59 = vpop.f32.mrb[26].mxu1 }
 0x961   :  { %v5934_v52 = vpack.c.bf16 %v3508_v22, %v3502_v44  ;;  %v3599_v38 = vpop.f32.mrb[27].mxu1  ;;  %3692 = vmatprep.mubr.f32.mxu1 %v3508_v22  ;;  %v8930_v44 = vld [vmem:[#allocation16_spill] sm:$0xff] }
 0x962   :  { %v8278_v51 = vpack.c.bf16 %v5590_v59, %v3599_v38  ;;  %3693 = vmatmul.mubr.f32.gmra.mrb[30].mxu1 %v3506_v30  ;;  %5596 = vmatprep.mubr.msk.f32.mxu0 %vm418_vm4, %v3599_v38  ;;  %vm8931_vm12 = vcmp.gt.f32.partialorder %v8930_v44, 0.0  ;;  %v8946_v44 = vld [vmem:[#allocation22_spill] sm:$0xff] }
 0x963   :  { %5953 = vmatpush1.bf16.msk.msra.mxu0 %vm8274_vm13, %v5936_v19  ;;  %v3512_v27 = vpop.f32.mrb[50].mxu0  ;;  %5935 = vmatprep.subr.bf16.mxu1 %v5934_v52 }
 0x964   :  { %5597 = vmatmul.mubr.msk.f32.gmra.mrb[56].mxu0 %vm418_vm4, %v5590_v59  ;;  %v3514_v45 = vpop.f32.mrb[51].mxu0  ;;  %5937 = vmatpush1.bf16.xpose.msra.mxu1 %v5936_v19 }
 0x965   :  { %3697 = vmatprep.mubr.f32.mxu1 %v3514_v45  ;;  %5954 = vmatprep.subr.bf16.mxu0 %v8913_v54 }
 0x966   :  { %3698 = vmatmul.mubr.f32.gmra.mrb[32].mxu1 %v3512_v27  ;;  %4394 = vmatprep.mubr.f32.mxu0 %v8920_v25 }
 0x967   :  { %v3518_v31 = vpop.f32.mrb[52].mxu0 }
 0x968   :  { %v5940_v33 = vpack.c.bf16 %v3518_v31, %v3512_v27  ;;  %v3520_v63 = vpop.f32.mrb[53].mxu0 }
 0x969   :  { %v5938_v53 = vpack.c.bf16 %v3520_v63, %v3514_v45  ;;  %3702 = vmatprep.mubr.f32.mxu1 %v3520_v63 }
 0x96a   :  { %3703 = vmatmul.mubr.f32.gmra.mrb[34].mxu1 %v3518_v31  ;;  %5957 = vmatpush1.bf16.msk.msra.mxu0 %vm8274_vm13, %v5940_v33 }
 0x96b   :  { %5939 = vmatprep.subr.bf16.mxu1 %v5938_v53  ;;  %5960 = vmatprep.subr.msk.bf16.mxu0 %vm5959_vm2, %v5934_v52 }
 0x96c   :  { %5941 = vmatpush1.bf16.xpose.msra.mxu1 %v5940_v33  ;;  %3867 = vmatprep.mubr.f32.mxu1 %v3797_v32 }
 0x96d   :  { %5942 = vmatprep.subr.bf16.mxu1 %v8913_v54 }
 0x96e   :  { %5963 = vmatpush1.bf16.msk.msra.mxu0 %vm5962_vm14, %v5936_v19 }
 0x96f   :  { %5966 = vmatprep.subr.msk.bf16.mxu0 %vm5959_vm2, %v5938_v53  ;;  %vm8937_vm2 = vcmp.gt.f32.partialorder %v8936_v49, 0.0 }
 0x972   :  { %5969 = vmatpush1.bf16.msk.msra.mxu0 %vm5962_vm14, %v5940_v33 }
 0x973   :  { %5972 = vmatprep.subr.msk.bf16.mxu0 %vm5971_vm8, %v5934_v52  ;;  %3868 = vmatmul.mubr.f32.vlgmr.msra.gmra.mrb[36].mxu1 %v3796_v9 }
 0x974   :  { %5945 = vmatpush3.bf16.xpose.msk.msra.mxu1 %vm6616_vm5, %v8267_v50  ;;  %5607 = vmatprep.mubr.msk.f32.mxu1 %vm6535_vm7, %v8920_v25 }
 0x975   :  { %5946 = vmatprep.subr.bf16.mxu1 %v8913_v54 }
 0x976   :  { %5973 = vmatpush1.bf16.msra.mxu0 %v8913_v54 }
 0x977   :  { %5976 = vmatprep.subr.msk.bf16.mxu0 %vm5971_vm8, %v5938_v53  ;;  %v8934_v53 = vld [vmem:[#allocation19_spill] sm:$0xff] }
 0x978   :  { %vm8935_vm3 = vcmp.gt.f32.partialorder %v8934_v53, 0.0 }
 0x97a   :  { %5977 = vmatpush1.bf16.msra.mxu0 %v8913_v54 }
 0x97b   :  { %5978 = vmatprep.subr.bf16.mxu0 %v8913_v54 }
 0x97c   :  { %5949 = vmatpush3.bf16.xpose.msk.msra.mxu1 %vm6616_vm5, %v8278_v51 }
 0x983   :  { %5608 = vmatmul.mubr.msk.f32.vlgmr.msra.gmra.mrb[36].mxu1 %vm418_vm4, %v3798_v10 }
 0xa31   :  { %v3689_v58 = vpop.f32.mrb[28].mxu1 }
 0xa32   :  { %v3691_v39 = vpop.f32.mrb[29].mxu1  ;;  %v5595_v56 = vpop.f32.mrb[54].mxu0 }
 0xa33   :  { %v3774_v41 = vpop.f32.mrb[55].mxu0 }
 0xa34   :  { %v3775_v15 = vadd.f32 %v3774_v41, %v3689_v58 }
 0xa35   :  { %v3694_v11 = vpop.f32.mrb[30].mxu1 }
 0xa36   :  { %v3780_v47 = vadd.f32 %v5595_v56, %v3694_v11  ;;  %v3696_v3 = vpop.f32.mrb[31].mxu1  ;;  %3996 = vperm.xlu1 %6225, %v3775_v15   ;;  %3972 = vperm.xlu0 %6224, %v3775_v15  }
 0xa37   :  { %v5598_v62 = vpop.f32.mrb[56].mxu0 }
 0xa38   :  { %v3784_v14 = vpop.f32.mrb[57].mxu0 }
 0xa39   :  { %v3699_v42 = vpop.f32.mrb[32].mxu1 }
 0xa3a   :  { %v3785_v26 = vadd.f32 %v3784_v14, %v3699_v42  ;;  %v3701_v1 = vpop.f32.mrb[33].mxu1  ;;  %6226 = vset.pattern.permute.xlu1 %v8927_v61  ;;  %6228 = vset.pattern.permute.xlu0 %v8928_v40 }
 0xa3b   :  { %3945 = vperm.xlu1 %6226, %v3775_v15   ;;  %4000 = vperm.xlu0 %6228, %v3780_v47  }
 0xa3d   :  { %v3704_v0 = vpop.f32.mrb[34].mxu1 }
 0xa3e   :  { %v8322_v5 = vadd.f32 %v5598_v62, %v3704_v0  ;;  %v3706_v36 = vpop.f32.mrb[35].mxu1 }
 0xa3f   :  { %6227 = vset.pattern.permute.xlu1 %v8929_v48  ;;  %6230 = vset.pattern.permute.xlu0 %v8929_v48 }
 0xa40   :  { %3976 = vperm.xlu1 %6227, %v3780_v47   ;;  %3984 = vperm.xlu0 %6230, %v8322_v5  }
 0xa44   :  { %3980 = vperm.xlu1 %6227, %v3785_v26   ;;  %6231 = vset.pattern.permute.xlu0 %v8927_v61 }
 0xa45   :  { %3950 = vperm.xlu0 %6231, %v3780_v47   ;;  %v8938_v47 = vld [vmem:[#allocation21_spill] sm:$0xff] }
 0xa46   :  { %vm8939_vm8 = vcmp.gt.f32.partialorder %v8938_v47, 0.0 }
 0xa48   :  { %6229 = vset.pattern.permute.xlu1 %v8928_v40 }
 0xa49   :  { %4004 = vperm.xlu1 %6229, %v3785_v26   ;;  %3955 = vperm.xlu0 %6231, %v3785_v26  }
 0xa4d   :  { %4008 = vperm.xlu1 %6229, %v8322_v5   ;;  %6233 = vset.pattern.permute.xlu0 %v8928_v40  ;;  %v8940_v40 = vld [vmem:[#allocation25_spill] sm:$0xff] }
 0xa51   :  { %6232 = vset.pattern.permute.xlu1 %v8927_v61 }
 0xa56   :  { %v3939_v16 = vpop.f32.mrb[36].mxu1 }
 0xa57   :  { %v5609_v37 = vpop.f32.mrb[37].mxu1  ;;  %v3990_v17 = vrot.slane %v3939_v16, %v8923_v8  ;;  %v8334_v43 = vrot.slane %v3939_v16, %v8921_v4  ;;  %v3966_v41 = vrot.slane %v3939_v16, %v8922_v55 }
 0xab5   :  { %v3997_v29 = vpop.permute.xlu1 %3996  ;;  %v3973_v13 = vpop.permute.xlu0 %3972 }
 0xab6   :  { %v4015_v34 = vadd.f32 %v8334_v43, %v3997_v29  ;;  %v3991_v21 = vadd.f32 %v3990_v17, %v3973_v13 }
 0xab8   :  { %vm4027_vm5 = vcmp.gt.f32.partialorder %v4015_v34, 0.0  ;;  %v4039_v28 = vmul.f32 0.2, %v4015_v34  ;;  %vm4023_vm11 = vcmp.gt.f32.partialorder %v3991_v21, 0.0  ;;  %v4035_v57 = vmul.f32 0.2, %v3991_v21 }
 0xaba   :  { %v3946_v20 = vpop.permute.xlu1 %3945  ;;  %v4001_v35 = vpop.permute.xlu0 %4000  ;;  %v4051_v2 = vsel %vm4027_vm5, %v4015_v34, %v4039_v28  ;;  %v4047_v24 = vsel %vm4023_vm11, %v3991_v21, %v4035_v57  ;;  %vm8941_vm11 = vcmp.gt.f32.partialorder %v8940_v40, 0.0  ;;  %v8944_v57 = vld [vmem:[#allocation18_spill] sm:$0xff] }
 0xabb   :  { %v8339_v7 = vsel %vm8931_vm12, %v4051_v2, -1e+30  ;;  %v8343_v30 = vsel %vm8933_vm0, %v4047_v24, -1e+30  ;;  %v4016_v19 = vadd.f32 %v8334_v43, %v4001_v35  ;;  %v3967_v62 = vadd.f32 %v3966_v41, %v3946_v20 }
 0xabc   :  { %v4091_v22 = vsel %vm418_vm4, %v8339_v7, -inf  ;;  %v4079_v59 = vsel %vm418_vm4, %v8343_v30, -inf }
 0xabd   :  { %4092 = vmax.xlane.f32.xlu0 %v4091_v22  ;;  %4080 = vmax.xlane.f32.xlu1 %v4079_v59  ;;  %v4040_v52 = vmul.f32 0.2, %v4016_v19  ;;  %vm4028_vm1 = vcmp.gt.f32.partialorder %v4016_v19, 0.0  ;;  %v4031_v36 = vmul.f32 0.2, %v3967_v62  ;;  %vm4019_vm12 = vcmp.gt.f32.partialorder %v3967_v62, 0.0 }
 0xabe   :  { %v8948_v59 = vld [vmem:[#allocation24_spill] sm:$0xff] }
 0xabf   :  { %v3977_v23 = vpop.permute.xlu1 %3976  ;;  %v3985_v27 = vpop.permute.xlu0 %3984  ;;  %v4052_v32 = vsel %vm4028_vm1, %v4016_v19, %v4040_v52  ;;  %v4043_v21 = vsel %vm4019_vm12, %v3967_v62, %v4031_v36  ;;  %vm5987_vm12 = vmpackc.low %vm2329_vm6, %vm2329_vm6  ;;  %vm5088_vm6 = vcmask 74752  }
 0xac0   :  { %v3992_v38 = vadd.f32 %v3990_v17, %v3977_v23  ;;  %v3994_v31 = vadd.f32 %v3990_v17, %v3985_v27  ;;  %v8358_v10 = vsel %vm8937_vm2, %v4052_v32, -1e+30  ;;  %vm8949_vm2 = vcmp.gt.f32.partialorder %v8948_v59, 0.0 }
 0xac1   :  { %v4094_v15 = vsel %vm418_vm4, %v8358_v10, -inf }
 0xac2   :  { %vm4024_vm15 = vcmp.gt.f32.partialorder %v3992_v38, 0.0  ;;  %v4036_v45 = vmul.f32 0.2, %v3992_v38  ;;  %v4038_v58 = vmul.f32 0.2, %v3994_v31  ;;  %vm4026_vm14 = vcmp.gt.f32.partialorder %v3994_v31, 0.0 }
 0xac3   :  { %v3981_v18 = vpop.permute.xlu1 %3980 }
 0xac4   :  { %v3993_v33 = vadd.f32 %v3990_v17, %v3981_v18  ;;  %v4048_v63 = vsel %vm4024_vm15, %v3992_v38, %v4036_v45  ;;  %v3951_v11 = vpop.permute.xlu0 %3950  ;;  %v4050_v42 = vsel %vm4026_vm14, %v3994_v31, %v4038_v58  ;;  %vm8945_vm15 = vcmp.gt.f32.partialorder %v8944_v57, 0.0  ;;  %v8950_v18 = vld [vmem:[#allocation23_spill] sm:$0xff] }
 0xac5   :  { %v8352_v46 = vsel %vm8935_vm3, %v4048_v63, -1e+30  ;;  %v8373_v0 = vsel %vm8941_vm11, %v4050_v42, -1e+30  ;;  %v3968_v48 = vadd.f32 %v3966_v41, %v3951_v11  ;;  %v8385_v20 = vsel %vm8945_vm15, %v4043_v21, -1e+30 }
 0xac6   :  { %vm4025_vm13 = vcmp.gt.f32.partialorder %v3993_v33, 0.0  ;;  %v4037_v9 = vmul.f32 0.2, %v3993_v33  ;;  %v4082_v60 = vsel %vm418_vm4, %v8352_v46, -inf  ;;  %v4088_v17 = vsel %vm418_vm4, %v8373_v0, -inf  ;;  %v8952_v11 = vld [vmem:[#allocation27_spill] sm:$0xff] }
 0xac7   :  { %4083 = vmax.xlane.f32.xlu0 %v4082_v60  ;;  %v4032_v13 = vmul.f32 0.2, %v3968_v48  ;;  %vm4020_vm1 = vcmp.gt.f32.partialorder %v3968_v48, 0.0  ;;  %v4067_v24 = vsel %vm418_vm4, %v8385_v20, -inf  ;;  %vm8953_vm11 = vcmp.gt.f32.partialorder %v8952_v11, 0.0 }
 0xac8   :  { %v4005_v39 = vpop.permute.xlu1 %4004  ;;  %v4049_v56 = vsel %vm4025_vm13, %v3993_v33, %v4037_v9  ;;  %v3956_v16 = vpop.permute.xlu0 %3955  ;;  %vm8947_vm13 = vcmp.gt.f32.partialorder %v8946_v44, 0.0 }
 0xac9   :  { %v8365_v3 = vsel %vm8939_vm8, %v4049_v56, -1e+30  ;;  %v3969_v34 = vadd.f32 %v3966_v41, %v3956_v16  ;;  %v4044_v2 = vsel %vm4020_vm1, %v3968_v48, %v4032_v13  ;;  %v4017_v38 = vadd.f32 %v8334_v43, %v4005_v39 }
 0xaca   :  { %v4085_v1 = vsel %vm418_vm4, %v8365_v3, -inf  ;;  %v8391_v12 = vsel %vm8947_vm13, %v4044_v2, -1e+30  ;;  %vm8951_vm8 = vcmp.gt.f32.partialorder %v8950_v18, 0.0 }
 0xacb   :  { %4095 = vmax.xlane.f32.xlu0 %v4094_v15  ;;  %v4033_v35 = vmul.f32 0.2, %v3969_v34  ;;  %vm4021_vm3 = vcmp.gt.f32.partialorder %v3969_v34, 0.0  ;;  %v4070_v22 = vsel %vm418_vm4, %v8391_v12, -inf  ;;  %v4041_v27 = vmul.f32 0.2, %v4017_v38 }
 0xacc   :  { %v4009_v14 = vpop.permute.xlu1 %4008  ;;  %vm4029_vm14 = vcmp.gt.f32.partialorder %v4017_v38, 0.0 }
 0xacd   :  { %v4018_v26 = vadd.f32 %v8334_v43, %v4009_v14  ;;  %v4045_v19 = vsel %vm4021_vm3, %v3969_v34, %v4033_v35  ;;  %v4053_v45 = vsel %vm4029_vm14, %v4017_v38, %v4041_v27 }
 0xace   :  { %3960 = vperm.xlu1 %6232, %v8322_v5   ;;  %v8942_v5 = vld [vmem:[#allocation26_spill] sm:$0xff]  ;;  %v8397_v23 = vsel %vm8949_vm2, %v4045_v19, -1e+30  ;;  %v8404_v31 = vsel %vm8951_vm8, %v4053_v45, -1e+30 }
 0xacf   :  { %vm4030_vm5 = vcmp.gt.f32.partialorder %v4018_v26, 0.0  ;;  %v4042_v61 = vmul.f32 0.2, %v4018_v26  ;;  %4086 = vmax.xlane.f32.xlu0 %v4085_v1  ;;  %vm8943_vm0 = vcmp.gt.f32.partialorder %v8942_v5, 0.0  ;;  %v4073_v52 = vsel %vm418_vm4, %v8397_v23, -inf }
 0xad0   :  { %v4097_v33 = vsel %vm418_vm4, %v8404_v31, -inf }
 0xad1   :  { %v4054_v37 = vsel %vm4030_vm5, %v4018_v26, %v4042_v61 }
 0xad2   :  { %v8379_v29 = vsel %vm8943_vm0, %v4054_v37, -1e+30 }
 0xad3   :  { %4089 = vmax.xlane.f32.xlu0 %v4088_v17  ;;  %v4100_v28 = vsel %vm418_vm4, %v8379_v29, -inf }
 0xad7   :  { %4101 = vmax.xlane.f32.xlu0 %v4100_v28 }
 0xadb   :  { %4068 = vmax.xlane.f32.xlu0 %v4067_v24 }
 0xadf   :  { %4071 = vmax.xlane.f32.xlu0 %v4070_v22 }
 0xae3   :  { %4074 = vmax.xlane.f32.xlu0 %v4073_v52 }
 0xaf2   :  { %4098 = vmax.xlane.f32.xlu1 %v4097_v33 }
 0xb4a   :  { %v4093_v63 = vpop.xlane.xlu0 %4092  ;;  %v4081_v32 = vpop.xlane.xlu1 %4080 }
 0xb4b   :  { %v4111_v53 = vsub.f32 %v8339_v7, %v4093_v63  ;;  %v4107_v9 = vsub.f32 %v8343_v30, %v4081_v32 }
 0xb4d   :  { %v4123_v60 = vmul.f32 1.442695, %v4107_v9  ;;  %v4131_v43 = vmul.f32 1.442695, %v4111_v53 }
 0xb4e   :  { %v3961_v49 = vpop.permute.xlu1 %3960 }
 0xb4f   :  { %v3970_v58 = vadd.f32 %v3966_v41, %v3961_v49  ;;  %6436 = vpow2.f32 %v4123_v60 }
 0xb50   :  { %6438 = vpow2.f32 %v4131_v43 }
 0xb51   :  { %vm4022_vm5 = vcmp.gt.f32.partialorder %v3970_v58, 0.0  ;;  %v4034_v39 = vmul.f32 0.2, %v3970_v58 }
 0xb53   :  { %v4046_v56 = vsel %vm4022_vm5, %v3970_v58, %v4034_v39 }
 0xb54   :  { %v4084_v15 = vpop.xlane.xlu0 %4083  ;;  %v8412_v47 = vsel %vm8953_vm11, %v4046_v56, -1e+30 }
 0xb55   :  { %v4108_v62 = vsub.f32 %v8352_v46, %v4084_v15  ;;  %v4076_v7 = vsel %vm418_vm4, %v8412_v47, -inf }
 0xb56   :  { %4077 = vmax.xlane.f32.xlu0 %v4076_v7 }
 0xb57   :  { %v4125_v30 = vmul.f32 1.442695, %v4108_v62 }
 0xb58   :  { %v4096_v14 = vpop.xlane.xlu0 %4095 }
 0xb59   :  { %6440 = vpow2.f32 %v4125_v30  ;;  %v4112_v41 = vsub.f32 %v8358_v10, %v4096_v14  ;;  %v8418_v42 = vpop.eup %6436 }
 0xb5a   :  { %v4151_v1 = vsel %vm418_vm4, %v8418_v42, 0.0  ;;  %v8422_v61 = vpop.eup %6438 }
 0xb5b   :  { %v4133_v26 = vmul.f32 1.442695, %v4112_v41  ;;  %4152 = vadd.xlane.f32.xlu0 %v4151_v1  ;;  %v4163_v48 = vsel %vm418_vm4, %v8422_v61, 0.0 }
 0xb5c   :  { %v4087_v40 = vpop.xlane.xlu0 %4086 }
 0xb5d   :  { %6442 = vpow2.f32 %v4133_v26  ;;  %v4109_v46 = vsub.f32 %v8365_v3, %v4087_v40 }
 0xb5f   :  { %v4127_v36 = vmul.f32 1.442695, %v4109_v46  ;;  %4164 = vadd.xlane.f32.xlu0 %v4163_v48 }
 0xb60   :  { %v4090_v16 = vpop.xlane.xlu0 %4089 }
 0xb61   :  { %6444 = vpow2.f32 %v4127_v36  ;;  %v4110_v10 = vsub.f32 %v8373_v0, %v4090_v16 }
 0xb63   :  { %v8428_v37 = vpop.eup %6440  ;;  %v4129_v17 = vmul.f32 1.442695, %v4110_v10 }
 0xb64   :  { %v4102_v5 = vpop.xlane.xlu0 %4101  ;;  %v4154_v13 = vsel %vm418_vm4, %v8428_v37, 0.0 }
 0xb65   :  { %6446 = vpow2.f32 %v4129_v17  ;;  %4155 = vadd.xlane.f32.xlu0 %v4154_v13  ;;  %v4114_v38 = vsub.f32 %v8379_v29, %v4102_v5 }
 0xb67   :  { %v8432_v34 = vpop.eup %6442 }
 0xb68   :  { %v4069_v3 = vpop.xlane.xlu0 %4068  ;;  %v4166_v21 = vsel %vm418_vm4, %v8432_v34, 0.0 }
 0xb69   :  { %v4103_v28 = vsub.f32 %v8385_v20, %v4069_v3  ;;  %4167 = vadd.xlane.f32.xlu1 %v4166_v21 }
 0xb6b   :  { %v8437_v57 = vpop.eup %6444  ;;  %v4115_v0 = vmul.f32 1.442695, %v4103_v28 }
 0xb6c   :  { %v4072_v35 = vpop.xlane.xlu0 %4071  ;;  %v4157_v2 = vsel %vm418_vm4, %v8437_v57, 0.0 }
 0xb6d   :  { %6448 = vpow2.f32 %v4115_v0  ;;  %4158 = vadd.xlane.f32.xlu0 %v4157_v2  ;;  %v4104_v63 = vsub.f32 %v8391_v12, %v4072_v35 }
 0xb6f   :  { %v8441_v24 = vpop.eup %6446  ;;  %v4117_v53 = vmul.f32 1.442695, %v4104_v63 }
 0xb70   :  { %v4075_v44 = vpop.xlane.xlu0 %4074  ;;  %v4160_v19 = vsel %vm418_vm4, %v8441_v24, 0.0 }
 0xb71   :  { %v4105_v22 = vsub.f32 %v8397_v23, %v4075_v44  ;;  %4161 = vadd.xlane.f32.xlu0 %v4160_v19  ;;  %v4137_v23 = vmul.f32 1.442695, %v4114_v38 }
 0xb73   :  { %v4119_v20 = vmul.f32 1.442695, %v4105_v22 }
 0xb75   :  { %6450 = vpow2.f32 %v4119_v20 }
 0xb77   :  { %v8446_v59 = vpop.eup %6448 }
 0xb78   :  { %v4139_v52 = vsel %vm418_vm4, %v8446_v59, 0.0 }
 0xb79   :  { %4140 = vadd.xlane.f32.xlu0 %v4139_v52 }
 0xb7f   :  { %v8451_v27 = vpop.eup %6450  ;;  %v4099_v45 = vpop.xlane.xlu1 %4098 }
 0xb80   :  { %v4113_v18 = vsub.f32 %v8404_v31, %v4099_v45  ;;  %v4145_v33 = vsel %vm418_vm4, %v8451_v27, 0.0 }
 0xb81   :  { %4146 = vadd.xlane.f32.xlu0 %v4145_v33 }
 0xb82   :  { %v4135_v32 = vmul.f32 1.442695, %v4113_v18 }
 0xb84   :  { %6452 = vpow2.f32 %v4135_v32 }
 0xb85   :  { %6454 = vpow2.f32 %v4137_v23 }
 0xb86   :  { %6456 = vpow2.f32 %v4117_v53 }
 0xb8e   :  { %v6453_v9 = vpop.eup %6452 }
 0xb8f   :  { %v4169_v29 = vsel %vm418_vm4, %v6453_v9, 0.0  ;;  %v6455_v60 = vpop.eup %6454 }
 0xb90   :  { %4170 = vadd.xlane.f32.xlu1 %v4169_v29  ;;  %v4172_v43 = vsel %vm418_vm4, %v6455_v60, 0.0  ;;  %v8459_v31 = vpop.eup %6456 }
 0xb91   :  { %v4142_v49 = vsel %vm418_vm4, %v8459_v31, 0.0 }
 0xb94   :  { %4173 = vadd.xlane.f32.xlu1 %v4172_v43 }
 0xb98   :  { %4143 = vadd.xlane.f32.xlu1 %v4142_v49  ;;  %v198_v49 = vld [vmem:[%s8818_s4 + $0x1a8] sm:$0xff] }
 0xbe3   :  { %v4078_v12 = vpop.xlane.xlu0 %4077 }
 0xbe4   :  { %v4106_v58 = vsub.f32 %v8412_v47, %v4078_v12 }
 0xbe6   :  { %v4121_v39 = vmul.f32 1.442695, %v4106_v58  ;;  %v181_v58 = vld [vmem:[%s8818_s4 + $0x120] sm:$0xff] }
 0xbe8   :  { %6458 = vpow2.f32 %v4121_v39  ;;  %v4153_v56 = vpop.xlane.xlu0 %4152  ;;  %v182_v39 = vld [vmem:[%s8818_s4 + $0x128] sm:$0xff] }
 0xbe9   :  { %6460 = vrcp.f32 %v4153_v56  ;;  %v6000_v56 = vpack.c.bf16 %v182_v39, %v181_v58 }
 0xbec   :  { %v4165_v11 = vpop.xlane.xlu0 %4164 }
 0xbed   :  { %6462 = vrcp.f32 %v4165_v11  ;;  %v200_v11 = vld [vmem:[%s8818_s4 + $0x1b8] sm:$0xff] }
 0xbf2   :  { %v8464_v15 = vpop.eup %6458  ;;  %v4156_v14 = vpop.xlane.xlu0 %4155 }
 0xbf3   :  { %v4148_v62 = vsel %vm418_vm4, %v8464_v15, 0.0  ;;  %v6461_v7 = vpop.eup %6460 }
 0xbf4   :  { %4149 = vadd.xlane.f32.xlu1 %v4148_v62  ;;  %v4191_v30 = vmul.f32 %v6461_v7, %v8418_v42  ;;  %v183_v7 = vld [vmem:[%s8818_s4 + $0x130] sm:$0xff] }
 0xbf6   :  { %v4168_v41 = vpop.xlane.xlu1 %4167  ;;  %4203 = vrot.lane.b32.xlu0 %v4191_v30, %s6531_s21  ;;  %v184_v30 = vld [vmem:[%s8818_s4 + $0x138] sm:$0xff] }
 0xbf7   :  { %6464 = vrcp.f32 %v4168_v41  ;;  %v6463_v1 = vpop.eup %6462  ;;  %v201_v41 = vld [vmem:[%s8818_s4 + $0x1c0] sm:$0xff] }
 0xbf8   :  { %6466 = vrcp.f32 %v4156_v14  ;;  %v4195_v36 = vmul.f32 %v6463_v1, %v8422_v61  ;;  %v6004_v14 = vpack.c.bf16 %v184_v30, %v183_v7  ;;  %v185_v1 = vld [vmem:[%s8818_s4 + $0x140] sm:$0xff] }
 0xbfa   :  { %v4159_v47 = vpop.xlane.xlu0 %4158 }
 0xbfb   :  { %6468 = vrcp.f32 %v4159_v47  ;;  %v202_v47 = vld [vmem:[%s8818_s4 + $0x1c8] sm:$0xff] }
 0xbfe   :  { %v4162_v26 = vpop.xlane.xlu0 %4161 }
 0xbff   :  { %6470 = vrcp.f32 %v4162_v26  ;;  %v6006_v26 = vpack.c.bf16 %v202_v47, %v201_v41 }
 0xc01   :  { %v6465_v40 = vpop.eup %6464 }
 0xc02   :  { %v4196_v46 = vmul.f32 %v6465_v40, %v8432_v34  ;;  %v6467_v48 = vpop.eup %6466  ;;  %v186_v40 = vld [vmem:[%s8818_s4 + $0x148] sm:$0xff] }
 0xc03   :  { %v4192_v42 = vmul.f32 %v6467_v48, %v8428_v37  ;;  %v204_v48 = vld [vmem:[%s8818_s4 + $0x1d8] sm:$0xff] }
 0xc04   :  { %4221 = vrot.lane.b32.xlu0 %v4196_v46, %s6532_s22  ;;  %v6008_v46 = vpack.c.bf16 %v186_v40, %v185_v1 }
 0xc05   :  { %4219 = vrot.lane.b32.xlu1 %v4195_v36, %s6532_s22  ;;  %v6469_v16 = vpop.eup %6468  ;;  %v203_v36 = vld [vmem:[%s8818_s4 + $0x1d0] sm:$0xff] }
 0xc06   :  { %v4193_v10 = vmul.f32 %v6469_v16, %v8437_v57  ;;  %v4141_v28 = vpop.xlane.xlu0 %4140  ;;  %v187_v16 = vld [vmem:[%s8818_s4 + $0x150] sm:$0xff] }
 0xc09   :  { %4205 = vrot.lane.b32.xlu1 %v4192_v42, %s6531_s21  ;;  %v6471_v17 = vpop.eup %6470  ;;  %v6010_v42 = vpack.c.bf16 %v204_v48, %v203_v36 }
 0xc0a   :  { %v4194_v5 = vmul.f32 %v6471_v17, %v8441_v24 }
 0xc0d   :  { %4207 = vrot.lane.b32.xlu1 %v4193_v10, %s6531_s21  ;;  %v188_v10 = vld [vmem:[%s8818_s4 + $0x158] sm:$0xff] }
 0xc0e   :  { %v4147_v0 = vpop.xlane.xlu0 %4146  ;;  %v6012_v17 = vpack.c.bf16 %v188_v10, %v187_v16 }
 0xc11   :  { %4209 = vrot.lane.b32.xlu1 %v4194_v5, %s6531_s21  ;;  %v205_v5 = vld [vmem:[%s8818_s4 + $0x1e0] sm:$0xff] }
 0xc1d   :  { %v4171_v61 = vpop.xlane.xlu1 %4170 }
 0xc1e   :  { %6472 = vrcp.f32 %v4171_v61  ;;  %v206_v61 = vld [vmem:[%s8818_s4 + $0x1e8] sm:$0xff] }
 0xc21   :  { %v4174_v13 = vpop.xlane.xlu1 %4173 }
 0xc22   :  { %6474 = vrcp.f32 %v4174_v13  ;;  %v6014_v13 = vpack.c.bf16 %v206_v61, %v205_v5 }
 0xc23   :  { %6476 = vrcp.f32 %v4141_v28  ;;  %v208_v28 = vld [vmem:[%s8818_s4 + $0x1f8] sm:$0xff] }
 0xc25   :  { %v4144_v57 = vpop.xlane.xlu1 %4143 }
 0xc26   :  { %6478 = vrcp.f32 %v4144_v57 }
 0xc27   :  { %6480 = vrcp.f32 %v4147_v0  ;;  %v191_v0 = vld [vmem:[%s8818_s4 + $0x170] sm:$0xff] }
 0xc28   :  { %v6473_v34 = vpop.eup %6472 }
 0xc29   :  { %v4197_v3 = vmul.f32 %v6473_v34, %v6453_v9  ;;  %v189_v34 = vld [vmem:[%s8818_s4 + $0x160] sm:$0xff] }
 0xc2b   :  { %4223 = vrot.lane.b32.xlu0 %v4197_v3, %s6532_s22  ;;  %v190_v3 = vld [vmem:[%s8818_s4 + $0x168] sm:$0xff] }
 0xc2c   :  { %v6475_v37 = vpop.eup %6474 }
 0xc2d   :  { %v4198_v21 = vmul.f32 %v6475_v37, %v6455_v60  ;;  %v6477_v35 = vpop.eup %6476  ;;  %v6016_v37 = vpack.c.bf16 %v190_v3, %v189_v34 }
 0xc2e   :  { %v4187_v44 = vmul.f32 %v6477_v35, %v8446_v59  ;;  %v192_v35 = vld [vmem:[%s8818_s4 + $0x178] sm:$0xff] }
 0xc2f   :  { %4225 = vrot.lane.b32.xlu0 %v4198_v21, %s6532_s22  ;;  %v207_v21 = vld [vmem:[%s8818_s4 + $0x1f0] sm:$0xff] }
 0xc30   :  { %v6479_v19 = vpop.eup %6478  ;;  %v6018_v57 = vpack.c.bf16 %v208_v28, %v207_v21 }
 0xc31   :  { %v4188_v38 = vmul.f32 %v6479_v19, %v8459_v31  ;;  %v6481_v23 = vpop.eup %6480 }
 0xc32   :  { %v4189_v32 = vmul.f32 %v6481_v23, %v8451_v27 }
 0xc68   :  { %v4204_v24 = vpop.permute.xlu0 %4203 }
 0xc69   :  { %v4231_v22 = vsel %vm418_vm4, %v4187_v44, %v4204_v24  ;;  %v209_v24 = vld [vmem:[%s8818_s4 + $0x200] sm:$0xff]  ;;  %v210_v44 = vld [vmem:[%s8818_s4 + $0x208] sm:$0xff] }
 0xc6a   :  { %v6022_v19 = vpack.c.bf16 %v210_v44, %v209_v24 }
 0xc76   :  { %v4222_v18 = vpop.permute.xlu0 %4221 }
 0xc81   :  { %v4150_v2 = vpop.xlane.xlu1 %4149 }
 0xc82   :  { %6482 = vrcp.f32 %v4150_v2  ;;  %v6020_v2 = vpack.c.bf16 %v192_v35, %v191_v0 }
 0xc85   :  { %v4220_v20 = vpop.permute.xlu1 %4219 }
 0xc86   :  { %v4235_v52 = vsel %vm1989_vm9, %v4231_v22, %v4220_v20  ;;  %v193_v22 = vld [vmem:[%s8818_s4 + $0x180] sm:$0xff]  ;;  %v194_v20 = vld [vmem:[%s8818_s4 + $0x188] sm:$0xff] }
 0xc87   :  { %5235 = vmatmul.mubr.msk.f32.vlgmr.msra.gmra.mrb[58].mxu0 %vm1994_vm10, %v4235_v52 }
 0xc88   :  { %5979 = vmatpush3.bf16.msra.mxu0 %v8913_v54  ;;  %4400 = vmatprep.mubr.f32.mxu0 %v8920_v25 }
 0xc89   :  { %v4206_v45 = vpop.permute.xlu1 %4205  ;;  %5980 = vmatprep.subr.bf16.mxu0 %v8913_v54 }
 0xc8a   :  { %v4232_v59 = vsel %vm418_vm4, %v4188_v38, %v4206_v45  ;;  %v211_v38 = vld [vmem:[%s8818_s4 + $0x210] sm:$0xff]  ;;  %v212_v45 = vld [vmem:[%s8818_s4 + $0x218] sm:$0xff] }
 0xc8b   :  { %v4236_v33 = vsel %vm1989_vm9, %v4232_v59, %v4222_v18  ;;  %v6026_v18 = vpack.c.bf16 %v212_v45, %v211_v38  ;;  %v195_v59 = vld [vmem:[%s8818_s4 + $0x190] sm:$0xff] }
 0xc8c   :  { %5981 = vmatpush3.bf16.msra.mxu0 %v8913_v54  ;;  %v6483_v53 = vpop.eup %6482 }
 0xc8d   :  { %5236 = vmatmul.mubr.msk.f32.gmra.mrb[60].mxu0 %vm1994_vm10, %v4236_v33  ;;  %5982 = vmatprep.subr.bf16.mxu0 %v8913_v54  ;;  %v4208_v63 = vpop.permute.xlu1 %4207  ;;  %v4190_v43 = vmul.f32 %v6483_v53, %v8464_v15  ;;  %v199_v15 = vld [vmem:[%s8818_s4 + $0x1b0] sm:$0xff] }
 0xc8e   :  { %4406 = vmatprep.mubr.f32.mxu0 %v8920_v25  ;;  %v4233_v9 = vsel %vm418_vm4, %v4189_v32, %v4208_v63  ;;  %v6002_v62 = vpack.c.bf16 %v200_v11, %v199_v15  ;;  %v213_v63 = vld [vmem:[%s8818_s4 + $0x220] sm:$0xff]  ;;  %v214_v32 = vld [vmem:[%s8818_s4 + $0x228] sm:$0xff]  ;;  %v215_v53 = vld [vmem:[%s8818_s4 + $0x230] sm:$0xff] }
 0xc90   :  { %5983 = vmatpush3.bf16.msra.mxu0 %v8913_v54 }
 0xc91   :  { %5984 = vmatprep.subr.bf16.mxu0 %v8913_v54  ;;  %v4210_v29 = vpop.permute.xlu1 %4209 }
 0xc94   :  { %5985 = vmatpush3.bf16.msra.mxu0 %v8913_v54 }
 0xc95   :  { %5988 = vmatprep.subr.msk.bf16.mxu0 %vm5987_vm12, %v8267_v50 }
 0xc98   :  { %5991 = vmatpush3.bf16.msk.msra.mxu0 %vm5987_vm12, %v8267_v50  ;;  %v4234_v50 = vsel %vm418_vm4, %v4190_v43, %v4210_v29 }
 0xc99   :  { %5994 = vmatprep.subr.msk.bf16.mxu0 %vm5987_vm12, %v8278_v51 }
 0xc9c   :  { %5997 = vmatpush3.bf16.msk.msra.mxu0 %vm5987_vm12, %v8278_v51  ;;  %v197_v51 = vld [vmem:[%s8818_s4 + $0x1a0] sm:$0xff] }
 0xc9d   :  { %v4224_v6 = vpop.permute.xlu0 %4223  ;;  %v5998_v12 = vpack.c.bf16 %v198_v49, %v197_v51 }
 0xc9e   :  { %v4237_v60 = vsel %vm1989_vm9, %v4233_v9, %v4224_v6  ;;  %v6030_v9 = vpack.c.bf16 %v214_v32, %v213_v63  ;;  %v216_v6 = vld [vmem:[%s8818_s4 + $0x238] sm:$0xff] }
 0xc9f   :  { %5237 = vmatmul.mubr.msk.f32.gmra.mrb[62].mxu0 %vm1994_vm10, %v4237_v60  ;;  %5999 = vmatprep.subr.bf16.mxu1 %v5998_v12  ;;  %v6034_v29 = vpack.c.bf16 %v216_v6, %v215_v53 }
 0xca0   :  { %4412 = vmatprep.mubr.f32.mxu0 %v8920_v25  ;;  %6001 = vmatpush3.bf16.msra.mxu1 %v6000_v56 }
 0xca1   :  { %v4226_v31 = vpop.permute.xlu0 %4225  ;;  %6003 = vmatprep.subr.bf16.mxu1 %v6002_v62  ;;  %6031 = vmatprep.subr.bf16.mxu0 %v6030_v9 }
 0xca2   :  { %v4238_v27 = vsel %vm1989_vm9, %v4234_v50, %v4226_v31 }
 0xca3   :  { %5238 = vmatmul.mubr.msk.f32.gmra.mrb[64].mxu0 %vm1994_vm10, %v4238_v27 }
 0xca4   :  { %5634 = vmatprep.mubr.msk.f32.mxu0 %vm1994_vm10, %v4235_v52  ;;  %6005 = vmatpush3.bf16.msra.mxu1 %v6004_v14  ;;  %v6024_v52 = vpack.c.bf16 %v194_v20, %v193_v22 }
 0xca5   :  { %6007 = vmatprep.subr.bf16.mxu1 %v6006_v26 }
 0xca7   :  { %5635 = vmatmul.mubr.msk.f32.vlgmr.msra.gmra.mrb[66].mxu0 %vm1994_vm10, %v4236_v33  ;;  %v196_v33 = vld [vmem:[%s8818_s4 + $0x198] sm:$0xff] }
 0xca8   :  { %5637 = vmatprep.mubr.msk.f32.mxu0 %vm1994_vm10, %v4237_v60  ;;  %6009 = vmatpush3.bf16.msra.mxu1 %v6008_v46  ;;  %v6028_v23 = vpack.c.bf16 %v196_v33, %v195_v59  ;;  %v5107_v60 = vld [vmem:[%s8816_s2 + $0x78] ss:$8 sm:$0x7] }
 0xca9   :  { %6011 = vmatprep.subr.bf16.mxu1 %v6010_v42  ;;  %6033 = vmatpush3.bf16.msra.mxu0 %v6030_v9  ;;  %v4306_v50 = vrot.slane %v5107_v60, %v8922_v55 }
 0xcaa   :  { %6035 = vmatprep.subr.bf16.mxu0 %v6034_v29 }
 0xcab   :  { %5638 = vmatmul.mubr.msk.f32.gmra.mrb[68].mxu0 %vm1994_vm10, %v4238_v27  ;;  %v4310_v27 = vrot.slane %v5107_v60, %v8923_v8 }
 0xcac   :  { %6013 = vmatpush3.bf16.msra.mxu1 %v6012_v17 }
 0xcad   :  { %6015 = vmatprep.subr.bf16.mxu1 %v6014_v13  ;;  %6037 = vmatpush3.bf16.msra.mxu0 %v6034_v29  ;;  %v4314_v13 = vrot.slane %v5107_v60, %v8921_v4 }
 0xcae   :  { %6038 = vmatprep.subr.bf16.mxu0 %v8913_v54 }
 0xcb0   :  { %6017 = vmatpush3.bf16.msra.mxu1 %v6016_v37 }
 0xcb1   :  { %6019 = vmatprep.subr.bf16.mxu1 %v6018_v57 }
 0xcb4   :  { %6021 = vmatpush3.bf16.msra.mxu1 %v6020_v2 }
 0xcb5   :  { %6023 = vmatprep.subr.bf16.mxu1 %v6022_v19 }
 0xcb8   :  { %6025 = vmatpush3.bf16.msra.mxu1 %v6024_v52 }
 0xcb9   :  { %6027 = vmatprep.subr.bf16.mxu1 %v6026_v18 }
 0xcbc   :  { %6029 = vmatpush3.bf16.msra.mxu1 %v6028_v23 }
 0xcbd   :  { %6044 = vmatprep.subr.bf16.mxu1 %v8913_v54 }
 0xd5a   :  { %v4396_v43 = vpop.f32.mrb[58].mxu0 }
 0xd5b   :  { %v4398_v31 = vpop.f32.mrb[59].mxu0  ;;  %v8634_v51 = vadd.f32 %v4396_v43, %v4306_v50 }
 0xd5c   :  { %v8636_v49 = vadd.f32 %v4398_v31, %v4310_v27 }
 0xd5d   :  { %v4538_v15 = vmul.f32 %v8634_v51, %v8634_v51 }
 0xd5e   :  { %v4539_v7 = vmul.f32 %v8636_v49, %v8636_v49 }
 0xd60   :  { %v4402_v12 = vpop.f32.mrb[60].mxu0 }
 0xd61   :  { %v8638_v58 = vadd.f32 %v4402_v12, %v4306_v50  ;;  %v4404_v39 = vpop.f32.mrb[61].mxu0 }
 0xd62   :  { %v8640_v56 = vadd.f32 %v4404_v39, %v4310_v27 }
 0xd63   :  { %v4504_v11 = vadd.f32 %v8638_v58, %v8634_v51  ;;  %v4541_v62 = vmul.f32 %v8638_v58, %v8638_v58 }
 0xd64   :  { %v4513_v30 = vadd.f32 %v8640_v56, %v8636_v49  ;;  %v4542_v14 = vmul.f32 %v8640_v56, %v8640_v56 }
 0xd65   :  { %v4550_v41 = vadd.f32 %v4541_v62, %v4538_v15 }
 0xd66   :  { %v4559_v47 = vadd.f32 %v4542_v14, %v4539_v7 }
 0xd72   :  { %v4408_v26 = vpop.f32.mrb[62].mxu0 }
 0xd73   :  { %v8654_v1 = vadd.f32 %v4408_v26, %v4306_v50  ;;  %v4410_v40 = vpop.f32.mrb[63].mxu0 }
 0xd74   :  { %v8656_v46 = vadd.f32 %v4410_v40, %v4310_v27 }
 0xd75   :  { %v4505_v36 = vadd.f32 %v4504_v11, %v8654_v1  ;;  %v4544_v48 = vmul.f32 %v8654_v1, %v8654_v1 }
 0xd76   :  { %v4514_v42 = vadd.f32 %v4513_v30, %v8656_v46  ;;  %v4545_v16 = vmul.f32 %v8656_v46, %v8656_v46  ;;  %v4414_v10 = vpop.f32.mrb[64].mxu0 }
 0xd77   :  { %v4551_v17 = vadd.f32 %v4550_v41, %v4544_v48  ;;  %v8664_v5 = vadd.f32 %v4414_v10, %v4306_v50  ;;  %v4416_v61 = vpop.f32.mrb[65].mxu0 }
 0xd78   :  { %v4560_v34 = vadd.f32 %v4559_v47, %v4545_v16  ;;  %v8667_v3 = vadd.f32 %v4416_v61, %v4310_v27 }
 0xd79   :  { %v4506_v37 = vadd.f32 %v4505_v36, %v8664_v5  ;;  %v4547_v21 = vmul.f32 %v8664_v5, %v8664_v5 }
 0xd7a   :  { %v4515_v28 = vadd.f32 %v4514_v42, %v8667_v3  ;;  %v4548_v57 = vmul.f32 %v8667_v3, %v8667_v3  ;;  %v5636_v0 = vpop.f32.mrb[66].mxu0 }
 0xd7b   :  { %v4507_v35 = vrot.slane %v4506_v37, 4  ;;  %v4552_v2 = vadd.f32 %v4551_v17, %v4547_v21  ;;  %v8675_v24 = vadd.f32 %v5636_v0, %v4314_v13  ;;  %v4485_v44 = vpop.f32.mrb[67].mxu0 }
 0xd7c   :  { %v4516_v19 = vrot.slane %v4515_v28, 4  ;;  %v4561_v22 = vadd.f32 %v4560_v34, %v4548_v57  ;;  %v8677_v20 = vadd.f32 %v4485_v44, %v4314_v13 }
 0xd7d   :  { %v4508_v52 = vadd.f32 %v4507_v35, %v4506_v37  ;;  %v4553_v38 = vrot.slane %v4552_v2, 4  ;;  %v4523_v45 = vsel %vm418_vm4, %v8675_v24, 0.0  ;;  %v4543_v18 = vmul.f32 %v8675_v24, %v8675_v24 }
 0xd7e   :  { %v4517_v59 = vadd.f32 %v4516_v19, %v4515_v28  ;;  %v4562_v33 = vrot.slane %v4561_v22, 4  ;;  %v4522_v23 = vsel %vm418_vm4, %v8677_v20, 0.0  ;;  %v4540_v63 = vmul.f32 %v8677_v20, %v8677_v20  ;;  %v5639_v32 = vpop.f32.mrb[68].mxu0 }
 0xd7f   :  { %v4509_v53 = vrot.slane %v4508_v52, 2  ;;  %v4554_v9 = vadd.f32 %v4553_v38, %v4552_v2  ;;  %v4569_v6 = vsel %vm418_vm4, %v4543_v18, 0.0  ;;  %v4524_v29 = vadd.f32 %v4523_v45, %v4522_v23  ;;  %v4495_v60 = vpop.f32.mrb[69].mxu0 }
 0xd80   :  { %v4518_v43 = vrot.slane %v4517_v59, 2  ;;  %v4563_v50 = vadd.f32 %v4562_v33, %v4561_v22  ;;  %v4568_v31 = vsel %vm418_vm4, %v4540_v63, 0.0  ;;  %v8689_v27 = vadd.f32 %v5639_v32, %v4314_v13 }
 0xd81   :  { %v4510_v12 = vadd.f32 %v4509_v53, %v4508_v52  ;;  %v4555_v39 = vrot.slane %v4554_v9, 2  ;;  %v4570_v15 = vadd.f32 %v4569_v6, %v4568_v31  ;;  %v8691_v11 = vadd.f32 %v4495_v60, %v4314_v13 }
 0xd82   :  { %v4519_v62 = vadd.f32 %v4518_v43, %v4517_v59  ;;  %v4564_v7 = vrot.slane %v4563_v50, 2  ;;  %v4549_v30 = vmul.f32 %v8689_v27, %v8689_v27  ;;  %v4527_v10 = vsel %vm418_vm4, %v8689_v27, 0.0 }
 0xd83   :  { %v4511_v14 = vrot.slane %v4510_v12, 1  ;;  %v4556_v41 = vadd.f32 %v4555_v39, %v4554_v9  ;;  %v4525_v47 = vsel %vm418_vm4, %v8691_v11, 0.0  ;;  %v4546_v26 = vmul.f32 %v8691_v11, %v8691_v11 }
 0xd84   :  { %v4520_v40 = vrot.slane %v4519_v62, 1  ;;  %v4565_v36 = vadd.f32 %v4564_v7, %v4563_v50  ;;  %v4526_v48 = vadd.f32 %v4525_v47, %v4524_v29  ;;  %v4573_v57 = vsel %vm418_vm4, %v4549_v30, 0.0 }
 0xd85   :  { %v4512_v42 = vadd.f32 %v4511_v14, %v4510_v12  ;;  %v4557_v16 = vrot.slane %v4556_v41, 1  ;;  %v4571_v17 = vsel %vm418_vm4, %v4546_v26, 0.0 }
 0xd86   :  { %v4521_v61 = vadd.f32 %v4520_v40, %v4519_v62  ;;  %v4566_v13 = vrot.slane %v4565_v36, 1  ;;  %v4528_v34 = vadd.f32 %v4527_v10, %v4526_v48  ;;  %v4572_v37 = vadd.f32 %v4571_v17, %v4570_v15  ;;  %v5109_v40 = vld [vmem:[%s8816_s2 + $0x7a] ss:$8 sm:$0x7] }
 0xd87   :  { %v4535_v21 = vmul.f32 0.03125, %v4512_v42  ;;  %v4558_v28 = vadd.f32 %v4557_v16, %v4556_v41  ;;  %v5108_v41 = vld [vmem:[%s8816_s2 + $0x79] ss:$8 sm:$0x7]  ;;  %v4655_v16 = vrot.slane %v5109_v40, %v8922_v55 }
 0xd88   :  { %v4536_v0 = vmul.f32 0.03125, %v4521_v61  ;;  %v4567_v35 = vadd.f32 %v4566_v13, %v4565_v36  ;;  %v4529_v2 = vrot.slane %v4528_v34, 4  ;;  %v4574_v44 = vadd.f32 %v4573_v57, %v4572_v37 }
 0xd89   :  { %v4581_v19 = vmul.f32 0.03125, %v4558_v28  ;;  %v4584_v22 = vmul.f32 %v4535_v21, %v4535_v21  ;;  %v4602_v52 = vsub.f32 %v8664_v5, %v4535_v21  ;;  %v4593_v38 = vsub.f32 %v8634_v51, %v4535_v21 }
 0xd8a   :  { %v4582_v45 = vmul.f32 0.03125, %v4567_v35  ;;  %v4585_v18 = vmul.f32 %v4536_v0, %v4536_v0  ;;  %v4603_v59 = vsub.f32 %v8667_v3, %v4536_v0  ;;  %v4530_v33 = vadd.f32 %v4529_v2, %v4528_v34 }
 0xd8b   :  { %v4587_v23 = vsub.f32 %v4581_v19, %v4584_v22  ;;  %v4575_v63 = vrot.slane %v4574_v44, 4  ;;  %v4594_v32 = vsub.f32 %v8636_v49, %v4536_v0  ;;  %v4597_v53 = vsub.f32 %v8640_v56, %v4536_v0 }
 0xd8c   :  { %v4588_v9 = vsub.f32 %v4582_v45, %v4585_v18  ;;  %v4531_v6 = vrot.slane %v4530_v33, 2  ;;  %v4596_v29 = vsub.f32 %v8638_v58, %v4535_v21  ;;  %v4600_v60 = vsub.f32 %v8656_v46, %v4536_v0 }
 0xd8d   :  { %v4590_v5 = vmax.f32 %v4587_v23, 0.0  ;;  %v4576_v43 = vadd.f32 %v4575_v63, %v4574_v44  ;;  %v4599_v51 = vsub.f32 %v8654_v1, %v4535_v21  ;;  %v4627_v48 = vrot.slane %v5108_v41, %v8922_v55 }
 0xd8e   :  { %v4591_v50 = vmax.f32 %v4588_v9, 0.0  ;;  %v4532_v31 = vadd.f32 %v4531_v6, %v4530_v33 }
 0xd8f   :  { %v4605_v3 = vadd.f32 1e-05, %v4590_v5  ;;  %v4577_v12 = vrot.slane %v4576_v43, 2  ;;  %v4663_v5 = vrot.slane %v5109_v40, %v8921_v4 }
 0xd90   :  { %v4606_v39 = vadd.f32 1e-05, %v4591_v50  ;;  %v4533_v15 = vrot.slane %v4532_v31, 1 }
 0xd91   :  { %6484 = vrsqrt.f32 %v4605_v3  ;;  %v4578_v49 = vadd.f32 %v4577_v12, %v4576_v43 }
 0xd92   :  { %6486 = vrsqrt.f32 %v4606_v39  ;;  %v4534_v56 = vadd.f32 %v4533_v15, %v4532_v31 }
 0xd93   :  { %v4579_v62 = vrot.slane %v4578_v49, 1 }
 0xd94   :  { %v4537_v7 = vmul.f32 0.03125, %v4534_v56 }
 0xd95   :  { %v4580_v30 = vadd.f32 %v4579_v62, %v4578_v49 }
 0xd96   :  { %v4586_v58 = vmul.f32 %v4537_v7, %v4537_v7  ;;  %v4601_v46 = vsub.f32 %v8691_v11, %v4537_v7  ;;  %v4595_v14 = vsub.f32 %v8677_v20, %v4537_v7  ;;  %v4598_v1 = vsub.f32 %v8675_v24, %v4537_v7 }
 0xd97   :  { %v4583_v47 = vmul.f32 0.03125, %v4580_v30  ;;  %v4604_v26 = vsub.f32 %v8689_v27, %v4537_v7  ;;  %v4631_v20 = vrot.slane %v5108_v41, %v8923_v8  ;;  %v4659_v24 = vrot.slane %v5109_v40, %v8923_v8  ;;  %v5004_v40 = vld [vmem:[%s8820_s6 + $0x8] sm:$0xff] }
 0xd99   :  { %v4589_v36 = vsub.f32 %v4583_v47, %v4586_v58 }
 0xd9b   :  { %v6485_v42 = vpop.eup %6484  ;;  %v4592_v11 = vmax.f32 %v4589_v36, 0.0  ;;  %v5005_v36 = vld [vmem:[%s8820_s6 + $0x10] sm:$0xff] }
 0xd9c   :  { %v6487_v10 = vpop.eup %6486  ;;  %v4620_v17 = vmul.f32 %v6485_v42, %v4602_v52  ;;  %v4611_v61 = vmul.f32 %v6485_v42, %v4593_v38  ;;  %v4614_v13 = vmul.f32 %v6485_v42, %v4596_v29  ;;  %v4617_v27 = vmul.f32 %v6485_v42, %v4599_v51  ;;  %v5006_v42 = vld [vmem:[%s8820_s6 + $0x18] sm:$0xff] }
 0xd9d   :  { %v4621_v34 = vmul.f32 %v6487_v10, %v4603_v59  ;;  %v4607_v37 = vadd.f32 1e-05, %v4592_v11  ;;  %v4612_v21 = vmul.f32 %v6487_v10, %v4594_v32  ;;  %v4615_v28 = vmul.f32 %v6487_v10, %v4597_v53 }
 0xd9e   :  { %v4639_v57 = vmul.f32 %v4627_v48, %v4611_v61  ;;  %v4618_v0 = vmul.f32 %v6487_v10, %v4600_v60  ;;  %v4642_v19 = vmul.f32 %v4627_v48, %v4614_v13  ;;  %v4645_v18 = vmul.f32 %v4627_v48, %v4617_v27  ;;  %v5010_v10 = vld [vmem:[%s8820_s6 + $0x38] sm:$0xff]  ;;  %v5011_v61 = vld [vmem:[%s8820_s6 + $0x40] sm:$0xff]  ;;  %v5012_v13 = vld [vmem:[%s8820_s6 + $0x48] sm:$0xff] }
 0xd9f   :  { %6488 = vrsqrt.f32 %v4607_v37  ;;  %v4640_v35 = vmul.f32 %v4631_v20, %v4612_v21  ;;  %v4643_v2 = vmul.f32 %v4631_v20, %v4615_v28  ;;  %v4649_v23 = vmul.f32 %v4631_v20, %v4621_v34  ;;  %v5013_v34 = vld [vmem:[%s8820_s6 + $0x50] sm:$0xff]  ;;  %v5014_v37 = vld [vmem:[%s8820_s6 + $0x58] sm:$0xff] }
 0xda0   :  { %v4667_v44 = vadd.f32 %v4655_v16, %v4639_v57  ;;  %v4646_v45 = vmul.f32 %v4631_v20, %v4618_v0  ;;  %v4670_v38 = vadd.f32 %v4655_v16, %v4642_v19  ;;  %v4673_v63 = vadd.f32 %v4655_v16, %v4645_v18  ;;  %v5008_v20 = vld [vmem:[%s8820_s6 + $0x28] sm:$0xff] }
 0xda1   :  { %v4668_v22 = vadd.f32 %v4659_v24, %v4640_v35  ;;  %v4671_v8 = vadd.f32 %v4659_v24, %v4643_v2  ;;  %v4635_v32 = vrot.slane %v5108_v41, %v8921_v4  ;;  %v4648_v9 = vmul.f32 %v4627_v48, %v4620_v17 }
 0xda2   :  { %v4679_v52 = vmax.f32 %v4667_v44, 0.0  ;;  %v4674_v59 = vadd.f32 %v4659_v24, %v4646_v45  ;;  %v4682_v53 = vmax.f32 %v4670_v38, 0.0  ;;  %v4677_v60 = vadd.f32 %v4659_v24, %v4649_v23  ;;  %v117_v45 = vld [vmem:[%s8816_s2 + $0x7b] ss:$0 sm:$0xff] }
 0xda3   :  { %v4680_v55 = vmax.f32 %v4668_v22, 0.0  ;;  %v4683_v33 = vmax.f32 %v4671_v8, 0.0  ;;  %v4685_v3 = vmax.f32 %v4673_v63, 0.0  ;;  %v4676_v49 = vadd.f32 %v4655_v16, %v4648_v9  ;;  %v5009_v16 = vld [vmem:[%s8820_s6 + $0x30] sm:$0xff] }
 0xda4   :  { %v4686_v29 = vmax.f32 %v4674_v59, 0.0  ;;  %v4689_v56 = vmax.f32 %v4677_v60, 0.0  ;;  %v6048_v11 = vpack.c.bf16 %v5006_v42, %v5005_v36  ;;  %v6054_v17 = vpack.c.bf16 %v5010_v10, %v5009_v16 }
 0xda5   :  { %4767 = vmatprep.mubr.f32.mxu1 %v4680_v55  ;;  %v6057_v27 = vpack.c.bf16 %v5012_v13, %v5011_v61  ;;  %v6060_v21 = vpack.c.bf16 %v5014_v37, %v5013_v34 }
 0xda6   :  { %4768 = vmatmul.mubr.f32.vlgmr.msra.gmra.mrb[38].mxu1 %v4679_v52 }
 0xda7   :  { %4772 = vmatprep.mubr.f32.mxu1 %v4683_v33 }
 0xda9   :  { %v6489_v6 = vpop.eup %6488 }
 0xdaa   :  { %v4619_v43 = vmul.f32 %v6489_v6, %v4601_v46  ;;  %4773 = vmatmul.mubr.f32.gmra.mrb[40].mxu1 %v4682_v53  ;;  %v4613_v51 = vmul.f32 %v6489_v6, %v4595_v14  ;;  %v4616_v50 = vmul.f32 %v6489_v6, %v4598_v1  ;;  %v4622_v31 = vmul.f32 %v6489_v6, %v4604_v26  ;;  %v5003_v26 = vld [vmem:[%s8820_s6] sm:$0xff] }
 0xdab   :  { %4777 = vmatprep.mubr.f32.mxu1 %v4686_v29  ;;  %v4688_v46 = vmax.f32 %v4676_v49, 0.0  ;;  %v6045_v48 = vpack.c.bf16 %v5004_v40, %v5003_v26 }
 0xdac   :  { %v4647_v12 = vmul.f32 %v4635_v32, %v4619_v43  ;;  %v4641_v39 = vmul.f32 %v4635_v32, %v4613_v51  ;;  %v4644_v15 = vmul.f32 %v4635_v32, %v4616_v50  ;;  %v4650_v62 = vmul.f32 %v4635_v32, %v4622_v31 }
 0xdad   :  { %6046 = vmatpush3.bf16.msra.mxu1 %v6045_v48 }
 0xdae   :  { %4778 = vmatmul.mubr.f32.gmra.mrb[42].mxu1 %v4685_v3  ;;  %v4669_v7 = vadd.f32 %v4663_v5, %v4641_v39  ;;  %v4672_v30 = vadd.f32 %v4663_v5, %v4644_v15  ;;  %v4675_v58 = vadd.f32 %v4663_v5, %v4647_v12  ;;  %v4678_v47 = vadd.f32 %v4663_v5, %v4650_v62 }
 0xdaf   :  { %4782 = vmatprep.mubr.f32.mxu1 %v4689_v56  ;;  %6047 = vmatprep.subr.bf16.mxu1 %v8913_v54 }
 0xdb0   :  { %v4681_v41 = vmax.f32 %v4669_v7, 0.0  ;;  %v4684_v4 = vmax.f32 %v4672_v30, 0.0  ;;  %v4687_v14 = vmax.f32 %v4675_v58, 0.0  ;;  %v4690_v1 = vmax.f32 %v4678_v47, 0.0 }
 0xdb1   :  { %6049 = vmatpush3.bf16.msra.mxu1 %v6048_v11 }
 0xdb2   :  { %5648 = vmatprep.mubr.msk.f32.mxu0 %vm418_vm4, %v4681_v41  ;;  %4783 = vmatmul.mubr.f32.gmra.mrb[44].mxu1 %v4688_v46 }
 0xdb3   :  { %5649 = vmatmul.mubr.msk.f32.vlgmr.msra.gmra.mrb[70].mxu0 %vm418_vm4, %v4684_v4  ;;  %5689 = vmatprep.mubr.msk.f32.mxu1 %vm6535_vm7, %v8920_v25 }
 0xdb4   :  { %5651 = vmatprep.mubr.msk.f32.mxu0 %vm418_vm4, %v4687_v14  ;;  %6050 = vmatprep.subr.bf16.mxu1 %v8913_v54 }
 0xdb7   :  { %5652 = vmatmul.mubr.msk.f32.gmra.mrb[72].mxu0 %vm418_vm4, %v4690_v1 }
 0xdb8   :  { %5662 = vmatprep.mubr.msk.f32.mxu0 %vm6535_vm7, %v8920_v25  ;;  %v5007_v25 = vld [vmem:[%s8820_s6 + $0x20] sm:$0xff] }
 0xdb9   :  { %v6051_v24 = vpack.c.bf16 %v5008_v20, %v5007_v25 }
 0xdbb   :  { %6052 = vmatpush3.bf16.msra.mxu1 %v6051_v24 }
 0xdbc   :  { %6053 = vmatprep.subr.bf16.mxu1 %v8913_v54 }
 0xdbf   :  { %6055 = vmatpush3.bf16.msra.mxu1 %v6054_v17 }
 0xdc0   :  { %6056 = vmatprep.subr.bf16.mxu1 %v8913_v54 }
 0xdc3   :  { %6058 = vmatpush3.bf16.msra.mxu1 %v6057_v27 }
 0xdc4   :  { %6059 = vmatprep.subr.bf16.mxu1 %v8913_v54 }
 0xdc7   :  { %6061 = vmatpush3.bf16.msra.mxu1 %v6060_v21 }
 0xe79   :  { %v5426_v28 = vpop.f32.mrb[38].mxu1 }
 0xe7a   :  { %v5427_v57 = vpop.f32.mrb[39].mxu1 }
 0xe7b   :  { %v5428_v0 = vadd.f32 %v5427_v57, %v5426_v28 }
 0xe7d   :  { %v5429_v35 = vpop.f32.mrb[40].mxu1  ;;  %v4770_v38 = vadd.f32 %v5428_v0, %v117_v45 }
 0xe7e   :  { %v5430_v2 = vpop.f32.mrb[41].mxu1 }
 0xe7f   :  { %v5431_v44 = vadd.f32 %v5430_v2, %v5429_v35  ;;  %v118_v35 = vld [vmem:[%s8816_s2 + $0x7c] ss:$0 sm:$0xff] }
 0xe81   :  { %v5432_v19 = vpop.f32.mrb[42].mxu1  ;;  %v4775_v55 = vadd.f32 %v5431_v44, %v117_v45 }
 0xe82   :  { %v5433_v22 = vpop.f32.mrb[43].mxu1 }
 0xe83   :  { %v5434_v8 = vadd.f32 %v5433_v22, %v5432_v19 }
 0xe85   :  { %v5435_v18 = vpop.f32.mrb[44].mxu1  ;;  %v4780_v43 = vadd.f32 %v5434_v8, %v117_v45  ;;  %v119_v8 = vld [vmem:[%s8816_s2 + $0x7d] ss:$0 sm:$0xff] }
 0xe86   :  { %v5650_v52 = vpop.f32.mrb[70].mxu0  ;;  %v5436_v33 = vpop.f32.mrb[45].mxu1 }
 0xe87   :  { %v4860_v59 = vadd.f32 %v5650_v52, %v4775_v55  ;;  %v4854_v23 = vpop.f32.mrb[71].mxu0  ;;  %v5437_v63 = vadd.f32 %v5436_v33, %v5435_v18 }
 0xe88   :  { %v4855_v32 = vadd.f32 %v4854_v23, %v4770_v38 }
 0xe89   :  { %v4874_v53 = vsel %vm1994_vm10, %v4860_v59, 0.0  ;;  %v4888_v9 = vmul.f32 %v4860_v59, %v4860_v59  ;;  %v4785_v6 = vadd.f32 %v5437_v63, %v117_v45 }
 0xe8a   :  { %v4873_v29 = vsel %vm1994_vm10, %v4855_v32, 0.0  ;;  %v4887_v60 = vmul.f32 %v4855_v32, %v4855_v32  ;;  %v5653_v5 = vpop.f32.mrb[72].mxu0 }
 0xe8b   :  { %v4892_v51 = vsel %vm1994_vm10, %v4888_v9, 0.0  ;;  %v4875_v50 = vadd.f32 %v4874_v53, %v4873_v29  ;;  %v4870_v31 = vadd.f32 %v5653_v5, %v4785_v6  ;;  %v4864_v3 = vpop.f32.mrb[73].mxu0 }
 0xe8c   :  { %v4891_v12 = vsel %vm1994_vm10, %v4887_v60, 0.0  ;;  %v4865_v39 = vadd.f32 %v4864_v3, %v4780_v43  ;;  %v79_v60 = vld [vmem:[%s8815_s1 + $0x1a0] sm:$0x3] }
 0xe8d   :  { %v4893_v15 = vadd.f32 %v4892_v51, %v4891_v12  ;;  %v4890_v49 = vmul.f32 %v4870_v31, %v4870_v31  ;;  %v4878_v56 = vsel %vm1994_vm10, %v4870_v31, 0.0  ;;  %v120_v51 = vld [vmem:[%s8816_s2 + $0x7e] ss:$0 sm:$0xff] }
 0xe8e   :  { %v4876_v62 = vsel %vm1994_vm10, %v4865_v39, 0.0  ;;  %v4889_v7 = vmul.f32 %v4865_v39, %v4865_v39 }
 0xe8f   :  { %v4877_v30 = vadd.f32 %v4876_v62, %v4875_v50  ;;  %v4896_v58 = vsel %vm1994_vm10, %v4890_v49, 0.0 }
 0xe90   :  { %v4894_v41 = vsel %vm1994_vm10, %v4889_v7, 0.0 }
 0xe91   :  { %v4879_v4 = vadd.f32 %v4878_v56, %v4877_v30  ;;  %v4895_v46 = vadd.f32 %v4894_v41, %v4893_v15 }
 0xe93   :  { %v4880_v47 = vrot.slane %v4879_v4, 4  ;;  %v4897_v14 = vadd.f32 %v4896_v58, %v4895_v46 }
 0xe95   :  { %v4881_v1 = vadd.f32 %v4880_v47, %v4879_v4  ;;  %v4898_v26 = vrot.slane %v4897_v14, 4 }
 0xe97   :  { %v4882_v40 = vrot.slane %v4881_v1, 2  ;;  %v4899_v36 = vadd.f32 %v4898_v26, %v4897_v14 }
 0xe99   :  { %v4883_v48 = vadd.f32 %v4882_v40, %v4881_v1  ;;  %v4900_v42 = vrot.slane %v4899_v36, 2 }
 0xe9b   :  { %v4884_v11 = vrot.slane %v4883_v48, 1  ;;  %v4901_v25 = vadd.f32 %v4900_v42, %v4899_v36 }
 0xe9d   :  { %v4885_v20 = vadd.f32 %v4884_v11, %v4883_v48  ;;  %v4902_v24 = vrot.slane %v4901_v25, 1 }
 0xe9f   :  { %v4886_v16 = vmul.f32 0.03125, %v4885_v20  ;;  %v4903_v10 = vadd.f32 %v4902_v24, %v4901_v25 }
 0xea1   :  { %v4904_v17 = vmul.f32 0.03125, %v4903_v10  ;;  %v4905_v61 = vmul.f32 %v4886_v16, %v4886_v16  ;;  %v4910_v13 = vsub.f32 %v4865_v39, %v4886_v16  ;;  %v4908_v27 = vsub.f32 %v4855_v32, %v4886_v16 }
 0xea2   :  { %v4909_v34 = vsub.f32 %v4860_v59, %v4886_v16  ;;  %v4911_v37 = vsub.f32 %v4870_v31, %v4886_v16 }
 0xea3   :  { %v4906_v21 = vsub.f32 %v4904_v17, %v4905_v61 }
 0xea5   :  { %v4907_v28 = vmax.f32 %v4906_v21, 0.0 }
 0xea7   :  { %v4912_v57 = vadd.f32 1e-05, %v4907_v28 }
 0xea9   :  { %6490 = vrsqrt.f32 %v4912_v57 }
 0xeb3   :  { %v6491_v0 = vpop.eup %6490 }
 0xeb4   :  { %v4916_v2 = vmul.f32 %v6491_v0, %v4910_v13  ;;  %v4914_v44 = vmul.f32 %v6491_v0, %v4908_v27  ;;  %v4915_v19 = vmul.f32 %v6491_v0, %v4909_v34  ;;  %v4917_v22 = vmul.f32 %v6491_v0, %v4911_v37 }
 0xeb6   :  { %v4920_v45 = vmul.f32 %v4916_v2, %v118_v35  ;;  %v4918_v55 = vmul.f32 %v4914_v44, %v118_v35  ;;  %v4919_v18 = vmul.f32 %v4915_v19, %v118_v35  ;;  %v4921_v52 = vmul.f32 %v4917_v22, %v118_v35 }
 0xeb8   :  { %v4922_v38 = vadd.f32 %v4918_v55, %v119_v8  ;;  %v4923_v33 = vadd.f32 %v4919_v18, %v119_v8  ;;  %v4924_v59 = vadd.f32 %v4920_v45, %v119_v8  ;;  %v4925_v23 = vadd.f32 %v4921_v52, %v119_v8 }
 0xeba   :  { %v4926_v63 = vmax.f32 %v4922_v38, 0.0  ;;  %v4927_v32 = vmax.f32 %v4923_v33, 0.0  ;;  %v4928_v53 = vmax.f32 %v4924_v59, 0.0  ;;  %v4929_v9 = vmax.f32 %v4925_v23, 0.0 }
 0xebc   :  { %v6039_v6 = vpack.c.bf16 %v4927_v32, %v4926_v63  ;;  %v6042_v29 = vpack.c.bf16 %v4929_v9, %v4928_v53 }
 0xebe   :  { %6040 = vmatpush3.bf16.msra.mxu0 %v6039_v6 }
 0xebf   :  { %6041 = vmatprep.subr.bf16.mxu0 %v8913_v54 }
 0xec2   :  { %6043 = vmatpush3.bf16.msra.mxu0 %v6042_v29 }
 0xec5   :  { %5663 = vmatmul.mubr.msk.f32.vlgmr.msra.gmra.mrb[74].mxu0 %vm418_vm4, %v79_v60 }
 0xf98   :  { %v4999_v5 = vpop.f32.mrb[74].mxu0 }
 0xf99   :  { %v5664_v43 = vpop.f32.mrb[75].mxu0  ;;  %5690 = vmatmul.mubr.msk.f32.vlgmr.msra.gmra.mrb[46].mxu1 %vm1994_vm10, %v4999_v5 }
0x106c   :  { %v5084_v50 = vpop.f32.mrb[46].mxu1 }
0x106d   :  { %v5085_v54 = vadd.f32 %v5084_v50, %v120_v51  ;;  %v5691_v31 = vpop.f32.mrb[47].mxu1 }
0x106f   :  { %5089 = vst.msk [vmem:[#allocation2] sm:$0x3] %vm5088_vm6, %v5085_v54 }
0x1070   :  { %6503 = shalt.err (!%p6500_p4)
}
0x1071   :  { %s6504_s27 = scalar_lea.hbm %s8821_s7, 32 }
0x1072   :  { %p6505_p5 = scmp.ne.s32.totalorder %s8821_s7, %s6504_s27  ;;  %p6508_p6 = scmp.lt.u32.totalorder %s6504_s27, %s8821_s7 }
0x1074   :  { %p6510_p7 = pnand %p6508_p6, %p6505_p5 }
0x1076   :  { %6513 = shalt.err (!%p6510_p7)
}
0x1077   :  { %5099 = dma.vmem_to_hbm [thread:$0]  %s5097_s24, 32, %s8821_s7, [#allocation3]  }
0x1078   :  { %6514 = dma.done.wait [#allocation3], 32  }
0x1079   :  { %6515 = vsyncadd [#allocation3], 4294967264 }
0x107a   :  { %5103 = vsyncpa [#allocation3], 1 }

</bundles_post_ra>
